<compile_context>
chip_gen: v7x
topology: tpu7x:2x2x1
jax: 0.10.0
libtpu: 0.0.40
codegen_flags: <defaults>
</compile_context>

<pallas_src>
import math

import jax
import jax.numpy as jnp
from jax.experimental import pallas as pl
from jax.experimental.pallas import tpu as pltpu

# ----------------------------- configuration ---------------------------------
D_MODEL = 32          # decoder_layer.d_model
QUERY_DIM = 4         # query_dim
NUM_LAYERS = 2
N_QUERIES = 8
BATCH = 2
SEQ_MEM = 16          # flattened H*W of the memory
D_FFN = 64            # packing below assumes D_FFN == 2 * D_MODEL


# ------------------------------ kernel helpers --------------------------------
def _dot(a, b):
    return jnp.dot(a, b, preferred_element_type=jnp.float32)


def _dot_nt(a, b):
    # A @ B^T without an XLU transpose: contract the trailing dim of both.
    return jax.lax.dot_general(a, b, (((1,), (1,)), ((), ())),
                               preferred_element_type=jnp.float32)


def _layernorm(x, g, b):
    mu = jnp.mean(x, axis=-1, keepdims=True)
    xc = x - mu
    var = jnp.mean(xc * xc, axis=-1, keepdims=True)
    return xc * jax.lax.rsqrt(var + 1e-5) * g + b


def _softmax(s):
    s = s - jnp.max(s, axis=-1, keepdims=True)
    p = jnp.exp(s)
    return p * pl.reciprocal(jnp.sum(p, axis=-1, keepdims=True), approx=True)


# ------------------------------- fused kernel ---------------------------------
def _fused_decoder_kernel(tok_ref, mem_ref, bias_ref, cst_ref, hb_ref,
                          wdd_ref, w3264_ref, w6432_ref, lvec_ref, out_ref):
    D, Q = D_MODEL, QUERY_DIM
    T = tok_ref.shape[0]

    # -------- unpack loop-invariant data once (plain values, hoisted) --------
    tok = tok_ref[...]
    out = tok[:, :D]                                 # output = query_objects
    ref = jax.nn.sigmoid(tok[:, D:D + Q])            # reference_points

    cst = cst_ref[...]
    rep = cst[0:Q, :]                                # coord -> sine-block replication
    invf = cst[Q:Q + 1, :]                           # 2*pi / dim_t
    issin = cst[Q + 1:Q + 2, :]                      # 1 on sin lanes, 0 on cos lanes
    cossel = 1.0 - issin
    lomask = cst[Q + 2:Q + 3, :D]                    # 1 on lanes < D//2
    himask = 1.0 - lomask

    biasv = bias_ref[...]
    sa_bias = biasv[:, :T]                           # [T, T]  block-diag (batch)
    ca_bias = biasv[:, T:]                           # [T, SB] block-diag + key mask

    hb = hb_ref[...]
    qs_b1 = hb[0:1, :]; qs_b2 = hb[1:2, :]
    rp_b1 = hb[2:3, :]; rp_b2 = hb[3:4, :]
    ra_b1 = hb[4:5, :]; ra_b2 = hb[5:6, :]
    bb_b1 = hb[6:7, :]; bb_b2 = hb[7:8, :]; bb_b3 = hb[8:9, :]

    qs_w1 = wdd_ref[0]; qs_w2 = wdd_ref[1]; rp_w2 = wdd_ref[2]
    bb_w1 = wdd_ref[3]; bb_w2 = wdd_ref[4]
    ra_w2 = wdd_ref[5]; bb_w3 = wdd_ref[6]           # zero-padded to [D, D]
    rp_w1 = w6432_ref[0]

    kmem = mem_ref[0]                                # src + pos (cross-attn K input)
    vmem = mem_ref[1]                                # src       (cross-attn V input)

    # pos_transformation = query_scale(query_objects): the reference applies
    # query_scale to the constant query_objects every layer -> exact to hoist.
    h0 = jnp.maximum(_dot(out, qs_w1) + qs_b1, 0.0)
    pos_transform = _dot(h0, qs_w2) + qs_b2          # [T, D]

    # ------------------------------ decoder layers ---------------------------
    # NUM_LAYERS is a compile-time constant: the static Python loop fully
    # unrolls (same effect as lax.fori_loop(..., unroll=True)); `out`/`ref`
    # stay as values and per-layer weight views are static (free).
    for l in range(NUM_LAYERS):
        sa_wqk = w3264_ref[3 * l + 0]                # [Wq/sqrt(D) | Wk]
        wv_ra = w3264_ref[3 * l + 1]                 # [Wv | ref_anchor W1]
        ffn_w1 = w3264_ref[3 * l + 2]
        ffn_w2 = w6432_ref[1 + l]
        sa_wo = wdd_ref[7 + 5 * l + 0]
        ca_wq = wdd_ref[7 + 5 * l + 1]               # pre-scaled by 1/sqrt(D)
        ca_wk = wdd_ref[7 + 5 * l + 2]
        ca_wv = wdd_ref[7 + 5 * l + 3]
        ca_wo = wdd_ref[7 + 5 * l + 4]
        lv = lvec_ref[l]                             # [8, 2D]
        ln1_g = lv[0:1, :D]; ln1_b = lv[1:2, :D]
        ln2_g = lv[2:3, :D]; ln2_b = lv[3:4, :D]
        ln3_g = lv[4:5, :D]; ln3_b = lv[5:6, :D]
        ffn_b1 = lv[6:7, :]; ffn_b2 = lv[7:8, :D]

        obj_center = ref                             # [T, 4] (x, y, w, h)

        # sine embedding of the anchor (tiny replicate-matmul + EUP sin/cos)
        ang = _dot(obj_center, rep) * invf           # [T, 2D]
        qse = issin * jnp.sin(ang) + cossel * jnp.cos(ang)

        # query_pos = ref_point_head(query_sine_embed)
        h = jnp.maximum(_dot(qse, rp_w1) + rp_b1, 0.0)
        query_pos = _dot(h, rp_w2) + rp_b2           # [T, D]

        # fused: self-attn V and ref_anchor hidden share LHS `out`
        vra = _dot(out, wv_ra)                       # [T, 2D]
        v_sa = vra[:, :D]
        ra_h = jnp.maximum(vra[:, D:] + ra_b1, 0.0)
        refhw = jax.nn.sigmoid(_dot(ra_h, ra_w2) + ra_b2)   # lanes 0..1 valid

        # modulated positional query (single lane-dense select, mask hoisted)
        scale_lo = refhw[:, 1:2] / obj_center[:, 3:4]
        scale_hi = refhw[:, 0:1] / obj_center[:, 2:3]
        qse_mod = qse[:, :D] * pos_transform * (lomask * scale_lo + himask * scale_hi)

        # ---- self attention (fused Q|K projection, no transposes) ----
        q_in = out + query_pos
        qk = _dot(q_in, sa_wqk)                      # [T, 2D]
        s = _dot_nt(qk[:, :D], qk[:, D:]) + sa_bias  # Q @ K^T via dot_general
        sa = _dot(_dot(_softmax(s), v_sa), sa_wo)
        out = _layernorm(out + sa, ln1_g, ln1_b)

        # ---- cross attention to the encoder memory (per-layer K/V weights) ----
        k_ca = _dot(kmem, ca_wk)                     # [SB, D]
        v_ca = _dot(vmem, ca_wv)                     # [SB, D]
        q_ca = _dot(out + query_pos + qse_mod, ca_wq)
        s = _dot_nt(q_ca, k_ca) + ca_bias
        ca = _dot(_dot(_softmax(s), v_ca), ca_wo)
        out = _layernorm(out + ca, ln2_g, ln2_b)

        # ---- FFN ----
        h = jnp.maximum(_dot(out, ffn_w1) + ffn_b1, 0.0)
        out = _layernorm(out + _dot(h, ffn_w2) + ffn_b2, ln3_g, ln3_b)

        # ---- bbox_embed + iterative anchor refinement (detach = no-op fwd) ----
        h = jnp.maximum(_dot(out, bb_w1) + bb_b1, 0.0)
        h = jnp.maximum(_dot(h, bb_w2) + bb_b2, 0.0)
        tmp = (_dot(h, bb_w3) + bb_b3)[:, :Q]        # [T, 4]
        r = jnp.clip(ref, 0.0, 1.0)
        inv_sig = jnp.log(jnp.maximum(r, 1e-3) / jnp.maximum(1.0 - r, 1e-3))
        ref = jax.nn.sigmoid(tmp + inv_sig)

    out_ref[...] = out                               # single lane-aligned store


# ------------------------------ host wrapper -----------------------------------
def ssn_decoder_forward(params, query_objects, src, pos, mask, refpoints_unsigmoid):
    N, B, D = query_objects.shape
    S = src.shape[0]
    T, SB = N * B, S * B
    Q = QUERY_DIM
    half = D // 2
    assert D_FFN == 2 * D  # packing of the [*,64,32] / bias slabs assumes this

    # ---- canonical flat token / memory layouts (row = seq_index * B + b) ----
    tok = jnp.concatenate(
        [query_objects.reshape(T, D), refpoints_unsigmoid.reshape(T, Q)], axis=1)
    src_f = src.reshape(SB, D)
    pos_f = pos.reshape(SB, D)
    mem = jnp.stack([src_f + pos_f, src_f], axis=0)                        # [2, SB, D]

    # ---- additive block-diagonal attention biases (layer-invariant) ----
    qb = jnp.arange(T, dtype=jnp.int32) % B
    kb = jnp.arange(SB, dtype=jnp.int32) % B
    ks = jnp.arange(SB, dtype=jnp.int32) // B
    sa_bias = jnp.where(qb[:, None] == qb[None, :], 0.0, -1e9)
    key_ok = jnp.logical_not(mask)[kb, ks]
    ca_bias = jnp.where((qb[:, None] == kb[None, :]) & key_ok[None, :], 0.0, -1e9)
    bias = jnp.concatenate([sa_bias, ca_bias], axis=1).astype(jnp.float32)  # [T, T+SB]

    # ---- sine-embedding + modulation constants (host-built, one slab) ----
    lane = jnp.arange(2 * D)
    m = lane % half                              # position inside a coordinate block
    blk = lane // half                           # y, x, w, h blocks
    dim_t = 10000.0 ** ((m // 2).astype(jnp.float32) * (2.0 / half))
    invf = ((2.0 * math.pi) / dim_t)[None, :]
    issin = ((m % 2) == 0).astype(jnp.float32)[None, :]
    coord_of_block = jnp.array([1, 0, 2, 3], dtype=jnp.int32)              # y, x, w, h
    rep = (coord_of_block[blk][None, :] ==
           jnp.arange(Q, dtype=jnp.int32)[:, None]).astype(jnp.float32)    # [Q, 2D]
    lomask = jnp.concatenate([(jnp.arange(D) < half).astype(jnp.float32),
                              jnp.zeros((D,), jnp.float32)])[None, :]
    cst = jnp.concatenate([rep, invf, issin, lomask], axis=0).astype(jnp.float32)

    # ---- pack parameters into a few stacked slabs ----
    qs_w1, qs_b1, qs_w2, qs_b2 = params["query_scale"]
    rp_w1, rp_b1, rp_w2, rp_b2 = params["ref_point_head"]
    ra_w1, ra_b1, ra_w2, ra_b2 = params["ref_anchor_head"]
    bb_w1, bb_b1, bb_w2, bb_b2, bb_w3, bb_b3 = params["bbox_embed"]
    layers = params["layers"]
    inv_sqrt_d = 1.0 / math.sqrt(D)

    def padc(w, width):
        return jnp.pad(w, ((0, 0), (0, width - w.shape[1])))

    # every D x D weight (narrow outputs zero-padded) in one [n, D, D] stack
    dd = [qs_w1, qs_w2, rp_w2, bb_w1, bb_w2, padc(ra_w2, D), padc(bb_w3, D)]
    for lp in layers:
        dd += [lp["sa_wo"], lp["ca_wq"] * inv_sqrt_d,
               lp["ca_wk"], lp["ca_wv"], lp["ca_wo"]]
    w_dd = jnp.stack(dd, axis=0)                                           # [7+5L, D, D]

    w3264 = []
    for lp in layers:
        w3264 += [jnp.concatenate([lp["sa_wq"] * inv_sqrt_d, lp["sa_wk"]], axis=1),
                  jnp.concatenate([lp["sa_wv"], ra_w1], axis=1),
                  lp["ffn_w1"]]
    w_3264 = jnp.stack(w3264, axis=0)                                      # [3L, D, 2D]

    w_6432 = jnp.stack([rp_w1] + [lp["ffn_w2"] for lp in layers], axis=0)  # [1+L, 2D, D]

    hb = jnp.concatenate([qs_b1, qs_b2, rp_b1, rp_b2, ra_b1, padc(ra_b2, D),
                          bb_b1, bb_b2, padc(bb_b3, D)], axis=0)           # [9, D]

    lvec = jnp.stack([jnp.concatenate(
        [padc(lp["ln1_g"], 2 * D), padc(lp["ln1_b"], 2 * D),
         padc(lp["ln2_g"], 2 * D), padc(lp["ln2_b"], 2 * D),
         padc(lp["ln3_g"], 2 * D), padc(lp["ln3_b"], 2 * D),
         padc(lp["ffn_b1"], 2 * D), padc(lp["ffn_b2"], 2 * D)], axis=0)
        for lp in layers], axis=0)                                         # [L, 8, 2D]

    vspec = pl.BlockSpec(memory_space=pltpu.MemorySpace.VMEM)
    out_flat = pl.pallas_call(
        _fused_decoder_kernel,
        out_shape=jax.ShapeDtypeStruct((T, D), jnp.float32),
        in_specs=[vspec] * 9,
        out_specs=vspec,
    )(tok, mem, bias, cst, hb, w_dd, w_3264, w_6432, lvec)

    return out_flat.reshape(N, B, D)


# ----------------------------- parameter init ---------------------------------
def _linear(key, din, dout, scale=0.05):
    kw, kb = jax.random.split(key)
    w = jax.random.normal(kw, (din, dout), jnp.float32) * scale
    b = jax.random.normal(kb, (1, dout), jnp.float32) * scale
    return w, b


def init_params(key):
    D, Q = D_MODEL, QUERY_DIM
    ks = list(jax.random.split(key, 20))
    params = {}
    w1, b1 = _linear(ks[0], D, D); w2, b2 = _linear(ks[1], D, D)
    params["query_scale"] = (w1, b1, w2, b2)                 # MLP(D, D, D, 2)
    w1, b1 = _linear(ks[2], 2 * D, D); w2, b2 = _linear(ks[3], D, D)
    params["ref_point_head"] = (w1, b1, w2, b2)              # MLP(2D, D, D, 2)
    w1, b1 = _linear(ks[4], D, D); w2, b2 = _linear(ks[5], D, 2)
    params["ref_anchor_head"] = (w1, b1, w2, b2)             # MLP(D, D, 2, 2)
    w1, b1 = _linear(ks[6], D, D); w2, b2 = _linear(ks[7], D, D)
    w3, b3 = _linear(ks[8], D, Q)
    params["bbox_embed"] = (w1, b1, w2, b2, w3, b3)          # MLP(D, D, Q, 3)

    # Surrogate decoder layer.  _get_clones deep-copies one layer, so every
    # layer starts with identical weights; the kernel still carries per-layer
    # stacks so trained (distinct) per-layer checkpoints drop in unchanged.
    base = {}
    for i, name in enumerate(["sa_wq", "sa_wk", "sa_wv", "sa_wo",
                              "ca_wq", "ca_wk", "ca_wv", "ca_wo"]):
        base[name] = jax.random.normal(ks[9 + i], (D, D), jnp.float32) * 0.05
    base["ffn_w1"], base["ffn_b1"] = _linear(ks[17], D, D_FFN)
    base["ffn_w2"], base["ffn_b2"] = _linear(ks[18], D_FFN, D)
    for j in (1, 2, 3):
        base[f"ln{j}_g"] = jnp.ones((1, D), jnp.float32)
        base[f"ln{j}_b"] = jnp.zeros((1, D), jnp.float32)
    params["layers"] = [dict(base) for _ in range(NUM_LAYERS)]
    return params


# ---------------------------------- main ---------------------------------------
if __name__ == "__main__":
    key = jax.random.PRNGKey(0)
    k_par, k_q, k_s, k_p, k_r = jax.random.split(key, 5)

    params = init_params(k_par)

    query_objects = jax.random.normal(k_q, (N_QUERIES, BATCH, D_MODEL), jnp.float32)
    src = jax.random.normal(k_s, (SEQ_MEM, BATCH, D_MODEL), jnp.float32)
    pos = jax.random.normal(k_p, (SEQ_MEM, BATCH, D_MODEL), jnp.float32)
    refpoints_unsigmoid = jax.random.normal(k_r, (N_QUERIES, BATCH, QUERY_DIM), jnp.float32)
    mask = jnp.zeros((BATCH, SEQ_MEM), dtype=bool).at[1, -2:].set(True)  # pad 2 keys of batch 1

    fwd = jax.jit(ssn_decoder_forward)
    out = jax.block_until_ready(
        fwd(params, query_objects, src, pos, mask, refpoints_unsigmoid))

    assert out.shape == (N_QUERIES, BATCH, D_MODEL)
    assert bool(jnp.all(jnp.isfinite(out)))
    print("KERNEL_OK")
</pallas_src>

<mosaic_0001>
module attributes {stable_mosaic.version = 11 : i64} {
  func.func @_fused_decoder_kernel(%arg0: memref<16x36xf32, #tpu.memory_space<vmem>>, %arg1: memref<2x32x32xf32, #tpu.memory_space<vmem>>, %arg2: memref<16x48xf32, #tpu.memory_space<vmem>>, %arg3: memref<7x64xf32, #tpu.memory_space<vmem>>, %arg4: memref<9x32xf32, #tpu.memory_space<vmem>>, %arg5: memref<17x32x32xf32, #tpu.memory_space<vmem>>, %arg6: memref<6x32x64xf32, #tpu.memory_space<vmem>>, %arg7: memref<3x64x32xf32, #tpu.memory_space<vmem>>, %arg8: memref<2x8x64xf32, #tpu.memory_space<vmem>>, %arg9: memref<16x32xf32, #tpu.memory_space<vmem>>) attributes {dimension_semantics = [], scalar_prefetch = 0 : i64, scratch_operands = 0 : i64, tpu.core_type = #tpu.core_type<tc>} {
    %c0 = arith.constant 0 : index
    %c0_0 = arith.constant 0 : index
    %0 = vector.load %arg0[%c0, %c0_0] : memref<16x36xf32, #tpu.memory_space<vmem>>, vector<16x36xf32>
    %1 = vector.extract_strided_slice %0 {offsets = [0, 0], sizes = [16, 32], strides = [1, 1]} : vector<16x36xf32> to vector<16x32xf32>
    %2 = vector.extract_strided_slice %0 {offsets = [0, 32], sizes = [16, 4], strides = [1, 1]} : vector<16x36xf32> to vector<16x4xf32>
    %3 = arith.negf %2 : vector<16x4xf32>
    %4 = math.exp %3 : vector<16x4xf32>
    %cst = arith.constant 1.000000e+00 : f32
    %5 = vector.broadcast %cst : f32 to vector<16x4xf32>
    %6 = arith.addf %5, %4 : vector<16x4xf32>
    %7 = arith.divf %5, %6 : vector<16x4xf32>
    %c0_1 = arith.constant 0 : index
    %c0_2 = arith.constant 0 : index
    %8 = vector.load %arg3[%c0_1, %c0_2] : memref<7x64xf32, #tpu.memory_space<vmem>>, vector<7x64xf32>
    %9 = vector.extract_strided_slice %8 {offsets = [0, 0], sizes = [4, 64], strides = [1, 1]} : vector<7x64xf32> to vector<4x64xf32>
    %10 = vector.extract_strided_slice %8 {offsets = [4, 0], sizes = [1, 64], strides = [1, 1]} : vector<7x64xf32> to vector<1x64xf32>
    %11 = vector.extract_strided_slice %8 {offsets = [5, 0], sizes = [1, 64], strides = [1, 1]} : vector<7x64xf32> to vector<1x64xf32>
    %cst_3 = arith.constant 1.000000e+00 : f32
    %12 = vector.broadcast %cst_3 : f32 to vector<1x64xf32>
    %13 = arith.subf %12, %11 : vector<1x64xf32>
    %14 = vector.extract_strided_slice %8 {offsets = [6, 0], sizes = [1, 32], strides = [1, 1]} : vector<7x64xf32> to vector<1x32xf32>
    %cst_4 = arith.constant 1.000000e+00 : f32
    %15 = vector.broadcast %cst_4 : f32 to vector<1x32xf32>
    %16 = arith.subf %15, %14 : vector<1x32xf32>
    %c0_5 = arith.constant 0 : index
    %c0_6 = arith.constant 0 : index
    %17 = vector.load %arg2[%c0_5, %c0_6] : memref<16x48xf32, #tpu.memory_space<vmem>>, vector<16x48xf32>
    %18 = vector.extract_strided_slice %17 {offsets = [0, 0], sizes = [16, 16], strides = [1, 1]} : vector<16x48xf32> to vector<16x16xf32>
    %19 = vector.extract_strided_slice %17 {offsets = [0, 16], sizes = [16, 32], strides = [1, 1]} : vector<16x48xf32> to vector<16x32xf32>
    %c0_7 = arith.constant 0 : index
    %c0_8 = arith.constant 0 : index
    %20 = vector.load %arg4[%c0_7, %c0_8] : memref<9x32xf32, #tpu.memory_space<vmem>>, vector<9x32xf32>
    %21 = vector.extract_strided_slice %20 {offsets = [0, 0], sizes = [1, 32], strides = [1, 1]} : vector<9x32xf32> to vector<1x32xf32>
    %22 = vector.extract_strided_slice %20 {offsets = [1, 0], sizes = [1, 32], strides = [1, 1]} : vector<9x32xf32> to vector<1x32xf32>
    %23 = vector.extract_strided_slice %20 {offsets = [2, 0], sizes = [1, 32], strides = [1, 1]} : vector<9x32xf32> to vector<1x32xf32>
    %24 = vector.extract_strided_slice %20 {offsets = [3, 0], sizes = [1, 32], strides = [1, 1]} : vector<9x32xf32> to vector<1x32xf32>
    %25 = vector.extract_strided_slice %20 {offsets = [4, 0], sizes = [1, 32], strides = [1, 1]} : vector<9x32xf32> to vector<1x32xf32>
    %26 = vector.extract_strided_slice %20 {offsets = [5, 0], sizes = [1, 32], strides = [1, 1]} : vector<9x32xf32> to vector<1x32xf32>
    %27 = vector.extract_strided_slice %20 {offsets = [6, 0], sizes = [1, 32], strides = [1, 1]} : vector<9x32xf32> to vector<1x32xf32>
    %28 = vector.extract_strided_slice %20 {offsets = [7, 0], sizes = [1, 32], strides = [1, 1]} : vector<9x32xf32> to vector<1x32xf32>
    %29 = vector.extract_strided_slice %20 {offsets = [8, 0], sizes = [1, 32], strides = [1, 1]} : vector<9x32xf32> to vector<1x32xf32>
    %c0_9 = arith.constant 0 : index
    %c0_10 = arith.constant 0 : index
    %c0_11 = arith.constant 0 : index
    %30 = vector.load %arg5[%c0_9, %c0_10, %c0_11] : memref<17x32x32xf32, #tpu.memory_space<vmem>>, vector<1x32x32xf32>
    %31 = vector.shape_cast %30 : vector<1x32x32xf32> to vector<32x32xf32>
    %c1 = arith.constant 1 : index
    %c0_12 = arith.constant 0 : index
    %c0_13 = arith.constant 0 : index
    %32 = vector.load %arg5[%c1, %c0_12, %c0_13] : memref<17x32x32xf32, #tpu.memory_space<vmem>>, vector<1x32x32xf32>
    %33 = vector.shape_cast %32 : vector<1x32x32xf32> to vector<32x32xf32>
    %c2 = arith.constant 2 : index
    %c0_14 = arith.constant 0 : index
    %c0_15 = arith.constant 0 : index
    %34 = vector.load %arg5[%c2, %c0_14, %c0_15] : memref<17x32x32xf32, #tpu.memory_space<vmem>>, vector<1x32x32xf32>
    %35 = vector.shape_cast %34 : vector<1x32x32xf32> to vector<32x32xf32>
    %c3 = arith.constant 3 : index
    %c0_16 = arith.constant 0 : index
    %c0_17 = arith.constant 0 : index
    %36 = vector.load %arg5[%c3, %c0_16, %c0_17] : memref<17x32x32xf32, #tpu.memory_space<vmem>>, vector<1x32x32xf32>
    %37 = vector.shape_cast %36 : vector<1x32x32xf32> to vector<32x32xf32>
    %c4 = arith.constant 4 : index
    %c0_18 = arith.constant 0 : index
    %c0_19 = arith.constant 0 : index
    %38 = vector.load %arg5[%c4, %c0_18, %c0_19] : memref<17x32x32xf32, #tpu.memory_space<vmem>>, vector<1x32x32xf32>
    %39 = vector.shape_cast %38 : vector<1x32x32xf32> to vector<32x32xf32>
    %c5 = arith.constant 5 : index
    %c0_20 = arith.constant 0 : index
    %c0_21 = arith.constant 0 : index
    %40 = vector.load %arg5[%c5, %c0_20, %c0_21] : memref<17x32x32xf32, #tpu.memory_space<vmem>>, vector<1x32x32xf32>
    %41 = vector.shape_cast %40 : vector<1x32x32xf32> to vector<32x32xf32>
    %c6 = arith.constant 6 : index
    %c0_22 = arith.constant 0 : index
    %c0_23 = arith.constant 0 : index
    %42 = vector.load %arg5[%c6, %c0_22, %c0_23] : memref<17x32x32xf32, #tpu.memory_space<vmem>>, vector<1x32x32xf32>
    %43 = vector.shape_cast %42 : vector<1x32x32xf32> to vector<32x32xf32>
    %c0_24 = arith.constant 0 : index
    %c0_25 = arith.constant 0 : index
    %c0_26 = arith.constant 0 : index
    %44 = vector.load %arg7[%c0_24, %c0_25, %c0_26] : memref<3x64x32xf32, #tpu.memory_space<vmem>>, vector<1x64x32xf32>
    %45 = vector.shape_cast %44 : vector<1x64x32xf32> to vector<64x32xf32>
    %c0_27 = arith.constant 0 : index
    %c0_28 = arith.constant 0 : index
    %c0_29 = arith.constant 0 : index
    %46 = vector.load %arg1[%c0_27, %c0_28, %c0_29] : memref<2x32x32xf32, #tpu.memory_space<vmem>>, vector<1x32x32xf32>
    %47 = vector.shape_cast %46 : vector<1x32x32xf32> to vector<32x32xf32>
    %c1_30 = arith.constant 1 : index
    %c0_31 = arith.constant 0 : index
    %c0_32 = arith.constant 0 : index
    %48 = vector.load %arg1[%c1_30, %c0_31, %c0_32] : memref<2x32x32xf32, #tpu.memory_space<vmem>>, vector<1x32x32xf32>
    %49 = vector.shape_cast %48 : vector<1x32x32xf32> to vector<32x32xf32>
    %cst_33 = arith.constant dense<0.000000e+00> : vector<16x32xf32>
    %50 = tpu.matmul %1, %31, %cst_33 {dimension_numbers = #tpu.dot_dimension_numbers<[1], [0], [0], [1], [0, 0, 1, 1], [], []>} : vector<16x32xf32>, vector<32x32xf32>, vector<16x32xf32> -> vector<16x32xf32>
    %51 = vector.broadcast %21 : vector<1x32xf32> to vector<16x32xf32>
    %52 = arith.addf %50, %51 : vector<16x32xf32>
    %cst_34 = arith.constant 0.000000e+00 : f32
    %53 = vector.broadcast %cst_34 : f32 to vector<16x32xf32>
    %54 = arith.maximumf %52, %53 : vector<16x32xf32>
    %cst_35 = arith.constant dense<0.000000e+00> : vector<16x32xf32>
    %55 = tpu.matmul %54, %33, %cst_35 {dimension_numbers = #tpu.dot_dimension_numbers<[1], [0], [0], [1], [0, 0, 1, 1], [], []>} : vector<16x32xf32>, vector<32x32xf32>, vector<16x32xf32> -> vector<16x32xf32>
    %56 = vector.broadcast %22 : vector<1x32xf32> to vector<16x32xf32>
    %57 = arith.addf %55, %56 : vector<16x32xf32>
    %c0_36 = arith.constant 0 : index
    %c0_37 = arith.constant 0 : index
    %c0_38 = arith.constant 0 : index
    %58 = vector.load %arg6[%c0_36, %c0_37, %c0_38] : memref<6x32x64xf32, #tpu.memory_space<vmem>>, vector<1x32x64xf32>
    %59 = vector.shape_cast %58 : vector<1x32x64xf32> to vector<32x64xf32>
    %c1_39 = arith.constant 1 : index
    %c0_40 = arith.constant 0 : index
    %c0_41 = arith.constant 0 : index
    %60 = vector.load %arg6[%c1_39, %c0_40, %c0_41] : memref<6x32x64xf32, #tpu.memory_space<vmem>>, vector<1x32x64xf32>
    %61 = vector.shape_cast %60 : vector<1x32x64xf32> to vector<32x64xf32>
    %c2_42 = arith.constant 2 : index
    %c0_43 = arith.constant 0 : index
    %c0_44 = arith.constant 0 : index
    %62 = vector.load %arg6[%c2_42, %c0_43, %c0_44] : memref<6x32x64xf32, #tpu.memory_space<vmem>>, vector<1x32x64xf32>
    %63 = vector.shape_cast %62 : vector<1x32x64xf32> to vector<32x64xf32>
    %c1_45 = arith.constant 1 : index
    %c0_46 = arith.constant 0 : index
    %c0_47 = arith.constant 0 : index
    %64 = vector.load %arg7[%c1_45, %c0_46, %c0_47] : memref<3x64x32xf32, #tpu.memory_space<vmem>>, vector<1x64x32xf32>
    %65 = vector.shape_cast %64 : vector<1x64x32xf32> to vector<64x32xf32>
    %c7 = arith.constant 7 : index
    %c0_48 = arith.constant 0 : index
    %c0_49 = arith.constant 0 : index
    %66 = vector.load %arg5[%c7, %c0_48, %c0_49] : memref<17x32x32xf32, #tpu.memory_space<vmem>>, vector<1x32x32xf32>
    %67 = vector.shape_cast %66 : vector<1x32x32xf32> to vector<32x32xf32>
    %c8 = arith.constant 8 : index
    %c0_50 = arith.constant 0 : index
    %c0_51 = arith.constant 0 : index
    %68 = vector.load %arg5[%c8, %c0_50, %c0_51] : memref<17x32x32xf32, #tpu.memory_space<vmem>>, vector<1x32x32xf32>
    %69 = vector.shape_cast %68 : vector<1x32x32xf32> to vector<32x32xf32>
    %c9 = arith.constant 9 : index
    %c0_52 = arith.constant 0 : index
    %c0_53 = arith.constant 0 : index
    %70 = vector.load %arg5[%c9, %c0_52, %c0_53] : memref<17x32x32xf32, #tpu.memory_space<vmem>>, vector<1x32x32xf32>
    %71 = vector.shape_cast %70 : vector<1x32x32xf32> to vector<32x32xf32>
    %c10 = arith.constant 10 : index
    %c0_54 = arith.constant 0 : index
    %c0_55 = arith.constant 0 : index
    %72 = vector.load %arg5[%c10, %c0_54, %c0_55] : memref<17x32x32xf32, #tpu.memory_space<vmem>>, vector<1x32x32xf32>
    %73 = vector.shape_cast %72 : vector<1x32x32xf32> to vector<32x32xf32>
    %c11 = arith.constant 11 : index
    %c0_56 = arith.constant 0 : index
    %c0_57 = arith.constant 0 : index
    %74 = vector.load %arg5[%c11, %c0_56, %c0_57] : memref<17x32x32xf32, #tpu.memory_space<vmem>>, vector<1x32x32xf32>
    %75 = vector.shape_cast %74 : vector<1x32x32xf32> to vector<32x32xf32>
    %c0_58 = arith.constant 0 : index
    %c0_59 = arith.constant 0 : index
    %c0_60 = arith.constant 0 : index
    %76 = vector.load %arg8[%c0_58, %c0_59, %c0_60] : memref<2x8x64xf32, #tpu.memory_space<vmem>>, vector<1x8x64xf32>
    %77 = vector.shape_cast %76 : vector<1x8x64xf32> to vector<8x64xf32>
    %78 = vector.extract_strided_slice %77 {offsets = [0, 0], sizes = [1, 32], strides = [1, 1]} : vector<8x64xf32> to vector<1x32xf32>
    %79 = vector.extract_strided_slice %77 {offsets = [1, 0], sizes = [1, 32], strides = [1, 1]} : vector<8x64xf32> to vector<1x32xf32>
    %80 = vector.extract_strided_slice %77 {offsets = [2, 0], sizes = [1, 32], strides = [1, 1]} : vector<8x64xf32> to vector<1x32xf32>
    %81 = vector.extract_strided_slice %77 {offsets = [3, 0], sizes = [1, 32], strides = [1, 1]} : vector<8x64xf32> to vector<1x32xf32>
    %82 = vector.extract_strided_slice %77 {offsets = [4, 0], sizes = [1, 32], strides = [1, 1]} : vector<8x64xf32> to vector<1x32xf32>
    %83 = vector.extract_strided_slice %77 {offsets = [5, 0], sizes = [1, 32], strides = [1, 1]} : vector<8x64xf32> to vector<1x32xf32>
    %84 = vector.extract_strided_slice %77 {offsets = [6, 0], sizes = [1, 64], strides = [1, 1]} : vector<8x64xf32> to vector<1x64xf32>
    %85 = vector.extract_strided_slice %77 {offsets = [7, 0], sizes = [1, 32], strides = [1, 1]} : vector<8x64xf32> to vector<1x32xf32>
    %cst_61 = arith.constant dense<0.000000e+00> : vector<16x64xf32>
    %86 = tpu.matmul %7, %9, %cst_61 {dimension_numbers = #tpu.dot_dimension_numbers<[1], [0], [0], [1], [0, 0, 1, 1], [], []>} : vector<16x4xf32>, vector<4x64xf32>, vector<16x64xf32> -> vector<16x64xf32>
    %87 = vector.broadcast %10 : vector<1x64xf32> to vector<16x64xf32>
    %88 = arith.mulf %86, %87 : vector<16x64xf32>
    %89 = math.sin %88 : vector<16x64xf32>
    %90 = vector.broadcast %11 : vector<1x64xf32> to vector<16x64xf32>
    %91 = arith.mulf %90, %89 : vector<16x64xf32>
    %92 = math.cos %88 : vector<16x64xf32>
    %93 = vector.broadcast %13 : vector<1x64xf32> to vector<16x64xf32>
    %94 = arith.mulf %93, %92 : vector<16x64xf32>
    %95 = arith.addf %91, %94 : vector<16x64xf32>
    %cst_62 = arith.constant dense<0.000000e+00> : vector<16x32xf32>
    %96 = tpu.matmul %95, %45, %cst_62 {dimension_numbers = #tpu.dot_dimension_numbers<[1], [0], [0], [1], [0, 0, 1, 1], [], []>} : vector<16x64xf32>, vector<64x32xf32>, vector<16x32xf32> -> vector<16x32xf32>
    %97 = vector.broadcast %23 : vector<1x32xf32> to vector<16x32xf32>
    %98 = arith.addf %96, %97 : vector<16x32xf32>
    %cst_63 = arith.constant 0.000000e+00 : f32
    %99 = vector.broadcast %cst_63 : f32 to vector<16x32xf32>
    %100 = arith.maximumf %98, %99 : vector<16x32xf32>
    %cst_64 = arith.constant dense<0.000000e+00> : vector<16x32xf32>
    %101 = tpu.matmul %100, %35, %cst_64 {dimension_numbers = #tpu.dot_dimension_numbers<[1], [0], [0], [1], [0, 0, 1, 1], [], []>} : vector<16x32xf32>, vector<32x32xf32>, vector<16x32xf32> -> vector<16x32xf32>
    %102 = vector.broadcast %24 : vector<1x32xf32> to vector<16x32xf32>
    %103 = arith.addf %101, %102 : vector<16x32xf32>
    %cst_65 = arith.constant dense<0.000000e+00> : vector<16x64xf32>
    %104 = tpu.matmul %1, %61, %cst_65 {dimension_numbers = #tpu.dot_dimension_numbers<[1], [0], [0], [1], [0, 0, 1, 1], [], []>} : vector<16x32xf32>, vector<32x64xf32>, vector<16x64xf32> -> vector<16x64xf32>
    %105 = vector.extract_strided_slice %104 {offsets = [0, 0], sizes = [16, 32], strides = [1, 1]} : vector<16x64xf32> to vector<16x32xf32>
    %106 = vector.extract_strided_slice %104 {offsets = [0, 32], sizes = [16, 32], strides = [1, 1]} : vector<16x64xf32> to vector<16x32xf32>
    %107 = vector.broadcast %25 : vector<1x32xf32> to vector<16x32xf32>
    %108 = arith.addf %106, %107 : vector<16x32xf32>
    %cst_66 = arith.constant 0.000000e+00 : f32
    %109 = vector.broadcast %cst_66 : f32 to vector<16x32xf32>
    %110 = arith.maximumf %108, %109 : vector<16x32xf32>
    %cst_67 = arith.constant dense<0.000000e+00> : vector<16x32xf32>
    %111 = tpu.matmul %110, %41, %cst_67 {dimension_numbers = #tpu.dot_dimension_numbers<[1], [0], [0], [1], [0, 0, 1, 1], [], []>} : vector<16x32xf32>, vector<32x32xf32>, vector<16x32xf32> -> vector<16x32xf32>
    %112 = vector.broadcast %26 : vector<1x32xf32> to vector<16x32xf32>
    %113 = arith.addf %111, %112 : vector<16x32xf32>
    %114 = arith.negf %113 : vector<16x32xf32>
    %115 = math.exp %114 : vector<16x32xf32>
    %cst_68 = arith.constant 1.000000e+00 : f32
    %116 = vector.broadcast %cst_68 : f32 to vector<16x32xf32>
    %117 = arith.addf %116, %115 : vector<16x32xf32>
    %118 = arith.divf %116, %117 : vector<16x32xf32>
    %119 = vector.extract_strided_slice %118 {offsets = [0, 1], sizes = [16, 1], strides = [1, 1]} : vector<16x32xf32> to vector<16x1xf32>
    %120 = vector.extract_strided_slice %7 {offsets = [0, 3], sizes = [16, 1], strides = [1, 1]} : vector<16x4xf32> to vector<16x1xf32>
    %121 = arith.divf %119, %120 : vector<16x1xf32>
    %122 = vector.extract_strided_slice %118 {offsets = [0, 0], sizes = [16, 1], strides = [1, 1]} : vector<16x32xf32> to vector<16x1xf32>
    %123 = vector.extract_strided_slice %7 {offsets = [0, 2], sizes = [16, 1], strides = [1, 1]} : vector<16x4xf32> to vector<16x1xf32>
    %124 = arith.divf %122, %123 : vector<16x1xf32>
    %125 = vector.extract_strided_slice %95 {offsets = [0, 0], sizes = [16, 32], strides = [1, 1]} : vector<16x64xf32> to vector<16x32xf32>
    %126 = arith.mulf %125, %57 : vector<16x32xf32>
    %127 = vector.broadcast %14 : vector<1x32xf32> to vector<16x32xf32>
    %128 = vector.broadcast %121 : vector<16x1xf32> to vector<16x32xf32>
    %129 = arith.mulf %127, %128 : vector<16x32xf32>
    %130 = vector.broadcast %16 : vector<1x32xf32> to vector<16x32xf32>
    %131 = vector.broadcast %124 : vector<16x1xf32> to vector<16x32xf32>
    %132 = arith.mulf %130, %131 : vector<16x32xf32>
    %133 = arith.addf %129, %132 : vector<16x32xf32>
    %134 = arith.mulf %126, %133 : vector<16x32xf32>
    %135 = arith.addf %1, %103 : vector<16x32xf32>
    %cst_69 = arith.constant dense<0.000000e+00> : vector<16x64xf32>
    %136 = tpu.matmul %135, %59, %cst_69 {dimension_numbers = #tpu.dot_dimension_numbers<[1], [0], [0], [1], [0, 0, 1, 1], [], []>} : vector<16x32xf32>, vector<32x64xf32>, vector<16x64xf32> -> vector<16x64xf32>
    %137 = vector.extract_strided_slice %136 {offsets = [0, 0], sizes = [16, 32], strides = [1, 1]} : vector<16x64xf32> to vector<16x32xf32>
    %138 = vector.extract_strided_slice %136 {offsets = [0, 32], sizes = [16, 32], strides = [1, 1]} : vector<16x64xf32> to vector<16x32xf32>
    %cst_70 = arith.constant dense<0.000000e+00> : vector<16x16xf32>
    %139 = tpu.matmul %137, %138, %cst_70 {dimension_numbers = #tpu.dot_dimension_numbers<[1], [1], [0], [0], [0, 0, 1, 0], [], []>} : vector<16x32xf32>, vector<16x32xf32>, vector<16x16xf32> -> vector<16x16xf32>
    %140 = arith.addf %139, %18 : vector<16x16xf32>
    %cst_71 = arith.constant dense<0xFF800000> : vector<16xf32>
    %141 = vector.multi_reduction <maximumf>, %140, %cst_71 [1] : vector<16x16xf32> to vector<16xf32>
    %142 = vector.shape_cast %141 : vector<16xf32> to vector<16x1xf32>
    %143 = vector.broadcast %142 : vector<16x1xf32> to vector<16x16xf32>
    %144 = arith.subf %140, %143 : vector<16x16xf32>
    %145 = math.exp %144 : vector<16x16xf32>
    %cst_72 = arith.constant dense<0.000000e+00> : vector<16xf32>
    %146 = vector.multi_reduction <add>, %145, %cst_72 [1] : vector<16x16xf32> to vector<16xf32>
    %147 = vector.shape_cast %146 : vector<16xf32> to vector<16x1xf32>
    %148 = tpu.reciprocal %147 {approx = true} : vector<16x1xf32> -> vector<16x1xf32>
    %149 = vector.broadcast %148 : vector<16x1xf32> to vector<16x16xf32>
    %150 = arith.mulf %145, %149 : vector<16x16xf32>
    %cst_73 = arith.constant dense<0.000000e+00> : vector<16x32xf32>
    %151 = tpu.matmul %150, %105, %cst_73 {dimension_numbers = #tpu.dot_dimension_numbers<[1], [0], [0], [1], [0, 0, 1, 1], [], []>} : vector<16x16xf32>, vector<16x32xf32>, vector<16x32xf32> -> vector<16x32xf32>
    %cst_74 = arith.constant dense<0.000000e+00> : vector<16x32xf32>
    %152 = tpu.matmul %151, %67, %cst_74 {dimension_numbers = #tpu.dot_dimension_numbers<[1], [0], [0], [1], [0, 0, 1, 1], [], []>} : vector<16x32xf32>, vector<32x32xf32>, vector<16x32xf32> -> vector<16x32xf32>
    %153 = arith.addf %1, %152 : vector<16x32xf32>
    %cst_75 = arith.constant dense<0.000000e+00> : vector<16xf32>
    %154 = vector.multi_reduction <add>, %153, %cst_75 [1] : vector<16x32xf32> to vector<16xf32>
    %155 = vector.shape_cast %154 : vector<16xf32> to vector<16x1xf32>
    %cst_76 = arith.constant 3.200000e+01 : f32
    %156 = vector.broadcast %cst_76 : f32 to vector<16x1xf32>
    %157 = arith.divf %155, %156 : vector<16x1xf32>
    %158 = vector.broadcast %157 : vector<16x1xf32> to vector<16x32xf32>
    %159 = arith.subf %153, %158 : vector<16x32xf32>
    %160 = arith.mulf %159, %159 : vector<16x32xf32>
    %cst_77 = arith.constant dense<0.000000e+00> : vector<16xf32>
    %161 = vector.multi_reduction <add>, %160, %cst_77 [1] : vector<16x32xf32> to vector<16xf32>
    %162 = vector.shape_cast %161 : vector<16xf32> to vector<16x1xf32>
    %cst_78 = arith.constant 3.200000e+01 : f32
    %163 = vector.broadcast %cst_78 : f32 to vector<16x1xf32>
    %164 = arith.divf %162, %163 : vector<16x1xf32>
    %cst_79 = arith.constant 9.99999974E-6 : f32
    %165 = vector.broadcast %cst_79 : f32 to vector<16x1xf32>
    %166 = arith.addf %164, %165 : vector<16x1xf32>
    %167 = math.rsqrt %166 : vector<16x1xf32>
    %168 = vector.broadcast %167 : vector<16x1xf32> to vector<16x32xf32>
    %169 = arith.mulf %159, %168 : vector<16x32xf32>
    %170 = vector.broadcast %78 : vector<1x32xf32> to vector<16x32xf32>
    %171 = arith.mulf %169, %170 : vector<16x32xf32>
    %172 = vector.broadcast %79 : vector<1x32xf32> to vector<16x32xf32>
    %173 = arith.addf %171, %172 : vector<16x32xf32>
    %cst_80 = arith.constant dense<0.000000e+00> : vector<32x32xf32>
    %174 = tpu.matmul %47, %71, %cst_80 {dimension_numbers = #tpu.dot_dimension_numbers<[1], [0], [0], [1], [0, 0, 1, 1], [], []>} : vector<32x32xf32>, vector<32x32xf32>, vector<32x32xf32> -> vector<32x32xf32>
    %cst_81 = arith.constant dense<0.000000e+00> : vector<32x32xf32>
    %175 = tpu.matmul %49, %73, %cst_81 {dimension_numbers = #tpu.dot_dimension_numbers<[1], [0], [0], [1], [0, 0, 1, 1], [], []>} : vector<32x32xf32>, vector<32x32xf32>, vector<32x32xf32> -> vector<32x32xf32>
    %176 = arith.addf %173, %103 : vector<16x32xf32>
    %177 = arith.addf %176, %134 : vector<16x32xf32>
    %cst_82 = arith.constant dense<0.000000e+00> : vector<16x32xf32>
    %178 = tpu.matmul %177, %69, %cst_82 {dimension_numbers = #tpu.dot_dimension_numbers<[1], [0], [0], [1], [0, 0, 1, 1], [], []>} : vector<16x32xf32>, vector<32x32xf32>, vector<16x32xf32> -> vector<16x32xf32>
    %cst_83 = arith.constant dense<0.000000e+00> : vector<16x32xf32>
    %179 = tpu.matmul %178, %174, %cst_83 {dimension_numbers = #tpu.dot_dimension_numbers<[1], [1], [0], [0], [0, 0, 1, 0], [], []>} : vector<16x32xf32>, vector<32x32xf32>, vector<16x32xf32> -> vector<16x32xf32>
    %180 = arith.addf %179, %19 : vector<16x32xf32>
    %cst_84 = arith.constant dense<0xFF800000> : vector<16xf32>
    %181 = vector.multi_reduction <maximumf>, %180, %cst_84 [1] : vector<16x32xf32> to vector<16xf32>
    %182 = vector.shape_cast %181 : vector<16xf32> to vector<16x1xf32>
    %183 = vector.broadcast %182 : vector<16x1xf32> to vector<16x32xf32>
    %184 = arith.subf %180, %183 : vector<16x32xf32>
    %185 = math.exp %184 : vector<16x32xf32>
    %cst_85 = arith.constant dense<0.000000e+00> : vector<16xf32>
    %186 = vector.multi_reduction <add>, %185, %cst_85 [1] : vector<16x32xf32> to vector<16xf32>
    %187 = vector.shape_cast %186 : vector<16xf32> to vector<16x1xf32>
    %188 = tpu.reciprocal %187 {approx = true} : vector<16x1xf32> -> vector<16x1xf32>
    %189 = vector.broadcast %188 : vector<16x1xf32> to vector<16x32xf32>
    %190 = arith.mulf %185, %189 : vector<16x32xf32>
    %cst_86 = arith.constant dense<0.000000e+00> : vector<16x32xf32>
    %191 = tpu.matmul %190, %175, %cst_86 {dimension_numbers = #tpu.dot_dimension_numbers<[1], [0], [0], [1], [0, 0, 1, 1], [], []>} : vector<16x32xf32>, vector<32x32xf32>, vector<16x32xf32> -> vector<16x32xf32>
    %cst_87 = arith.constant dense<0.000000e+00> : vector<16x32xf32>
    %192 = tpu.matmul %191, %75, %cst_87 {dimension_numbers = #tpu.dot_dimension_numbers<[1], [0], [0], [1], [0, 0, 1, 1], [], []>} : vector<16x32xf32>, vector<32x32xf32>, vector<16x32xf32> -> vector<16x32xf32>
    %193 = arith.addf %173, %192 : vector<16x32xf32>
    %cst_88 = arith.constant dense<0.000000e+00> : vector<16xf32>
    %194 = vector.multi_reduction <add>, %193, %cst_88 [1] : vector<16x32xf32> to vector<16xf32>
    %195 = vector.shape_cast %194 : vector<16xf32> to vector<16x1xf32>
    %cst_89 = arith.constant 3.200000e+01 : f32
    %196 = vector.broadcast %cst_89 : f32 to vector<16x1xf32>
    %197 = arith.divf %195, %196 : vector<16x1xf32>
    %198 = vector.broadcast %197 : vector<16x1xf32> to vector<16x32xf32>
    %199 = arith.subf %193, %198 : vector<16x32xf32>
    %200 = arith.mulf %199, %199 : vector<16x32xf32>
    %cst_90 = arith.constant dense<0.000000e+00> : vector<16xf32>
    %201 = vector.multi_reduction <add>, %200, %cst_90 [1] : vector<16x32xf32> to vector<16xf32>
    %202 = vector.shape_cast %201 : vector<16xf32> to vector<16x1xf32>
    %cst_91 = arith.constant 3.200000e+01 : f32
    %203 = vector.broadcast %cst_91 : f32 to vector<16x1xf32>
    %204 = arith.divf %202, %203 : vector<16x1xf32>
    %cst_92 = arith.constant 9.99999974E-6 : f32
    %205 = vector.broadcast %cst_92 : f32 to vector<16x1xf32>
    %206 = arith.addf %204, %205 : vector<16x1xf32>
    %207 = math.rsqrt %206 : vector<16x1xf32>
    %208 = vector.broadcast %207 : vector<16x1xf32> to vector<16x32xf32>
    %209 = arith.mulf %199, %208 : vector<16x32xf32>
    %210 = vector.broadcast %80 : vector<1x32xf32> to vector<16x32xf32>
    %211 = arith.mulf %209, %210 : vector<16x32xf32>
    %212 = vector.broadcast %81 : vector<1x32xf32> to vector<16x32xf32>
    %213 = arith.addf %211, %212 : vector<16x32xf32>
    %cst_93 = arith.constant dense<0.000000e+00> : vector<16x64xf32>
    %214 = tpu.matmul %213, %63, %cst_93 {dimension_numbers = #tpu.dot_dimension_numbers<[1], [0], [0], [1], [0, 0, 1, 1], [], []>} : vector<16x32xf32>, vector<32x64xf32>, vector<16x64xf32> -> vector<16x64xf32>
    %215 = vector.broadcast %84 : vector<1x64xf32> to vector<16x64xf32>
    %216 = arith.addf %214, %215 : vector<16x64xf32>
    %cst_94 = arith.constant 0.000000e+00 : f32
    %217 = vector.broadcast %cst_94 : f32 to vector<16x64xf32>
    %218 = arith.maximumf %216, %217 : vector<16x64xf32>
    %cst_95 = arith.constant dense<0.000000e+00> : vector<16x32xf32>
    %219 = tpu.matmul %218, %65, %cst_95 {dimension_numbers = #tpu.dot_dimension_numbers<[1], [0], [0], [1], [0, 0, 1, 1], [], []>} : vector<16x64xf32>, vector<64x32xf32>, vector<16x32xf32> -> vector<16x32xf32>
    %220 = arith.addf %213, %219 : vector<16x32xf32>
    %221 = vector.broadcast %85 : vector<1x32xf32> to vector<16x32xf32>
    %222 = arith.addf %220, %221 : vector<16x32xf32>
    %cst_96 = arith.constant dense<0.000000e+00> : vector<16xf32>
    %223 = vector.multi_reduction <add>, %222, %cst_96 [1] : vector<16x32xf32> to vector<16xf32>
    %224 = vector.shape_cast %223 : vector<16xf32> to vector<16x1xf32>
    %cst_97 = arith.constant 3.200000e+01 : f32
    %225 = vector.broadcast %cst_97 : f32 to vector<16x1xf32>
    %226 = arith.divf %224, %225 : vector<16x1xf32>
    %227 = vector.broadcast %226 : vector<16x1xf32> to vector<16x32xf32>
    %228 = arith.subf %222, %227 : vector<16x32xf32>
    %229 = arith.mulf %228, %228 : vector<16x32xf32>
    %cst_98 = arith.constant dense<0.000000e+00> : vector<16xf32>
    %230 = vector.multi_reduction <add>, %229, %cst_98 [1] : vector<16x32xf32> to vector<16xf32>
    %231 = vector.shape_cast %230 : vector<16xf32> to vector<16x1xf32>
    %cst_99 = arith.constant 3.200000e+01 : f32
    %232 = vector.broadcast %cst_99 : f32 to vector<16x1xf32>
    %233 = arith.divf %231, %232 : vector<16x1xf32>
    %cst_100 = arith.constant 9.99999974E-6 : f32
    %234 = vector.broadcast %cst_100 : f32 to vector<16x1xf32>
    %235 = arith.addf %233, %234 : vector<16x1xf32>
    %236 = math.rsqrt %235 : vector<16x1xf32>
    %237 = vector.broadcast %236 : vector<16x1xf32> to vector<16x32xf32>
    %238 = arith.mulf %228, %237 : vector<16x32xf32>
    %239 = vector.broadcast %82 : vector<1x32xf32> to vector<16x32xf32>
    %240 = arith.mulf %238, %239 : vector<16x32xf32>
    %241 = vector.broadcast %83 : vector<1x32xf32> to vector<16x32xf32>
    %242 = arith.addf %240, %241 : vector<16x32xf32>
    %cst_101 = arith.constant dense<0.000000e+00> : vector<16x32xf32>
    %243 = tpu.matmul %242, %37, %cst_101 {dimension_numbers = #tpu.dot_dimension_numbers<[1], [0], [0], [1], [0, 0, 1, 1], [], []>} : vector<16x32xf32>, vector<32x32xf32>, vector<16x32xf32> -> vector<16x32xf32>
    %244 = vector.broadcast %27 : vector<1x32xf32> to vector<16x32xf32>
    %245 = arith.addf %243, %244 : vector<16x32xf32>
    %cst_102 = arith.constant 0.000000e+00 : f32
    %246 = vector.broadcast %cst_102 : f32 to vector<16x32xf32>
    %247 = arith.maximumf %245, %246 : vector<16x32xf32>
    %cst_103 = arith.constant dense<0.000000e+00> : vector<16x32xf32>
    %248 = tpu.matmul %247, %39, %cst_103 {dimension_numbers = #tpu.dot_dimension_numbers<[1], [0], [0], [1], [0, 0, 1, 1], [], []>} : vector<16x32xf32>, vector<32x32xf32>, vector<16x32xf32> -> vector<16x32xf32>
    %249 = vector.broadcast %28 : vector<1x32xf32> to vector<16x32xf32>
    %250 = arith.addf %248, %249 : vector<16x32xf32>
    %cst_104 = arith.constant 0.000000e+00 : f32
    %251 = vector.broadcast %cst_104 : f32 to vector<16x32xf32>
    %252 = arith.maximumf %250, %251 : vector<16x32xf32>
    %cst_105 = arith.constant dense<0.000000e+00> : vector<16x32xf32>
    %253 = tpu.matmul %252, %43, %cst_105 {dimension_numbers = #tpu.dot_dimension_numbers<[1], [0], [0], [1], [0, 0, 1, 1], [], []>} : vector<16x32xf32>, vector<32x32xf32>, vector<16x32xf32> -> vector<16x32xf32>
    %254 = vector.broadcast %29 : vector<1x32xf32> to vector<16x32xf32>
    %255 = arith.addf %253, %254 : vector<16x32xf32>
    %256 = vector.extract_strided_slice %255 {offsets = [0, 0], sizes = [16, 4], strides = [1, 1]} : vector<16x32xf32> to vector<16x4xf32>
    %cst_106 = arith.constant 0.000000e+00 : f32
    %cst_107 = arith.constant 1.000000e+00 : f32
    %257 = vector.broadcast %cst_106 : f32 to vector<16x4xf32>
    %258 = arith.maximumf %257, %7 : vector<16x4xf32>
    %259 = vector.broadcast %cst_107 : f32 to vector<16x4xf32>
    %260 = arith.minimumf %259, %258 : vector<16x4xf32>
    %cst_108 = arith.constant 1.000000e-03 : f32
    %261 = vector.broadcast %cst_108 : f32 to vector<16x4xf32>
    %262 = arith.maximumf %260, %261 : vector<16x4xf32>
    %cst_109 = arith.constant 1.000000e+00 : f32
    %263 = vector.broadcast %cst_109 : f32 to vector<16x4xf32>
    %264 = arith.subf %263, %260 : vector<16x4xf32>
    %cst_110 = arith.constant 1.000000e-03 : f32
    %265 = vector.broadcast %cst_110 : f32 to vector<16x4xf32>
    %266 = arith.maximumf %264, %265 : vector<16x4xf32>
    %267 = arith.divf %262, %266 : vector<16x4xf32>
    %268 = math.log %267 : vector<16x4xf32>
    %269 = arith.addf %256, %268 : vector<16x4xf32>
    %270 = arith.negf %269 : vector<16x4xf32>
    %271 = math.exp %270 : vector<16x4xf32>
    %cst_111 = arith.constant 1.000000e+00 : f32
    %272 = vector.broadcast %cst_111 : f32 to vector<16x4xf32>
    %273 = arith.addf %272, %271 : vector<16x4xf32>
    %274 = arith.divf %272, %273 : vector<16x4xf32>
    %c3_112 = arith.constant 3 : index
    %c0_113 = arith.constant 0 : index
    %c0_114 = arith.constant 0 : index
    %275 = vector.load %arg6[%c3_112, %c0_113, %c0_114] : memref<6x32x64xf32, #tpu.memory_space<vmem>>, vector<1x32x64xf32>
    %276 = vector.shape_cast %275 : vector<1x32x64xf32> to vector<32x64xf32>
    %c4_115 = arith.constant 4 : index
    %c0_116 = arith.constant 0 : index
    %c0_117 = arith.constant 0 : index
    %277 = vector.load %arg6[%c4_115, %c0_116, %c0_117] : memref<6x32x64xf32, #tpu.memory_space<vmem>>, vector<1x32x64xf32>
    %278 = vector.shape_cast %277 : vector<1x32x64xf32> to vector<32x64xf32>
    %c5_118 = arith.constant 5 : index
    %c0_119 = arith.constant 0 : index
    %c0_120 = arith.constant 0 : index
    %279 = vector.load %arg6[%c5_118, %c0_119, %c0_120] : memref<6x32x64xf32, #tpu.memory_space<vmem>>, vector<1x32x64xf32>
    %280 = vector.shape_cast %279 : vector<1x32x64xf32> to vector<32x64xf32>
    %c2_121 = arith.constant 2 : index
    %c0_122 = arith.constant 0 : index
    %c0_123 = arith.constant 0 : index
    %281 = vector.load %arg7[%c2_121, %c0_122, %c0_123] : memref<3x64x32xf32, #tpu.memory_space<vmem>>, vector<1x64x32xf32>
    %282 = vector.shape_cast %281 : vector<1x64x32xf32> to vector<64x32xf32>
    %c12 = arith.constant 12 : index
    %c0_124 = arith.constant 0 : index
    %c0_125 = arith.constant 0 : index
    %283 = vector.load %arg5[%c12, %c0_124, %c0_125] : memref<17x32x32xf32, #tpu.memory_space<vmem>>, vector<1x32x32xf32>
    %284 = vector.shape_cast %283 : vector<1x32x32xf32> to vector<32x32xf32>
    %c13 = arith.constant 13 : index
    %c0_126 = arith.constant 0 : index
    %c0_127 = arith.constant 0 : index
    %285 = vector.load %arg5[%c13, %c0_126, %c0_127] : memref<17x32x32xf32, #tpu.memory_space<vmem>>, vector<1x32x32xf32>
    %286 = vector.shape_cast %285 : vector<1x32x32xf32> to vector<32x32xf32>
    %c14 = arith.constant 14 : index
    %c0_128 = arith.constant 0 : index
    %c0_129 = arith.constant 0 : index
    %287 = vector.load %arg5[%c14, %c0_128, %c0_129] : memref<17x32x32xf32, #tpu.memory_space<vmem>>, vector<1x32x32xf32>
    %288 = vector.shape_cast %287 : vector<1x32x32xf32> to vector<32x32xf32>
    %c15 = arith.constant 15 : index
    %c0_130 = arith.constant 0 : index
    %c0_131 = arith.constant 0 : index
    %289 = vector.load %arg5[%c15, %c0_130, %c0_131] : memref<17x32x32xf32, #tpu.memory_space<vmem>>, vector<1x32x32xf32>
    %290 = vector.shape_cast %289 : vector<1x32x32xf32> to vector<32x32xf32>
    %c16 = arith.constant 16 : index
    %c0_132 = arith.constant 0 : index
    %c0_133 = arith.constant 0 : index
    %291 = vector.load %arg5[%c16, %c0_132, %c0_133] : memref<17x32x32xf32, #tpu.memory_space<vmem>>, vector<1x32x32xf32>
    %292 = vector.shape_cast %291 : vector<1x32x32xf32> to vector<32x32xf32>
    %c1_134 = arith.constant 1 : index
    %c0_135 = arith.constant 0 : index
    %c0_136 = arith.constant 0 : index
    %293 = vector.load %arg8[%c1_134, %c0_135, %c0_136] : memref<2x8x64xf32, #tpu.memory_space<vmem>>, vector<1x8x64xf32>
    %294 = vector.shape_cast %293 : vector<1x8x64xf32> to vector<8x64xf32>
    %295 = vector.extract_strided_slice %294 {offsets = [0, 0], sizes = [1, 32], strides = [1, 1]} : vector<8x64xf32> to vector<1x32xf32>
    %296 = vector.extract_strided_slice %294 {offsets = [1, 0], sizes = [1, 32], strides = [1, 1]} : vector<8x64xf32> to vector<1x32xf32>
    %297 = vector.extract_strided_slice %294 {offsets = [2, 0], sizes = [1, 32], strides = [1, 1]} : vector<8x64xf32> to vector<1x32xf32>
    %298 = vector.extract_strided_slice %294 {offsets = [3, 0], sizes = [1, 32], strides = [1, 1]} : vector<8x64xf32> to vector<1x32xf32>
    %299 = vector.extract_strided_slice %294 {offsets = [4, 0], sizes = [1, 32], strides = [1, 1]} : vector<8x64xf32> to vector<1x32xf32>
    %300 = vector.extract_strided_slice %294 {offsets = [5, 0], sizes = [1, 32], strides = [1, 1]} : vector<8x64xf32> to vector<1x32xf32>
    %301 = vector.extract_strided_slice %294 {offsets = [6, 0], sizes = [1, 64], strides = [1, 1]} : vector<8x64xf32> to vector<1x64xf32>
    %302 = vector.extract_strided_slice %294 {offsets = [7, 0], sizes = [1, 32], strides = [1, 1]} : vector<8x64xf32> to vector<1x32xf32>
    %cst_137 = arith.constant dense<0.000000e+00> : vector<16x64xf32>
    %303 = tpu.matmul %274, %9, %cst_137 {dimension_numbers = #tpu.dot_dimension_numbers<[1], [0], [0], [1], [0, 0, 1, 1], [], []>} : vector<16x4xf32>, vector<4x64xf32>, vector<16x64xf32> -> vector<16x64xf32>
    %304 = vector.broadcast %10 : vector<1x64xf32> to vector<16x64xf32>
    %305 = arith.mulf %303, %304 : vector<16x64xf32>
    %306 = math.sin %305 : vector<16x64xf32>
    %307 = vector.broadcast %11 : vector<1x64xf32> to vector<16x64xf32>
    %308 = arith.mulf %307, %306 : vector<16x64xf32>
    %309 = math.cos %305 : vector<16x64xf32>
    %310 = vector.broadcast %13 : vector<1x64xf32> to vector<16x64xf32>
    %311 = arith.mulf %310, %309 : vector<16x64xf32>
    %312 = arith.addf %308, %311 : vector<16x64xf32>
    %cst_138 = arith.constant dense<0.000000e+00> : vector<16x32xf32>
    %313 = tpu.matmul %312, %45, %cst_138 {dimension_numbers = #tpu.dot_dimension_numbers<[1], [0], [0], [1], [0, 0, 1, 1], [], []>} : vector<16x64xf32>, vector<64x32xf32>, vector<16x32xf32> -> vector<16x32xf32>
    %314 = vector.broadcast %23 : vector<1x32xf32> to vector<16x32xf32>
    %315 = arith.addf %313, %314 : vector<16x32xf32>
    %cst_139 = arith.constant 0.000000e+00 : f32
    %316 = vector.broadcast %cst_139 : f32 to vector<16x32xf32>
    %317 = arith.maximumf %315, %316 : vector<16x32xf32>
    %cst_140 = arith.constant dense<0.000000e+00> : vector<16x32xf32>
    %318 = tpu.matmul %317, %35, %cst_140 {dimension_numbers = #tpu.dot_dimension_numbers<[1], [0], [0], [1], [0, 0, 1, 1], [], []>} : vector<16x32xf32>, vector<32x32xf32>, vector<16x32xf32> -> vector<16x32xf32>
    %319 = vector.broadcast %24 : vector<1x32xf32> to vector<16x32xf32>
    %320 = arith.addf %318, %319 : vector<16x32xf32>
    %cst_141 = arith.constant dense<0.000000e+00> : vector<16x64xf32>
    %321 = tpu.matmul %242, %278, %cst_141 {dimension_numbers = #tpu.dot_dimension_numbers<[1], [0], [0], [1], [0, 0, 1, 1], [], []>} : vector<16x32xf32>, vector<32x64xf32>, vector<16x64xf32> -> vector<16x64xf32>
    %322 = vector.extract_strided_slice %321 {offsets = [0, 0], sizes = [16, 32], strides = [1, 1]} : vector<16x64xf32> to vector<16x32xf32>
    %323 = vector.extract_strided_slice %321 {offsets = [0, 32], sizes = [16, 32], strides = [1, 1]} : vector<16x64xf32> to vector<16x32xf32>
    %324 = vector.broadcast %25 : vector<1x32xf32> to vector<16x32xf32>
    %325 = arith.addf %323, %324 : vector<16x32xf32>
    %cst_142 = arith.constant 0.000000e+00 : f32
    %326 = vector.broadcast %cst_142 : f32 to vector<16x32xf32>
    %327 = arith.maximumf %325, %326 : vector<16x32xf32>
    %cst_143 = arith.constant dense<0.000000e+00> : vector<16x32xf32>
    %328 = tpu.matmul %327, %41, %cst_143 {dimension_numbers = #tpu.dot_dimension_numbers<[1], [0], [0], [1], [0, 0, 1, 1], [], []>} : vector<16x32xf32>, vector<32x32xf32>, vector<16x32xf32> -> vector<16x32xf32>
    %329 = vector.broadcast %26 : vector<1x32xf32> to vector<16x32xf32>
    %330 = arith.addf %328, %329 : vector<16x32xf32>
    %331 = arith.negf %330 : vector<16x32xf32>
    %332 = math.exp %331 : vector<16x32xf32>
    %cst_144 = arith.constant 1.000000e+00 : f32
    %333 = vector.broadcast %cst_144 : f32 to vector<16x32xf32>
    %334 = arith.addf %333, %332 : vector<16x32xf32>
    %335 = arith.divf %333, %334 : vector<16x32xf32>
    %336 = vector.extract_strided_slice %335 {offsets = [0, 1], sizes = [16, 1], strides = [1, 1]} : vector<16x32xf32> to vector<16x1xf32>
    %337 = vector.extract_strided_slice %274 {offsets = [0, 3], sizes = [16, 1], strides = [1, 1]} : vector<16x4xf32> to vector<16x1xf32>
    %338 = arith.divf %336, %337 : vector<16x1xf32>
    %339 = vector.extract_strided_slice %335 {offsets = [0, 0], sizes = [16, 1], strides = [1, 1]} : vector<16x32xf32> to vector<16x1xf32>
    %340 = vector.extract_strided_slice %274 {offsets = [0, 2], sizes = [16, 1], strides = [1, 1]} : vector<16x4xf32> to vector<16x1xf32>
    %341 = arith.divf %339, %340 : vector<16x1xf32>
    %342 = vector.extract_strided_slice %312 {offsets = [0, 0], sizes = [16, 32], strides = [1, 1]} : vector<16x64xf32> to vector<16x32xf32>
    %343 = arith.mulf %342, %57 : vector<16x32xf32>
    %344 = vector.broadcast %14 : vector<1x32xf32> to vector<16x32xf32>
    %345 = vector.broadcast %338 : vector<16x1xf32> to vector<16x32xf32>
    %346 = arith.mulf %344, %345 : vector<16x32xf32>
    %347 = vector.broadcast %16 : vector<1x32xf32> to vector<16x32xf32>
    %348 = vector.broadcast %341 : vector<16x1xf32> to vector<16x32xf32>
    %349 = arith.mulf %347, %348 : vector<16x32xf32>
    %350 = arith.addf %346, %349 : vector<16x32xf32>
    %351 = arith.mulf %343, %350 : vector<16x32xf32>
    %352 = arith.addf %242, %320 : vector<16x32xf32>
    %cst_145 = arith.constant dense<0.000000e+00> : vector<16x64xf32>
    %353 = tpu.matmul %352, %276, %cst_145 {dimension_numbers = #tpu.dot_dimension_numbers<[1], [0], [0], [1], [0, 0, 1, 1], [], []>} : vector<16x32xf32>, vector<32x64xf32>, vector<16x64xf32> -> vector<16x64xf32>
    %354 = vector.extract_strided_slice %353 {offsets = [0, 0], sizes = [16, 32], strides = [1, 1]} : vector<16x64xf32> to vector<16x32xf32>
    %355 = vector.extract_strided_slice %353 {offsets = [0, 32], sizes = [16, 32], strides = [1, 1]} : vector<16x64xf32> to vector<16x32xf32>
    %cst_146 = arith.constant dense<0.000000e+00> : vector<16x16xf32>
    %356 = tpu.matmul %354, %355, %cst_146 {dimension_numbers = #tpu.dot_dimension_numbers<[1], [1], [0], [0], [0, 0, 1, 0], [], []>} : vector<16x32xf32>, vector<16x32xf32>, vector<16x16xf32> -> vector<16x16xf32>
    %357 = arith.addf %356, %18 : vector<16x16xf32>
    %cst_147 = arith.constant dense<0xFF800000> : vector<16xf32>
    %358 = vector.multi_reduction <maximumf>, %357, %cst_147 [1] : vector<16x16xf32> to vector<16xf32>
    %359 = vector.shape_cast %358 : vector<16xf32> to vector<16x1xf32>
    %360 = vector.broadcast %359 : vector<16x1xf32> to vector<16x16xf32>
    %361 = arith.subf %357, %360 : vector<16x16xf32>
    %362 = math.exp %361 : vector<16x16xf32>
    %cst_148 = arith.constant dense<0.000000e+00> : vector<16xf32>
    %363 = vector.multi_reduction <add>, %362, %cst_148 [1] : vector<16x16xf32> to vector<16xf32>
    %364 = vector.shape_cast %363 : vector<16xf32> to vector<16x1xf32>
    %365 = tpu.reciprocal %364 {approx = true} : vector<16x1xf32> -> vector<16x1xf32>
    %366 = vector.broadcast %365 : vector<16x1xf32> to vector<16x16xf32>
    %367 = arith.mulf %362, %366 : vector<16x16xf32>
    %cst_149 = arith.constant dense<0.000000e+00> : vector<16x32xf32>
    %368 = tpu.matmul %367, %322, %cst_149 {dimension_numbers = #tpu.dot_dimension_numbers<[1], [0], [0], [1], [0, 0, 1, 1], [], []>} : vector<16x16xf32>, vector<16x32xf32>, vector<16x32xf32> -> vector<16x32xf32>
    %cst_150 = arith.constant dense<0.000000e+00> : vector<16x32xf32>
    %369 = tpu.matmul %368, %284, %cst_150 {dimension_numbers = #tpu.dot_dimension_numbers<[1], [0], [0], [1], [0, 0, 1, 1], [], []>} : vector<16x32xf32>, vector<32x32xf32>, vector<16x32xf32> -> vector<16x32xf32>
    %370 = arith.addf %242, %369 : vector<16x32xf32>
    %cst_151 = arith.constant dense<0.000000e+00> : vector<16xf32>
    %371 = vector.multi_reduction <add>, %370, %cst_151 [1] : vector<16x32xf32> to vector<16xf32>
    %372 = vector.shape_cast %371 : vector<16xf32> to vector<16x1xf32>
    %cst_152 = arith.constant 3.200000e+01 : f32
    %373 = vector.broadcast %cst_152 : f32 to vector<16x1xf32>
    %374 = arith.divf %372, %373 : vector<16x1xf32>
    %375 = vector.broadcast %374 : vector<16x1xf32> to vector<16x32xf32>
    %376 = arith.subf %370, %375 : vector<16x32xf32>
    %377 = arith.mulf %376, %376 : vector<16x32xf32>
    %cst_153 = arith.constant dense<0.000000e+00> : vector<16xf32>
    %378 = vector.multi_reduction <add>, %377, %cst_153 [1] : vector<16x32xf32> to vector<16xf32>
    %379 = vector.shape_cast %378 : vector<16xf32> to vector<16x1xf32>
    %cst_154 = arith.constant 3.200000e+01 : f32
    %380 = vector.broadcast %cst_154 : f32 to vector<16x1xf32>
    %381 = arith.divf %379, %380 : vector<16x1xf32>
    %cst_155 = arith.constant 9.99999974E-6 : f32
    %382 = vector.broadcast %cst_155 : f32 to vector<16x1xf32>
    %383 = arith.addf %381, %382 : vector<16x1xf32>
    %384 = math.rsqrt %383 : vector<16x1xf32>
    %385 = vector.broadcast %384 : vector<16x1xf32> to vector<16x32xf32>
    %386 = arith.mulf %376, %385 : vector<16x32xf32>
    %387 = vector.broadcast %295 : vector<1x32xf32> to vector<16x32xf32>
    %388 = arith.mulf %386, %387 : vector<16x32xf32>
    %389 = vector.broadcast %296 : vector<1x32xf32> to vector<16x32xf32>
    %390 = arith.addf %388, %389 : vector<16x32xf32>
    %cst_156 = arith.constant dense<0.000000e+00> : vector<32x32xf32>
    %391 = tpu.matmul %47, %288, %cst_156 {dimension_numbers = #tpu.dot_dimension_numbers<[1], [0], [0], [1], [0, 0, 1, 1], [], []>} : vector<32x32xf32>, vector<32x32xf32>, vector<32x32xf32> -> vector<32x32xf32>
    %cst_157 = arith.constant dense<0.000000e+00> : vector<32x32xf32>
    %392 = tpu.matmul %49, %290, %cst_157 {dimension_numbers = #tpu.dot_dimension_numbers<[1], [0], [0], [1], [0, 0, 1, 1], [], []>} : vector<32x32xf32>, vector<32x32xf32>, vector<32x32xf32> -> vector<32x32xf32>
    %393 = arith.addf %390, %320 : vector<16x32xf32>
    %394 = arith.addf %393, %351 : vector<16x32xf32>
    %cst_158 = arith.constant dense<0.000000e+00> : vector<16x32xf32>
    %395 = tpu.matmul %394, %286, %cst_158 {dimension_numbers = #tpu.dot_dimension_numbers<[1], [0], [0], [1], [0, 0, 1, 1], [], []>} : vector<16x32xf32>, vector<32x32xf32>, vector<16x32xf32> -> vector<16x32xf32>
    %cst_159 = arith.constant dense<0.000000e+00> : vector<16x32xf32>
    %396 = tpu.matmul %395, %391, %cst_159 {dimension_numbers = #tpu.dot_dimension_numbers<[1], [1], [0], [0], [0, 0, 1, 0], [], []>} : vector<16x32xf32>, vector<32x32xf32>, vector<16x32xf32> -> vector<16x32xf32>
    %397 = arith.addf %396, %19 : vector<16x32xf32>
    %cst_160 = arith.constant dense<0xFF800000> : vector<16xf32>
    %398 = vector.multi_reduction <maximumf>, %397, %cst_160 [1] : vector<16x32xf32> to vector<16xf32>
    %399 = vector.shape_cast %398 : vector<16xf32> to vector<16x1xf32>
    %400 = vector.broadcast %399 : vector<16x1xf32> to vector<16x32xf32>
    %401 = arith.subf %397, %400 : vector<16x32xf32>
    %402 = math.exp %401 : vector<16x32xf32>
    %cst_161 = arith.constant dense<0.000000e+00> : vector<16xf32>
    %403 = vector.multi_reduction <add>, %402, %cst_161 [1] : vector<16x32xf32> to vector<16xf32>
    %404 = vector.shape_cast %403 : vector<16xf32> to vector<16x1xf32>
    %405 = tpu.reciprocal %404 {approx = true} : vector<16x1xf32> -> vector<16x1xf32>
    %406 = vector.broadcast %405 : vector<16x1xf32> to vector<16x32xf32>
    %407 = arith.mulf %402, %406 : vector<16x32xf32>
    %cst_162 = arith.constant dense<0.000000e+00> : vector<16x32xf32>
    %408 = tpu.matmul %407, %392, %cst_162 {dimension_numbers = #tpu.dot_dimension_numbers<[1], [0], [0], [1], [0, 0, 1, 1], [], []>} : vector<16x32xf32>, vector<32x32xf32>, vector<16x32xf32> -> vector<16x32xf32>
    %cst_163 = arith.constant dense<0.000000e+00> : vector<16x32xf32>
    %409 = tpu.matmul %408, %292, %cst_163 {dimension_numbers = #tpu.dot_dimension_numbers<[1], [0], [0], [1], [0, 0, 1, 1], [], []>} : vector<16x32xf32>, vector<32x32xf32>, vector<16x32xf32> -> vector<16x32xf32>
    %410 = arith.addf %390, %409 : vector<16x32xf32>
    %cst_164 = arith.constant dense<0.000000e+00> : vector<16xf32>
    %411 = vector.multi_reduction <add>, %410, %cst_164 [1] : vector<16x32xf32> to vector<16xf32>
    %412 = vector.shape_cast %411 : vector<16xf32> to vector<16x1xf32>
    %cst_165 = arith.constant 3.200000e+01 : f32
    %413 = vector.broadcast %cst_165 : f32 to vector<16x1xf32>
    %414 = arith.divf %412, %413 : vector<16x1xf32>
    %415 = vector.broadcast %414 : vector<16x1xf32> to vector<16x32xf32>
    %416 = arith.subf %410, %415 : vector<16x32xf32>
    %417 = arith.mulf %416, %416 : vector<16x32xf32>
    %cst_166 = arith.constant dense<0.000000e+00> : vector<16xf32>
    %418 = vector.multi_reduction <add>, %417, %cst_166 [1] : vector<16x32xf32> to vector<16xf32>
    %419 = vector.shape_cast %418 : vector<16xf32> to vector<16x1xf32>
    %cst_167 = arith.constant 3.200000e+01 : f32
    %420 = vector.broadcast %cst_167 : f32 to vector<16x1xf32>
    %421 = arith.divf %419, %420 : vector<16x1xf32>
    %cst_168 = arith.constant 9.99999974E-6 : f32
    %422 = vector.broadcast %cst_168 : f32 to vector<16x1xf32>
    %423 = arith.addf %421, %422 : vector<16x1xf32>
    %424 = math.rsqrt %423 : vector<16x1xf32>
    %425 = vector.broadcast %424 : vector<16x1xf32> to vector<16x32xf32>
    %426 = arith.mulf %416, %425 : vector<16x32xf32>
    %427 = vector.broadcast %297 : vector<1x32xf32> to vector<16x32xf32>
    %428 = arith.mulf %426, %427 : vector<16x32xf32>
    %429 = vector.broadcast %298 : vector<1x32xf32> to vector<16x32xf32>
    %430 = arith.addf %428, %429 : vector<16x32xf32>
    %cst_169 = arith.constant dense<0.000000e+00> : vector<16x64xf32>
    %431 = tpu.matmul %430, %280, %cst_169 {dimension_numbers = #tpu.dot_dimension_numbers<[1], [0], [0], [1], [0, 0, 1, 1], [], []>} : vector<16x32xf32>, vector<32x64xf32>, vector<16x64xf32> -> vector<16x64xf32>
    %432 = vector.broadcast %301 : vector<1x64xf32> to vector<16x64xf32>
    %433 = arith.addf %431, %432 : vector<16x64xf32>
    %cst_170 = arith.constant 0.000000e+00 : f32
    %434 = vector.broadcast %cst_170 : f32 to vector<16x64xf32>
    %435 = arith.maximumf %433, %434 : vector<16x64xf32>
    %cst_171 = arith.constant dense<0.000000e+00> : vector<16x32xf32>
    %436 = tpu.matmul %435, %282, %cst_171 {dimension_numbers = #tpu.dot_dimension_numbers<[1], [0], [0], [1], [0, 0, 1, 1], [], []>} : vector<16x64xf32>, vector<64x32xf32>, vector<16x32xf32> -> vector<16x32xf32>
    %437 = arith.addf %430, %436 : vector<16x32xf32>
    %438 = vector.broadcast %302 : vector<1x32xf32> to vector<16x32xf32>
    %439 = arith.addf %437, %438 : vector<16x32xf32>
    %cst_172 = arith.constant dense<0.000000e+00> : vector<16xf32>
    %440 = vector.multi_reduction <add>, %439, %cst_172 [1] : vector<16x32xf32> to vector<16xf32>
    %441 = vector.shape_cast %440 : vector<16xf32> to vector<16x1xf32>
    %cst_173 = arith.constant 3.200000e+01 : f32
    %442 = vector.broadcast %cst_173 : f32 to vector<16x1xf32>
    %443 = arith.divf %441, %442 : vector<16x1xf32>
    %444 = vector.broadcast %443 : vector<16x1xf32> to vector<16x32xf32>
    %445 = arith.subf %439, %444 : vector<16x32xf32>
    %446 = arith.mulf %445, %445 : vector<16x32xf32>
    %cst_174 = arith.constant dense<0.000000e+00> : vector<16xf32>
    %447 = vector.multi_reduction <add>, %446, %cst_174 [1] : vector<16x32xf32> to vector<16xf32>
    %448 = vector.shape_cast %447 : vector<16xf32> to vector<16x1xf32>
    %cst_175 = arith.constant 3.200000e+01 : f32
    %449 = vector.broadcast %cst_175 : f32 to vector<16x1xf32>
    %450 = arith.divf %448, %449 : vector<16x1xf32>
    %cst_176 = arith.constant 9.99999974E-6 : f32
    %451 = vector.broadcast %cst_176 : f32 to vector<16x1xf32>
    %452 = arith.addf %450, %451 : vector<16x1xf32>
    %453 = math.rsqrt %452 : vector<16x1xf32>
    %454 = vector.broadcast %453 : vector<16x1xf32> to vector<16x32xf32>
    %455 = arith.mulf %445, %454 : vector<16x32xf32>
    %456 = vector.broadcast %299 : vector<1x32xf32> to vector<16x32xf32>
    %457 = arith.mulf %455, %456 : vector<16x32xf32>
    %458 = vector.broadcast %300 : vector<1x32xf32> to vector<16x32xf32>
    %459 = arith.addf %457, %458 : vector<16x32xf32>
    %c0_177 = arith.constant 0 : index
    %c0_178 = arith.constant 0 : index
    %460 = vector.load %arg9[%c0_177, %c0_178] : memref<16x32xf32, #tpu.memory_space<vmem>>, vector<16x32xf32>
    tpu.vector_store %arg9[%c0_177, %c0_178], %459 {strides = array<i32>} : memref<16x32xf32, #tpu.memory_space<vmem>>, vector<16x32xf32>,
    return
  }
}

</mosaic_0001>

<bundles_post_ra>
// kernel: ssn_decoder_forward.1
= control target key start
LH: loop header
LB: loop body
LE: loop exit
PB: predicated region body
PF: predicated region fallthrough
CT: control target
= control target key end

     0   :  { %vm108_vm0 = vcmask 261120   ;;  %s7581_s0 = inlined_call_operand.vmem [shape: f32[16,36], index: 0, kind: input, shape index: {}]   ;;  %s7582_s1 = inlined_call_operand.vmem [shape: f32[2,32,32], index: 1, kind: input, shape index: {}]   ;;  %s7583_s2 = inlined_call_operand.vmem [shape: f32[16,48], index: 2, kind: input, shape index: {}]   ;;  %s7584_s3 = inlined_call_operand.vmem [shape: f32[7,64], index: 3, kind: input, shape index: {}]   ;;  %s7585_s4 = inlined_call_operand.vmem [shape: f32[9,32], index: 4, kind: input, shape index: {}]   ;;  %s7586_s5 = inlined_call_operand.vmem [shape: f32[17,32,32], index: 5, kind: input, shape index: {}]   ;;  %s7587_s6 = inlined_call_operand.vmem [shape: f32[6,32,64], index: 6, kind: input, shape index: {}]   ;;  %s7588_s7 = inlined_call_operand.vmem [shape: f32[3,64,32], index: 7, kind: input, shape index: {}]   ;;  %s7589_s8 = inlined_call_operand.vmem [shape: f32[2,8,64], index: 8, kind: input, shape index: {}]   ;;  %s7590_s9 = inlined_call_operand.hbm [shape: f32[16,32], index: 9, kind: output, shape index: {}]  }
   0x1   :  { %v53_v0 = vld [vmem:[%s7586_s5] sm:$0xff]  ;;  %v54_v1 = vld [vmem:[%s7586_s5 + $0x8] sm:$0xff]  ;;  %v55_v2 = vld [vmem:[%s7586_s5 + $0x10] sm:$0xff] }
   0x2   :  { %v5839_v3 = vpack.c.bf16 %v54_v1, %v53_v0  ;;  %v56_v4 = vld [vmem:[%s7586_s5 + $0x18] sm:$0xff]  ;;  %v6449_v5 = vld [vmem:[%s7581_s0] sm:$0xff]  ;;  %v6454_v6 = vld [vmem:[%s7581_s0 + $0x8] sm:$0xff] }
   0x3   :  { %v5843_v7 = vpack.c.bf16 %v56_v4, %v55_v2  ;;  %v4904_v8 = vmul.f32 -1.442695, %v6449_v5  ;;  %5402 = vmatprep.mubr.msk.f32.mxu0 %vm108_vm0, %v6449_v5  ;;  %v4905_v9 = vmul.f32 -1.442695, %v6454_v6 }
   0x4   :  { %5840 = vmatprep.subr.bf16.mxu0 %v5839_v3 }
   0x5   :  { %14 = vsyncpa [#allocation3], 0  ;;  %5842 = vmatpush3.bf16.msra.mxu0 %v5839_v3  ;;  %6212 = vpow2.f32 %v4904_v8  ;;  %v6463_v10 = vld [vmem:[%s7584_s3] sm:$0x7f]  ;;  %vm337_vm1 = vcmask 1043456   ;;  %v4907_v16 = vld [vmem:[%s7586_s5 + $0x28] sm:$0xff]  ;;  %v104_v25 = vlaneseq }
   0x6   :  { %5844 = vmatprep.subr.bf16.mxu0 %v5843_v7  ;;  %6214 = vpow2.f32 %v4905_v9  ;;  %v4906_v15 = vld [vmem:[%s7586_s5 + $0x20] sm:$0xff]  ;;  %s6368_s26 = smov 96   ;;  %v4908_v20 = vld [vmem:[%s7586_s5 + $0x30] sm:$0xff]  ;;  %v4909_v21 = vld [vmem:[%s7586_s5 + $0x38] sm:$0xff]  ;;  %vm332_vm2 = vcmask 31744   ;;  %s6375_s10 = smov 32  }
   0x7   :  { %v5847_v17 = vpack.c.bf16 %v4907_v16, %v4906_v15  ;;  %v5851_v22 = vpack.c.bf16 %v4909_v21, %v4908_v20  ;;  %v6493_v26 = vshrl.u32 %v104_v25, 7  ;;  %v6501_v28 = vld [vmem:[%s7585_s4] sm:$0xff]  ;;  %v88_v37 = vld [vmem:[%s7588_s7 + $0x8] sm:$0xff]  ;;  %v89_v38 = vld [vmem:[%s7588_s7 + $0x10] sm:$0xff]  ;;  %v6369_v16 = vmov 683565275  }
   0x8   :  { %v87_v36 = vld [vmem:[%s7588_s7] sm:$0xff]  ;;  %v90_v40 = vld [vmem:[%s7588_s7 + $0x18] sm:$0xff]  ;;  %v92_v43 = vld [vmem:[%s7588_s7 + $0x28] sm:$0xff]  ;;  %s6380_s14 = smov 126  }
   0x9   :  { %5846 = vmatpush3.bf16.msra.mxu0 %v5843_v7  ;;  %5848 = vmatprep.subr.bf16.mxu1 %v5847_v17  ;;  %v6496_v27 = vsub.s32 0, %v6493_v26  ;;  %v6516_v39 = vpack.c.bf16 %v88_v37, %v87_v36  ;;  %v6521_v41 = vpack.c.bf16 %v90_v40, %v89_v38  ;;  %v91_v42 = vld [vmem:[%s7588_s7 + $0x20] sm:$0xff]  ;;  %v93_v45 = vld [vmem:[%s7588_s7 + $0x30] sm:$0xff]  ;;  %v94_v46 = vld [vmem:[%s7588_s7 + $0x38] sm:$0xff]  ;;  %v6558_v51 = vsub.s32 4, %v6493_v26 }
   0xa   :  { %5416 = vmatprep.subr.msk.mxu0 %vm337_vm1, %v6463_v10  ;;  %5850 = vmatpush3.bf16.msra.mxu1 %v5847_v17  ;;  %v6532_v44 = vpack.c.bf16 %v92_v43, %v91_v42  ;;  %v6543_v47 = vpack.c.bf16 %v94_v46, %v93_v45  ;;  %v4910_v48 = vld [vmem:[%s7586_s5 + $0x40] sm:$0xff]  ;;  %v4911_v49 = vld [vmem:[%s7586_s5 + $0x48] sm:$0xff]  ;;  %v7594_v38 = vmov 1326507024  }
   0xb   :  { %5852 = vmatprep.subr.bf16.mxu1 %v5851_v22  ;;  %v107_v29 = vrot.slane %v6501_v28, %v6496_v27  ;;  %v6553_v50 = vpack.c.bf16 %v4911_v49, %v4910_v48  ;;  %v6562_v52 = vrot.slane %v6463_v10, %v6558_v51 }
   0xc   :  { %5403 = vmatmul.mubr.msk.f32.vlgmr.msra.gmra.mrb[0].mxu0 %vm108_vm0, %v6454_v6 }
   0xd   :  { %5417 = vmatpush3.msk.msra.mxu0 %vm337_vm1, %v6463_v10 }
   0xe   :  { %5854 = vmatpush3.bf16.msra.mxu1 %v5851_v22  ;;  %5872 = vmatprep.subr.bf16.mxu0 %v6553_v50  ;;  %v6370_v22 = vmov 2475754826  }
   0xf   :  { %v6213_v11 = vpop.eup %6212  ;;  %5856 = vmatprep.subr.bf16.mxu1 %v6516_v39 }
  0x10   :  { %v6215_v12 = vpop.eup %6214  ;;  %v41_v13 = vadd.f32 1.0, %v6213_v11 }
  0x11   :  { %v42_v14 = vadd.f32 1.0, %v6215_v12 }
  0x12   :  { %6216 = vrcp.f32 %v41_v13 }
  0x13   :  { %6218 = vrcp.f32 %v42_v14 }
  0x1c   :  { %v6477_v18 = vpop.eup %6216 }
  0x1d   :  { %328 = vrot.lane.b32.xlu0 %v6477_v18, %s6368_s26  ;;  %v6481_v19 = vpop.eup %6218 }
  0x21   :  { %330 = vrot.lane.b32.xlu0 %v6481_v19, %s6368_s26 }
  0x8f   :  { %v329_v23 = vpop.permute.xlu0 %328 }
  0x90   :  { %5418 = vmatprep.mubr.msk.f32.mxu0 %vm332_vm2, %v329_v23 }
  0x93   :  { %v331_v24 = vpop.permute.xlu0 %330 }
  0x94   :  { %5419 = vmatmul.mubr.msk.f32.vlgmr.msra.gmra.mrb[2].mxu0 %vm332_vm2, %v331_v24  ;;  %v6371_v24 = vmov 2131351028  }
  0x95   :  { %5874 = vmatpush3.bf16.msra.mxu0 %v6553_v50 }
  0xdf   :  { %v5404_v30 = vpop.f32.mrb[0].mxu0 }
  0xe0   :  { %v187_v31 = vadd.f32 %v5404_v30, %v107_v29  ;;  %v181_v32 = vpop.f32.mrb[1].mxu0 }
  0xe1   :  { %v182_v33 = vadd.f32 %v181_v32, %v107_v29  ;;  %v7600_v29 = vmov 2102212464  }
  0xe2   :  { %v191_v34 = vmax.f32 %v187_v31, 0.0  ;;  %v7596_v31 = vmov 920167782  }
  0xe3   :  { %v190_v35 = vmax.f32 %v182_v33, 0.0 }
  0xe5   :  { %5413 = vmatprep.mubr.msk.f32.mxu1 %vm108_vm0, %v190_v35 }
  0xe6   :  { %5414 = vmatmul.mubr.msk.f32.vlgmr.msra.gmra.mrb[0].mxu1 %vm108_vm0, %v191_v34 }
  0xe7   :  { %5858 = vmatpush3.bf16.msra.mxu1 %v6516_v39 }
  0xe8   :  { %5860 = vmatprep.subr.bf16.mxu1 %v6521_v41 }
  0xeb   :  { %5862 = vmatpush3.bf16.msra.mxu1 %v6521_v41 }
  0xec   :  { %5864 = vmatprep.subr.bf16.mxu1 %v6532_v44 }
  0xef   :  { %5866 = vmatpush3.bf16.msra.mxu1 %v6532_v44 }
  0xf0   :  { %5868 = vmatprep.subr.bf16.mxu1 %v6543_v47 }
  0xf3   :  { %5870 = vmatpush3.bf16.msra.mxu1 %v6543_v47 }
 0x167   :  { %v5420_v53 = vpop.f32.mrb[2].mxu0 }
 0x168   :  { %v6565_v54 = vmul.f32 %v5420_v53, %v6562_v52  ;;  %v407_v55 = vpop.f32.mrb[3].mxu0 }
 0x169   :  { %v6568_v56 = vmul.f32 %v6562_v52, %v407_v55 }
 0x16a   :  { %v526_v57 = vand.u32 2147483647, %v6565_v54  ;;  %v529_v58 = vand.u32 2139095040, %v6565_v54 }
 0x16b   :  { %v425_v59 = vand.u32 2139095040, %v6568_v56  ;;  %v422_v62 = vand.u32 2147483647, %v6568_v56 }
 0x16c   :  { %v530_v60 = vshrl.u32 %v529_v58, 23  ;;  %v533_v61 = vand.u32 8388607, %v526_v57 }
 0x16d   :  { %v426_v63 = vshrl.u32 %v425_v59, 23  ;;  %v6578_v4 = vand.u32 8388607, %v422_v62 }
 0x16e   :  { %v4981_v0 = vadd.s32 4294967169, %v530_v60  ;;  %v534_v3 = vor.u32 8388608, %v533_v61 }
 0x16f   :  { %v4977_v1 = vadd.s32 4294967169, %v426_v63  ;;  %v430_v14 = vor.u32 8388608, %v6578_v4 }
 0x170   :  { %v536_v2 = vadd.s32 1, %v4981_v0  ;;  %v6580_v13 = vshll.u32 %v534_v3, 8 }
 0x171   :  { %v432_v7 = vadd.s32 1, %v4977_v1 }
 0x172   :  { %vm537_vm3 = vcmp.gt.s32.totalorder %v536_v2, 0 }
 0x173   :  { %v538_v8 = vsel %vm537_vm3, %v536_v2, 0  ;;  %vm433_vm4 = vcmp.gt.s32.totalorder %v432_v7, 0 }
 0x174   :  { %v539_v9 = vshrl.u32 %v538_v8, 5  ;;  %v540_v11 = vand.u32 31, %v538_v8  ;;  %v434_v12 = vsel %vm433_vm4, %v432_v7, 0  ;;  %vm528_vm4 = vcmp.lt.s32.totalorder %v6565_v54, 0 }
 0x175   :  { %v6584_v20 = vshrl.u32 %v434_v12, 5  ;;  %v436_v21 = vand.u32 31, %v434_v12 }
 0x176   :  { %v541_v15 = vsub.s32 32, %v540_v11  ;;  %v543_v17 = vshll.u32 %v6369_v16, %v540_v11  ;;  %v546_v23 = vshll.u32 %v6370_v22, %v540_v11  ;;  %v549_v25 = vshll.u32 %v6371_v24, %v540_v11 }
 0x177   :  { %v552_v30 = vshll.u32 %v7600_v29, %v540_v11  ;;  %v555_v32 = vshll.u32 %v7596_v31, %v540_v11  ;;  %vm558_vm5 = vcmp.lt.s32.totalorder %v539_v9, 1  ;;  %vm559_vm6 = vcmp.lt.s32.totalorder %v539_v9, 2 }
 0x178   :  { %v544_v33 = vshrl.u32 %v6370_v22, %v541_v15  ;;  %v547_v34 = vshrl.u32 %v6371_v24, %v541_v15  ;;  %v550_v35 = vshrl.u32 %v7600_v29, %v541_v15  ;;  %v542_v36 = vshrl.u32 %v6369_v16, %v541_v15 }
 0x179   :  { %v553_v37 = vshrl.u32 %v7596_v31, %v541_v15  ;;  %v556_v40 = vshrl.u32 %v7594_v38, %v541_v15  ;;  %v437_v46 = vsub.s32 32, %v436_v21  ;;  %vm560_vm7 = vcmp.lt.s32.totalorder %v539_v9, 3 }
 0x17a   :  { %v545_v42 = vor.u32 %v544_v33, %v543_v17  ;;  %v548_v43 = vor.u32 %v547_v34, %v546_v23  ;;  %v551_v45 = vor.u32 %v550_v35, %v549_v25  ;;  %vm561_vm8 = vcmp.lt.s32.totalorder %v539_v9, 4 }
 0x17b   :  { %v554_v48 = vor.u32 %v553_v37, %v552_v30  ;;  %v557_v49 = vor.u32 %v556_v40, %v555_v32  ;;  %v439_v0 = vshll.u32 %v6369_v16, %v436_v21  ;;  %v440_v3 = vshrl.u32 %v6370_v22, %v437_v46 }
 0x17c   :  { %v562_v53 = vsel %vm558_vm5, %v542_v36, %v545_v42  ;;  %v563_v55 = vsel %vm561_vm8, %v551_v45, 2102212464  ;;  %v566_v58 = vsel %vm558_vm5, %v545_v42, %v548_v43  ;;  %v570_v59 = vsel %vm558_vm5, %v548_v43, %v551_v45 }
 0x17d   :  { %v564_v60 = vsel %vm560_vm7, %v548_v43, %v563_v55  ;;  %v567_v61 = vsel %vm561_vm8, %v554_v48, 920167782  ;;  %v571_v63 = vsel %vm561_vm8, %v557_v49, 1326507024  ;;  %v442_v4 = vshll.u32 %v6370_v22, %v436_v21 }
 0x17e   :  { %v568_v1 = vsel %vm560_vm7, %v551_v45, %v567_v61  ;;  %v572_v2 = vsel %vm560_vm7, %v554_v48, %v571_v63  ;;  %v565_v7 = vsel %vm559_vm6, %v562_v53, %v564_v60  ;;  %v443_v12 = vshrl.u32 %v6371_v24, %v437_v46 }
 0x17f   :  { %v569_v8 = vsel %vm559_vm6, %v566_v58, %v568_v1  ;;  %v573_v11 = vsel %vm559_vm6, %v570_v59, %v572_v2  ;;  %v441_v30 = vor.u32 %v440_v3, %v439_v0  ;;  %v445_v33 = vshll.u32 %v6371_v24, %v436_v21 }
 0x180   :  { %v6607_v15 = vmul.u32.u64.low %v6580_v13, %v573_v11  ;;  %v6608_v17 = vmul.u32.u64.high %v6580_v13, %v573_v11, %v6607_v15  ;;  %v6611_v23 = vmul.u32.u64.low %v6580_v13, %v569_v8  ;;  %v6612_v25 = vmul.u32.u64.high %v6580_v13, %v569_v8, %v6611_v23 }
 0x181   :  { %v444_v32 = vor.u32 %v443_v12, %v442_v4  ;;  %v446_v34 = vshrl.u32 %v7600_v29, %v437_v46  ;;  %v448_v35 = vshll.u32 %v7600_v29, %v436_v21  ;;  %v449_v9 = vshrl.u32 %v7596_v31, %v437_v46 }
 0x182   :  { %v452_v36 = vshrl.u32 %v7594_v38, %v437_v46  ;;  %v470_v37 = vshll.u32 %v430_v14, 8  ;;  %v581_v40 = vmul.u32 %v6580_v13, %v565_v7  ;;  %v438_v42 = vshrl.u32 %v6369_v16, %v437_v46 }
 0x183   :  { %v447_v43 = vor.u32 %v446_v34, %v445_v33  ;;  %v451_v45 = vshll.u32 %v7596_v31, %v436_v21  ;;  %vm583_vm9 = vc.u32 %v6608_v17, %v6611_v23  ;;  %v584_v48 = vadd.s32 1, %v6612_v25 }
 0x184   :  { %v450_v49 = vor.u32 %v449_v9, %v448_v35  ;;  %vm454_vm10 = vcmp.lt.s32.totalorder %v6584_v20, 1  ;;  %vm456_vm11 = vcmp.lt.s32.totalorder %v6584_v20, 3  ;;  %vm457_vm12 = vcmp.lt.s32.totalorder %v6584_v20, 4 }
 0x185   :  { %v453_v53 = vor.u32 %v452_v36, %v451_v45  ;;  %v462_v14 = vsel %vm454_vm10, %v441_v30, %v444_v32  ;;  %v585_v13 = vsel %vm583_vm9, %v584_v48, %v6612_v25  ;;  %v459_v55 = vsel %vm457_vm12, %v447_v43, 2102212464 }
 0x186   :  { %v463_v46 = vsel %vm457_vm12, %v450_v49, 920167782  ;;  %v466_v58 = vsel %vm454_vm10, %v444_v32, %v447_v43  ;;  %v586_v59 = vadd.s32 %v585_v13, %v581_v40  ;;  %vm455_vm13 = vcmp.lt.s32.totalorder %v6584_v20, 2 }
 0x187   :  { %v464_v21 = vsel %vm456_vm11, %v447_v43, %v463_v46  ;;  %v467_v60 = vsel %vm457_vm12, %v453_v53, 1326507024  ;;  %v458_v61 = vsel %vm454_vm10, %v438_v42, %v441_v30  ;;  %v460_v63 = vsel %vm456_vm11, %v444_v32, %v459_v55 }
 0x188   :  { %v465_v0 = vsel %vm455_vm13, %v462_v14, %v464_v21  ;;  %v468_v1 = vsel %vm456_vm11, %v450_v49, %v467_v60  ;;  %v587_v2 = vadd.s32 536870912, %v586_v59  ;;  %v461_v15 = vsel %vm455_vm13, %v458_v61, %v460_v63 }
 0x189   :  { %v469_v3 = vsel %vm455_vm13, %v466_v58, %v468_v1  ;;  %v6629_v4 = vmul.u32.u64.low %v470_v37, %v465_v0  ;;  %v6630_v7 = vmul.u32.u64.high %v470_v37, %v465_v0, %v6629_v4  ;;  %v477_v20 = vmul.u32 %v470_v37, %v461_v15 }
 0x18a   :  { %v6632_v8 = vmul.u32.u64.low %v470_v37, %v469_v3  ;;  %v6633_v11 = vmul.u32.u64.high %v470_v37, %v469_v3, %v6632_v8  ;;  %v588_v12 = vshrl.u32 %v587_v2, 30  ;;  %v582_v14 = vadd.s32 %v6611_v23, %v6608_v17 }
 0x18b   :  { %v480_v33 = vadd.s32 1, %v6630_v7  ;;  %vm527_vm5 = vcmp.le.f32.partialorder %v526_v57, 0.7853982  ;;  %vm424_vm6 = vcmp.lt.s32.totalorder %v6568_v56, 0  ;;  %vm423_vm7 = vcmp.le.f32.partialorder %v422_v62, 0.7853982 }
 0x18c   :  { %v589_v25 = vshll.u32 %v588_v12, 30  ;;  %vm479_vm14 = vc.u32 %v6633_v11, %v6629_v4  ;;  %v612_v23 = vsub.s32 4, %v588_v12 }
 0x18d   :  { %v481_v32 = vsel %vm479_vm14, %v480_v33, %v6630_v7  ;;  %v478_v7 = vadd.s32 %v6629_v4, %v6633_v11  ;;  %vm618_vm14 = vweird.f32 %v6565_v54 }
 0x18e   :  { %v590_v30 = vsub.s32 %v586_v59, %v589_v25  ;;  %v482_v34 = vadd.s32 %v481_v32, %v477_v20 }
 0x190   :  { %v592_v35 = vsub.s32 0, %v590_v30  ;;  %v483_v9 = vadd.s32 536870912, %v482_v34 }
 0x192   :  { %v4982_v36 = vmin.u32 %v592_v35, %v590_v30  ;;  %v484_v40 = vshrl.u32 %v483_v9, 30  ;;  %v613_v9 = vsel %vm528_vm4, %v612_v23, %v588_v12 }
 0x193   :  { %v615_v11 = vsel %vm527_vm5, 0, %v613_v9 }
 0x194   :  { %v594_v42 = vclz %v4982_v36  ;;  %v485_v43 = vshll.u32 %v484_v40, 30 }
 0x196   :  { %v4983_v45 = vadd.s32 4294967294, %v594_v42  ;;  %v486_v48 = vsub.s32 %v482_v34, %v485_v43 }
 0x198   :  { %vm4984_vm15 = vcmp.lt.s32.totalorder %v4983_v45, 0  ;;  %v488_v53 = vsub.s32 0, %v486_v48 }
 0x199   :  { %v597_v49 = vsel %vm4984_vm15, 0, %v4983_v45 }
 0x19a   :  { %v598_v37 = vsub.s32 32, %v597_v49  ;;  %v602_v13 = vsub.s32 4294967266, %v597_v49  ;;  %v4978_v55 = vmin.u32 %v488_v53, %v486_v48  ;;  %v599_v46 = vshll.u32 %v590_v30, %v597_v49 }
 0x19b   :  { %v619_v49 = vadd.s32 3, %v615_v11 }
 0x19c   :  { %v600_v58 = vshrl.u32 %v582_v14, %v598_v37  ;;  %v603_v59 = vadd.s32 127, %v602_v13  ;;  %v490_v21 = vclz %v4978_v55  ;;  %v48_v14 = vsub.f32 1.0, %v6463_v10 }
 0x19d   :  { %v6649_v37 = vsub.s32 5, %v6493_v26  ;;  %v620_v55 = vand.u32 3, %v619_v49 }
 0x19e   :  { %v601_v60 = vor.u32 %v600_v58, %v599_v46  ;;  %v604_v61 = vshll.u32 %v603_v59, 23  ;;  %v4979_v63 = vadd.s32 4294967294, %v490_v21  ;;  %v832_v46 = vand.u32 3, %v615_v11 }
 0x19f   :  { %v6659_v62 = vrot.slane %v48_v14, %v6649_v37  ;;  %vm625_vm8 = vcmp.eq.s32.totalorder %v620_v55, 2  ;;  %vm622_vm11 = vcmp.eq.s32.totalorder %v620_v55, 0  ;;  %vm621_vm12 = vcmp.lt.s32.totalorder %v620_v55, 2  ;;  %v4913_v55 = vld [vmem:[%s7586_s5 + $0x58] sm:$0xff] }
 0x1a0   :  { %v605_v0 = vor.u32 4788187, %v604_v61  ;;  %vm4980_vm3 = vcmp.lt.s32.totalorder %v4979_v63, 0  ;;  %v608_v2 = vcvt.s32.f32 %v601_v60  ;;  %v6654_v61 = vrot.slane %v6463_v10, %v6649_v37  ;;  %v6951_v10 = vld [vmem:[%s7584_s3] sm:$0x7f]  ;;  %s6379_s3 = smov 112  }
 0x1a1   :  { %v493_v3 = vsel %vm4980_vm3, 0, %v4979_v63  ;;  %vm834_vm9 = vcmp.eq.s32.totalorder %v832_v46, 0  ;;  %vm837_vm10 = vcmp.eq.s32.totalorder %v832_v46, 2  ;;  %vm833_vm13 = vcmp.lt.s32.totalorder %v832_v46, 2 }
 0x1a2   :  { %v606_v1 = vand.u32 2147483647, %v605_v0  ;;  %v494_v8 = vsub.s32 32, %v493_v3  ;;  %v498_v15 = vsub.s32 4294967266, %v493_v3  ;;  %v495_v25 = vshll.u32 %v486_v48, %v493_v3 }
 0x1a3   :  { %v508_v48 = vsub.s32 4, %v484_v40 }
 0x1a4   :  { %v609_v17 = vmul.f32 %v608_v2, %v606_v1  ;;  %v496_v33 = vshrl.u32 %v478_v7, %v494_v8  ;;  %v499_v20 = vadd.s32 127, %v498_v15 }
 0x1a5   :  { %v509_v12 = vsel %vm424_vm6, %v508_v48, %v484_v40 }
 0x1a6   :  { %v610_v30 = vxor.u32 2147483648, %v609_v17  ;;  %v497_v32 = vor.u32 %v496_v33, %v495_v25  ;;  %v500_v34 = vshll.u32 %v499_v20, 23  ;;  %v511_v59 = vsel %vm423_vm7, 0, %v509_v12 }
 0x1a7   :  { %v515_v1 = vadd.s32 3, %v511_v59 }
 0x1a8   :  { %v611_v35 = vsel %vm528_vm4, %v610_v30, %v609_v17  ;;  %v501_v4 = vor.u32 4788187, %v500_v34  ;;  %v504_v43 = vcvt.s32.f32 %v497_v32  ;;  %v729_v32 = vand.u32 3, %v511_v59  ;;  %v4939_v59 = vld [vmem:[%s7587_s6 + $0x28] sm:$0xff] }
 0x1a9   :  { %v614_v36 = vsel %vm527_vm5, %v6565_v54, %v611_v35  ;;  %v516_v30 = vand.u32 3, %v515_v1 }
 0x1aa   :  { %6220 = vcosq.f32 %v614_v36  ;;  %v502_v42 = vand.u32 2147483647, %v501_v4  ;;  %vm734_vm3 = vcmp.eq.s32.totalorder %v729_v32, 2  ;;  %vm731_vm5 = vcmp.eq.s32.totalorder %v729_v32, 0 }
 0x1ab   :  { %6222 = vsinq.f32 %v614_v36  ;;  %vm521_vm15 = vcmp.eq.s32.totalorder %v516_v30, 2  ;;  %vm518_vm4 = vcmp.eq.s32.totalorder %v516_v30, 0 }
 0x1ac   :  { %v505_v45 = vmul.f32 %v504_v43, %v502_v42 }
 0x1ae   :  { %v506_v53 = vxor.u32 2147483648, %v505_v45 }
 0x1b0   :  { %v507_v57 = vsel %vm424_vm6, %v506_v53, %v505_v45  ;;  %vm517_vm6 = vcmp.lt.s32.totalorder %v516_v30, 2 }
 0x1b1   :  { %v510_v13 = vsel %vm423_vm7, %v6568_v56, %v507_v57  ;;  %vm730_vm7 = vcmp.lt.s32.totalorder %v729_v32, 2  ;;  %v279_v32 = vld [vmem:[%s7587_s6 + $0x10] sm:$0xff] }
 0x1b2   :  { %6224 = vcosq.f32 %v510_v13 }
 0x1b3   :  { %6226 = vsinq.f32 %v510_v13 }
 0x1b4   :  { %v6221_v58 = vpop.eup %6220 }
 0x1b5   :  { %v6223_v21 = vpop.eup %6222  ;;  %v626_v60 = vxor.u32 2147483648, %v6221_v58 }
 0x1b6   :  { %v623_v40 = vxor.u32 2147483648, %v6223_v21 }
 0x1b7   :  { %v627_v63 = vsel %vm625_vm8, %v626_v60, %v6223_v21  ;;  %v839_v0 = vsel %vm837_vm10, %v626_v60, %v6223_v21  ;;  %vm514_vm8 = vweird.f32 %v6568_v56  ;;  %v4912_v56 = vld [vmem:[%s7586_s5 + $0x50] sm:$0xff]  ;;  %v6696_v60 = vsub.s32 2, %v6493_v26  ;;  %vm6779_vm10 = vmpackc.low %vm108_vm0, %vm108_vm0 }
 0x1b8   :  { %v624_v3 = vsel %vm622_vm11, %v6221_v58, %v623_v40  ;;  %v836_v7 = vsel %vm834_vm9, %v6221_v58, %v623_v40  ;;  %vm854_vm9 = vcmask 523264   ;;  %v6685_v46 = vpack.c.bf16 %v4913_v55, %v4912_v56  ;;  %v4938_v58 = vld [vmem:[%s7587_s6 + $0x20] sm:$0xff] }
 0x1b9   :  { %v6661_v2 = vpop.f32.mrb[0].mxu1  ;;  %v628_v8 = vsel %vm621_vm12, %v624_v3, %v627_v63  ;;  %v840_v15 = vsel %vm833_vm13, %v836_v7, %v839_v0  ;;  %v5879_v21 = vpack.c.bf16 %v4939_v59, %v4938_v58  ;;  %v6700_v40 = vrot.slane %v6501_v28, %v6696_v60  ;;  %v4940_v7 = vld [vmem:[%s7587_s6 + $0x30] sm:$0xff]  ;;  %v4922_v59 = vld [vmem:[%s7586_s5 + $0xa0] sm:$0xff] }
 0x1ba   :  { %v6664_v17 = vpop.f32.mrb[1].mxu1  ;;  %v629_v23 = vsel %vm618_vm14, nan, %v628_v8  ;;  %v841_v25 = vsel %vm618_vm14, nan, %v840_v15  ;;  %5876 = vmatprep.subr.bf16.mxu0 %v6685_v46  ;;  %v4941_v8 = vld [vmem:[%s7587_s6 + $0x38] sm:$0xff]  ;;  %vm1429_vm11 = vcmask 130048  }
 0x1bb   :  { %v635_v33 = vmul.f32 %v6654_v61, %v629_v23  ;;  %v847_v20 = vmul.f32 %v6659_v62, %v841_v25  ;;  %5878 = vmatpush3.bf16.msra.mxu0 %v6685_v46  ;;  %v5883_v25 = vpack.c.bf16 %v4941_v8, %v4940_v7 }
 0x1bc   :  { %v6225_v34 = vpop.eup %6224  ;;  %5880 = vmatprep.subr.bf16.mxu0 %v5879_v21 }
 0x1bd   :  { %v6668_v35 = vadd.f32 %v847_v20, %v635_v33  ;;  %v6227_v9 = vpop.eup %6226  ;;  %v522_v36 = vxor.u32 2147483648, %v6225_v34  ;;  %v277_v33 = vld [vmem:[%s7587_s6] sm:$0xff]  ;;  %v278_v20 = vld [vmem:[%s7587_s6 + $0x8] sm:$0xff] }
 0x1be   :  { %v519_v4 = vxor.u32 2147483648, %v6227_v9  ;;  %v5895_v30 = vpack.c.bf16 %v278_v20, %v277_v33 }
 0x1bf   :  { %v523_v54 = vsel %vm521_vm15, %v522_v36, %v6227_v9  ;;  %v736_v11 = vsel %vm734_vm3, %v522_v36, %v6227_v9  ;;  %v1101_v36 = vrot.slane %v6501_v28, %v6558_v51 }
 0x1c0   :  { %v520_v42 = vsel %vm518_vm4, %v6225_v34, %v519_v4  ;;  %v733_v43 = vsel %vm731_vm5, %v6225_v34, %v519_v4  ;;  %v280_v34 = vld [vmem:[%s7587_s6 + $0x18] sm:$0xff]  ;;  %v6731_v4 = vsub.s32 3, %v6493_v26 }
 0x1c1   :  { %v524_v45 = vsel %vm517_vm6, %v520_v42, %v523_v54  ;;  %v737_v48 = vsel %vm730_vm7, %v733_v43, %v736_v11  ;;  %v5899_v9 = vpack.c.bf16 %v280_v34, %v279_v32  ;;  %1103 = vrot.lane.b32.xlu1 %v1101_v36, %s6375_s10  ;;  %s6376_s10 = smov 94  }
 0x1c2   :  { %v525_v49 = vsel %vm514_vm8, nan, %v524_v45  ;;  %v738_v53 = vsel %vm514_vm8, nan, %v737_v48  ;;  %v6735_v54 = vrot.slane %v6501_v28, %v6731_v4 }
 0x1c3   :  { %v634_v57 = vmul.f32 %v6654_v61, %v525_v49  ;;  %v846_v12 = vmul.f32 %v6659_v62, %v738_v53 }
 0x1c5   :  { %v6673_v13 = vadd.f32 %v846_v12, %v634_v57 }
 0x1c7   :  { %5437 = vmatprep.mubr.msk.f32.mxu1 %vm854_vm9, %v6673_v13 }
 0x1c8   :  { %5438 = vmatmul.mubr.msk.f32.vlgmr.msra.gmra.mrb[2].mxu1 %vm854_vm9, %v6668_v35 }
 0x233   :  { %v6749_v53 = vpop.permute.xlu1 %1103 }
 0x29b   :  { %v5439_v63 = vpop.f32.mrb[2].mxu1 }
 0x29c   :  { %v933_v0 = vadd.f32 %v5439_v63, %v6700_v40  ;;  %v927_v1 = vpop.f32.mrb[3].mxu1  ;;  %v4924_v63 = vld [vmem:[%s7586_s5 + $0xb0] sm:$0xff] }
 0x29d   :  { %v928_v3 = vadd.f32 %v927_v1, %v6700_v40  ;;  %v4925_v1 = vld [vmem:[%s7586_s5 + $0xb8] sm:$0xff] }
 0x29e   :  { %v937_v23 = vmax.f32 %v933_v0, 0.0 }
 0x29f   :  { %v936_v15 = vmax.f32 %v928_v3, 0.0  ;;  %v6767_v3 = vpack.c.bf16 %v4925_v1, %v4924_v63 }
 0x2a1   :  { %5448 = vmatprep.mubr.msk.f32.mxu0 %vm108_vm0, %v936_v15 }
 0x2a2   :  { %5449 = vmatmul.mubr.msk.f32.vlgmr.msra.gmra.mrb[4].mxu0 %vm108_vm0, %v937_v23 }
 0x2a3   :  { %5882 = vmatpush3.bf16.msra.mxu0 %v5879_v21  ;;  %5459 = vmatprep.mubr.msk.f32.mxu0 %vm108_vm0, %v6449_v5  ;;  %v4923_v21 = vld [vmem:[%s7586_s5 + $0xa8] sm:$0xff] }
 0x2a4   :  { %5884 = vmatprep.subr.bf16.mxu0 %v5883_v25  ;;  %v6762_v0 = vpack.c.bf16 %v4923_v21, %v4922_v59 }
 0x2a6   :  { %5888 = vmatprep.subr.bf16.mxu1 %v6762_v0 }
 0x2a7   :  { %5886 = vmatpush3.bf16.msra.mxu0 %v5883_v25  ;;  %5890 = vmatpush3.bf16.msra.mxu1 %v6762_v0 }
 0x2a8   :  { %5896 = vmatprep.subr.bf16.mxu0 %v5895_v30  ;;  %5892 = vmatprep.subr.bf16.mxu1 %v6767_v3 }
 0x2aa   :  { %5460 = vmatmul.mubr.msk.f32.vlgmr.msra.gmra.mrb[6].mxu0 %vm108_vm0, %v6454_v6 }
 0x2ab   :  { %5898 = vmatpush3.bf16.msra.mxu0 %v5895_v30  ;;  %5894 = vmatpush3.bf16.msra.mxu1 %v6767_v3 }
 0x2ac   :  { %5900 = vmatprep.subr.bf16.mxu0 %v5899_v9 }
 0x2af   :  { %5902 = vmatpush3.bf16.msra.mxu0 %v5899_v9 }
 0x375   :  { %v5450_v11 = vpop.f32.mrb[4].mxu0 }
 0x376   :  { %v6738_v42 = vadd.f32 %v5450_v11, %v6735_v54  ;;  %v1014_v43 = vpop.f32.mrb[5].mxu0 }
 0x377   :  { %v6741_v45 = vadd.f32 %v1014_v43, %v6735_v54 }
 0x378   :  { %v1258_v49 = vadd.f32 %v6738_v42, %v6454_v6 }
 0x379   :  { %v1257_v48 = vadd.f32 %v6741_v45, %v6449_v5 }
 0x37b   :  { %5481 = vmatprep.mubr.msk.f32.mxu0 %vm108_vm0, %v1257_v48  ;;  %v6797_v48 = vld [vmem:[%s7583_s2 + $0x8] sm:$0xff] }
 0x37c   :  { %5482 = vmatmul.mubr.msk.f32.vlgmr.msra.gmra.mrb[8].mxu0 %vm108_vm0, %v1258_v49  ;;  %v6802_v49 = vld [vmem:[%s7583_s2] sm:$0xff] }
 0x37d   :  { %v5461_v57 = vpop.f32.mrb[6].mxu0 }
 0x37e   :  { %v1089_v12 = vpop.f32.mrb[7].mxu0  ;;  %v1107_v25 = vadd.f32 %v5461_v57, %v6749_v53 }
 0x37f   :  { %v5909_v56 = vpack.c.bf16 %v5461_v57, %v1089_v12  ;;  %v1106_v55 = vadd.f32 %v6749_v53, %v1089_v12 }
 0x380   :  { %v1109_v33 = vmax.f32 %v1107_v25, 0.0 }
 0x381   :  { %5910 = vmatprep.subr.bf16.mxu0 %v5909_v56  ;;  %v1108_v58 = vmax.f32 %v1106_v55, 0.0 }
 0x382   :  { %5912 = vmatpush3.bf16.msra.mxu0 %v5909_v56 }
 0x383   :  { %1116 = vrot.lane.b32.xlu0 %v1108_v58, %s6368_s26 }
 0x3f5   :  { %v1117_v7 = vpop.permute.xlu0 %1116 }
 0x3f6   :  { %5470 = vmatprep.mubr.msk.f32.mxu1 %vm108_vm0, %v1117_v7 }
 0x44f   :  { %v5483_v8 = vpop.f32.mrb[8].mxu0 }
 0x450   :  { %v1331_v15 = vpop.f32.mrb[9].mxu0 }
 0x451   :  { %v6195_v23 = vpack.i.bf16 %v5483_v8, %v1331_v15 }
 0x453   :  { %6196 = vrot.lane.b32.xlu1 %v6195_v23, %s6368_s26 }
 0x457   :  { %1118 = vrot.lane.b32.xlu1 %v1109_v33, %s6368_s26 }
 0x4c5   :  { %v6197_v20 = vpop.permute.xlu1 %6196 }
 0x4c6   :  { %v6199_v30 = vunpack.i.h.bf16 %v6197_v20  ;;  %v6198_v32 = vunpack.i.l.bf16 %v6197_v20 }
 0x4c8   :  { %v5903_v9 = vpack.c.bf16 %v6199_v30, %v6198_v32  ;;  %v4954_v30 = vld [vmem:[%s7586_s5 + $0xe0] sm:$0xff]  ;;  %v4955_v32 = vld [vmem:[%s7586_s5 + $0xe8] sm:$0xff] }
 0x4c9   :  { %v1119_v36 = vpop.permute.xlu1 %1118 }
 0x4ca   :  { %5471 = vmatmul.mubr.msk.f32.vlgmr.msra.gmra.mrb[4].mxu1 %vm108_vm0, %v1119_v36  ;;  %5905 = vmatprep.subr.msk.bf16.mxu1 %vm6779_vm10, %v5903_v9 }
 0x4cb   :  { %5908 = vmatpush3.bf16.xpose.msk.msra.mxu1 %vm6779_vm10, %v5903_v9  ;;  %5488 = vmatprep.mubr.msk.f32.mxu1 %vm108_vm0, %v1331_v15  ;;  %v5913_v9 = vpack.c.bf16 %v4955_v32, %v4954_v30  ;;  %v7593_v30 = vmov 1   ;;  %v7591_v32 = vmov 0  }
 0x4cc   :  { %6200 = vset.pattern.permute.xlu1 %v7593_v30  ;;  %6201 = vset.pattern.permute.xlu0 %v7591_v32 }
 0x4cd   :  { %5914 = vmatprep.subr.bf16.mxu0 %v5913_v9 }
 0x4d2   :  { %5489 = vmatmul.mubr.msk.f32.vlgmr.msra.gmra.mrb[6].mxu1 %vm108_vm0, %v5483_v8 }
 0x59d   :  { %v6790_v11 = vpop.f32.mrb[4].mxu1 }
 0x59e   :  { %v6792_v43 = vpop.f32.mrb[5].mxu1 }
 0x5a5   :  { %v5490_v57 = vpop.f32.mrb[6].mxu1 }
 0x5a6   :  { %v1426_v12 = vadd.f32 %v5490_v57, %v6797_v48  ;;  %v1420_v56 = vpop.f32.mrb[7].mxu1 }
 0x5a7   :  { %v1421_v55 = vadd.f32 %v1420_v56, %v6802_v49 }
 0x5a8   :  { %v1433_v58 = vsel %vm1429_vm11, %v1426_v12, -inf }
 0x5a9   :  { %1434 = vmax.xlane.f32.xlu1 %v1433_v58  ;;  %v1430_v59 = vsel %vm1429_vm11, %v1421_v55, -inf  ;;  %v4957_v58 = vld [vmem:[%s7586_s5 + $0xf8] sm:$0xff] }
 0x5aa   :  { %1431 = vmax.xlane.f32.xlu0 %v1430_v59 }
 0x636   :  { %v1435_v21 = vpop.xlane.xlu1 %1434 }
 0x637   :  { %v1437_v63 = vsub.f32 %v1426_v12, %v1435_v21  ;;  %v1432_v1 = vpop.xlane.xlu0 %1431 }
 0x638   :  { %v1436_v7 = vsub.f32 %v1421_v55, %v1432_v1  ;;  %v4956_v55 = vld [vmem:[%s7586_s5 + $0xf0] sm:$0xff] }
 0x639   :  { %v1440_v8 = vmul.f32 1.442695, %v1437_v63  ;;  %v5917_v63 = vpack.c.bf16 %v4957_v58, %v4956_v55 }
 0x63a   :  { %v1438_v15 = vmul.f32 1.442695, %v1436_v7 }
 0x63c   :  { %6228 = vpow2.f32 %v1438_v15 }
 0x63d   :  { %6230 = vpow2.f32 %v1440_v8 }
 0x646   :  { %v6229_v23 = vpop.eup %6228 }
 0x647   :  { %v1442_v25 = vsel %vm1429_vm11, %v6229_v23, 0.0  ;;  %v6231_v33 = vpop.eup %6230 }
 0x648   :  { %1443 = vadd.xlane.f32.xlu0 %v1442_v25  ;;  %v1445_v20 = vsel %vm1429_vm11, %v6231_v33, 0.0 }
 0x64c   :  { %1446 = vadd.xlane.f32.xlu0 %v1445_v20 }
 0x6d5   :  { %v1444_v36 = vpop.xlane.xlu0 %1443 }
 0x6d6   :  { %6232 = vrcp.f32 %v1444_v36 }
 0x6d9   :  { %v1447_v57 = vpop.xlane.xlu0 %1446 }
 0x6da   :  { %6234 = vrcp.f32 %v1447_v57 }
 0x6e0   :  { %v6233_v12 = vpop.eup %6232 }
 0x6e1   :  { %v1450_v56 = vmul.f32 %v6233_v12, %v6229_v23 }
 0x6e3   :  { %5495 = vmatprep.mubr.msk.f32.mxu0 %vm1429_vm11, %v1450_v56 }
 0x6e4   :  { %v6235_v59 = vpop.eup %6234 }
 0x6e5   :  { %v1451_v21 = vmul.f32 %v6235_v59, %v6231_v33 }
 0x6e7   :  { %5496 = vmatmul.mubr.msk.f32.vlgmr.msra.gmra.mrb[10].mxu0 %vm1429_vm11, %v1451_v21 }
 0x6e8   :  { %5916 = vmatpush3.bf16.msra.mxu0 %v5913_v9 }
 0x6e9   :  { %5918 = vmatprep.subr.bf16.mxu0 %v5917_v63 }
 0x6ec   :  { %5920 = vmatpush3.bf16.msra.mxu0 %v5917_v63 }
 0x7ba   :  { %v5497_v1 = vpop.f32.mrb[10].mxu0 }
 0x7bb   :  { %v1524_v7 = vpop.f32.mrb[11].mxu0 }
 0x7bc   :  { %5506 = vmatprep.mubr.msk.f32.mxu0 %vm108_vm0, %v1524_v7 }
 0x7bd   :  { %5507 = vmatmul.mubr.msk.f32.vlgmr.msra.gmra.mrb[12].mxu0 %vm108_vm0, %v5497_v1 }
 0x890   :  { %v5508_v8 = vpop.f32.mrb[12].mxu0 }
 0x891   :  { %v1615_v15 = vadd.f32 %v5508_v8, %v6454_v6  ;;  %v1605_v23 = vpop.f32.mrb[13].mxu0 }
 0x892   :  { %v1614_v25 = vadd.f32 %v1605_v23, %v6449_v5  ;;  %v6836_v5 = vrot.slane %v6501_v28, %v6649_v37 }
 0x893   :  { %v1619_v33 = vsel %vm108_vm0, %v1615_v15, 0.0 }
 0x894   :  { %1620 = vadd.xlane.f32.xlu0 %v1619_v33  ;;  %v1616_v20 = vsel %vm108_vm0, %v1614_v25, 0.0  ;;  %v1191_v6 = vadd.f32 %v6792_v43, %v6836_v5  ;;  %v1196_v36 = vadd.f32 %v6790_v11, %v6836_v5 }
 0x895   :  { %1617 = vadd.xlane.f32.xlu1 %v1616_v20 }
 0x896   :  { %v5001_v9 = vmul.f32 -1.442695, %v1191_v6  ;;  %v5002_v57 = vmul.f32 -1.442695, %v1196_v36  ;;  %v4963_v36 = vld [vmem:[%s7586_s5 + $0x128] sm:$0xff] }
 0x898   :  { %6236 = vpow2.f32 %v5001_v9  ;;  %v4962_v9 = vld [vmem:[%s7586_s5 + $0x120] sm:$0xff] }
 0x899   :  { %6238 = vpow2.f32 %v5002_v57  ;;  %v5921_v57 = vpack.c.bf16 %v4963_v36, %v4962_v9  ;;  %v4967_v9 = vld [vmem:[%s7586_s5 + $0x148] sm:$0xff]  ;;  %v4968_v36 = vld [vmem:[%s7586_s5 + $0x150] sm:$0xff] }
 0x89b   :  { %5922 = vmatprep.subr.bf16.mxu1 %v5921_v57 }
 0x89c   :  { %5924 = vmatpush3.bf16.msra.mxu1 %v5921_v57 }
 0x8a2   :  { %v6237_v12 = vpop.eup %6236 }
 0x8a3   :  { %v1205_v55 = vadd.f32 1.0, %v6237_v12  ;;  %v6239_v21 = vpop.eup %6238 }
 0x8a4   :  { %v1206_v7 = vadd.f32 1.0, %v6239_v21  ;;  %v4964_v21 = vld [vmem:[%s7586_s5 + $0x130] sm:$0xff] }
 0x8a5   :  { %6240 = vrcp.f32 %v1205_v55 }
 0x8a6   :  { %1211 = vrot.lane.b32.xlu1 %v6477_v18, %s6376_s10 }
 0x8aa   :  { %1213 = vrot.lane.b32.xlu0 %v6481_v19, %s6376_s10 }
 0x8af   :  { %v6241_v8 = vpop.eup %6240 }
 0x921   :  { %v1621_v56 = vpop.xlane.xlu0 %1620 }
 0x922   :  { %v1624_v58 = vmul.f32 0.03125, %v1621_v56  ;;  %v1618_v59 = vpop.xlane.xlu1 %1617 }
 0x923   :  { %v1623_v12 = vmul.f32 0.03125, %v1618_v59  ;;  %v96_v59 = vld [vmem:[%s7582_s1 + $0x8] sm:$0xff] }
 0x924   :  { %v6842_v63 = vsub.f32 %v1615_v15, %v1624_v58 }
 0x925   :  { %v1214_v28 = vpop.permute.xlu0 %1213  ;;  %v6855_v56 = vsub.f32 %v1614_v25, %v1623_v12  ;;  %v95_v25 = vld [vmem:[%s7582_s1] sm:$0xff]  ;;  %v4969_v12 = vld [vmem:[%s7586_s5 + $0x158] sm:$0xff] }
 0x926   :  { %v1212_v1 = vpop.permute.xlu1 %1211  ;;  %v1628_v43 = vmul.f32 %v6842_v63, %v6842_v63  ;;  %5517 = vmatprep.mubr.msk.f32.mxu1 %vm108_vm0, %v95_v25 }
 0x927   :  { %6242 = vrcp.f32 %v1212_v1  ;;  %v1627_v55 = vmul.f32 %v6855_v56, %v6855_v56 }
 0x928   :  { %v1632_v11 = vsel %vm108_vm0, %v1628_v43, 0.0  ;;  %6244 = vrcp.f32 %v1214_v28  ;;  %v4965_v28 = vld [vmem:[%s7586_s5 + $0x138] sm:$0xff]  ;;  %v97_v43 = vld [vmem:[%s7582_s1 + $0x10] sm:$0xff] }
 0x929   :  { %1633 = vadd.xlane.f32.xlu0 %v1632_v11  ;;  %6246 = vrcp.f32 %v1206_v7  ;;  %v1629_v58 = vsel %vm108_vm0, %v1627_v55, 0.0  ;;  %v5925_v1 = vpack.c.bf16 %v4965_v28, %v4964_v21  ;;  %v98_v7 = vld [vmem:[%s7582_s1 + $0x18] sm:$0xff]  ;;  %v4958_v11 = vld [vmem:[%s7586_s5 + $0x100] sm:$0xff]  ;;  %v5933_v55 = vpack.c.bf16 %v4969_v12, %v4968_v36  ;;  %v4931_v21 = vld [vmem:[%s7582_s1 + $0x28] sm:$0xff] }
 0x92a   :  { %v4932_v28 = vld [vmem:[%s7582_s1 + $0x30] sm:$0xff] }
 0x92b   :  { %5926 = vmatprep.subr.bf16.mxu1 %v5925_v1 }
 0x92c   :  { %5928 = vmatpush3.bf16.msra.mxu1 %v5925_v1  ;;  %v4933_v1 = vld [vmem:[%s7582_s1 + $0x38] sm:$0xff] }
 0x92f   :  { %5518 = vmatmul.mubr.msk.f32.vlgmr.msra.gmra.mrb[8].mxu1 %vm108_vm0, %v96_v59 }
 0x930   :  { %5520 = vmatprep.mubr.msk.f32.mxu1 %vm108_vm0, %v97_v43 }
 0x931   :  { %v6243_v23 = vpop.eup %6242 }
 0x932   :  { %v1218_v33 = vmul.f32 %v6243_v23, %v6241_v8  ;;  %v6245_v20 = vpop.eup %6244  ;;  %v4959_v8 = vld [vmem:[%s7586_s5 + $0x108] sm:$0xff]  ;;  %v4960_v23 = vld [vmem:[%s7586_s5 + $0x110] sm:$0xff] }
 0x933   :  { %v6247_v15 = vpop.eup %6246  ;;  %5521 = vmatmul.mubr.msk.f32.gmra.mrb[10].mxu1 %vm108_vm0, %v98_v7 }
 0x934   :  { %1229 = vperm.xlu1 %6200, %v1218_v33   ;;  %v1220_v6 = vmul.f32 %v6247_v15, %v6245_v20  ;;  %v5937_v20 = vpack.c.bf16 %v4959_v8, %v4958_v11 }
 0x936   :  { %5938 = vmatprep.subr.bf16.mxu1 %v5937_v20 }
 0x937   :  { %5940 = vmatpush3.bf16.msra.mxu1 %v5937_v20  ;;  %v6923_v20 = vsub.s32 1, %v6493_v26 }
 0x938   :  { %1234 = vperm.xlu1 %6200, %v1220_v6  }
 0x93c   :  { %6202 = vset.pattern.permute.xlu1 %v7591_v32 }
 0x93f   :  { %1244 = vperm.xlu0 %6201, %v1218_v33   ;;  %v4961_v33 = vld [vmem:[%s7586_s5 + $0x118] sm:$0xff] }
 0x940   :  { %v5941_v15 = vpack.c.bf16 %v4961_v33, %v4960_v23 }
 0x942   :  { %5942 = vmatprep.subr.bf16.mxu1 %v5941_v15 }
 0x943   :  { %6208 = vset.pattern.permute.xlu0 %v7593_v30  ;;  %5944 = vmatpush3.bf16.msra.mxu1 %v5941_v15 }
 0x95c   :  { %1630 = vadd.xlane.f32.xlu1 %v1629_v58  ;;  %v4930_v58 = vld [vmem:[%s7582_s1 + $0x20] sm:$0xff] }
 0x95d   :  { %5531 = vmatprep.mubr.msk.f32.mxu0 %vm108_vm0, %v4930_v58 }
 0x96d   :  { %1248 = vperm.xlu1 %6202, %v1220_v6   ;;  %v4966_v6 = vld [vmem:[%s7586_s5 + $0x140] sm:$0xff] }
 0x96e   :  { %v5929_v57 = vpack.c.bf16 %v4967_v9, %v4966_v6  ;;  %v6928_v6 = vld [vmem:[%s7589_s8] sm:$0xff]  ;;  %v6931_v9 = vsub.s32 6, %v6493_v26 }
 0x96f   :  { %v1646_v12 = vrot.slane %v6928_v6, %v6496_v27 }
 0x970   :  { %5930 = vmatprep.subr.bf16.mxu0 %v5929_v57  ;;  %v6936_v36 = vrot.slane %v48_v14, %v6931_v9  ;;  %v6955_v14 = vrot.slane %v6951_v10, %v6931_v9 }
 0x971   :  { %5932 = vmatpush3.bf16.msra.mxu0 %v5929_v57  ;;  %1936 = vrot.lane.b32.xlu1 %v6802_v49, %s6379_s3 }
 0x972   :  { %5934 = vmatprep.subr.bf16.mxu0 %v5933_v55 }
 0x975   :  { %5936 = vmatpush3.bf16.msra.mxu0 %v5933_v55  ;;  %v6943_v55 = vld [vmem:[%s7585_s4] sm:$0xff]  ;;  %1938 = vrot.lane.b32.xlu1 %v6797_v48, %s6379_s3 }
 0x976   :  { %v195_v58 = vrot.slane %v6943_v55, %v6923_v20 }
 0x978   :  { %5532 = vmatmul.mubr.msk.f32.vlgmr.msra.gmra.mrb[14].mxu0 %vm108_vm0, %v4931_v21 }
 0x979   :  { %5534 = vmatprep.mubr.msk.f32.mxu0 %vm108_vm0, %v4932_v28 }
 0x97c   :  { %5535 = vmatmul.mubr.msk.f32.gmra.mrb[16].mxu0 %vm108_vm0, %v4933_v1 }
 0x9b3   :  { %v1230_v59 = vpop.permute.xlu1 %1229 }
 0x9b6   :  { %v1634_v25 = vpop.xlane.xlu0 %1633 }
 0x9b7   :  { %v1636_v43 = vmul.f32 0.03125, %v1634_v25  ;;  %v1235_v11 = vpop.permute.xlu1 %1234 }
 0x9b9   :  { %v1638_v7 = vadd.f32 1e-05, %v1636_v43 }
 0x9bb   :  { %6248 = vrsqrt.f32 %v1638_v7  ;;  %v6960_v7 = vadd.f32 %v6661_v2, %v195_v58 }
 0x9bd   :  { %v1222_v2 = vmul.f32 %v6668_v35, %v6960_v7 }
 0x9be   :  { %v1245_v28 = vpop.permute.xlu0 %1244 }
 0x9bf   :  { %v1251_v25 = vmul.f32 %v1245_v28, %v6936_v36 }
 0x9c5   :  { %v6249_v15 = vpop.eup %6248 }
 0x9c6   :  { %v1642_v21 = vmul.f32 %v6249_v15, %v6842_v63  ;;  %v1652_v63 = vrot.slane %v6928_v6, %v6923_v20  ;;  %v1237_v15 = vmul.f32 %v1230_v59, %v6955_v14 }
 0x9c8   :  { %v1253_v30 = vadd.f32 %v1251_v25, %v1237_v15 }
 0x9e9   :  { %v1631_v8 = vpop.xlane.xlu1 %1630 }
 0x9ea   :  { %v1635_v23 = vmul.f32 0.03125, %v1631_v8  ;;  %v1238_v8 = vmul.f32 %v1235_v11, %v6955_v14 }
 0x9ec   :  { %v1637_v33 = vadd.f32 1e-05, %v1635_v23  ;;  %v1648_v23 = vmul.f32 %v1646_v12, %v1642_v21 }
 0x9ed   :  { %v1249_v57 = vpop.permute.xlu1 %1248 }
 0x9ee   :  { %6250 = vrsqrt.f32 %v1637_v33  ;;  %v1252_v1 = vmul.f32 %v1249_v57, %v6936_v36  ;;  %v6966_v33 = vadd.f32 %v6664_v17, %v195_v58  ;;  %v6972_v38 = vadd.f32 %v1652_v63, %v1648_v23 }
 0x9f0   :  { %v1254_v57 = vadd.f32 %v1252_v1, %v1238_v8  ;;  %v1221_v31 = vmul.f32 %v6673_v13, %v6966_v33 }
 0x9f2   :  { %v1256_v21 = vmul.f32 %v1254_v57, %v1222_v2  ;;  %v1255_v17 = vmul.f32 %v1253_v30, %v1221_v31  ;;  %v6996_v57 = vpop.permute.xlu1 %1936 }
 0x9f6   :  { %v6998_v49 = vpop.permute.xlu1 %1938 }
 0x9f8   :  { %v6251_v43 = vpop.eup %6250 }
 0x9f9   :  { %v1641_v32 = vmul.f32 %v6251_v43, %v6855_v56  ;;  %v1850_v56 = vadd.f32 %v6972_v38, %v6738_v42 }
 0x9fb   :  { %v1647_v28 = vmul.f32 %v1646_v12, %v1641_v32  ;;  %v1852_v32 = vadd.f32 %v1850_v56, %v1256_v21 }
 0x9fd   :  { %v6976_v11 = vadd.f32 %v1652_v63, %v1647_v28 }
 0x9ff   :  { %v1849_v59 = vadd.f32 %v6976_v11, %v6741_v45 }
 0xa01   :  { %v1851_v58 = vadd.f32 %v1849_v59, %v1255_v17 }
 0xa02   :  { %v5519_v35 = vpop.f32.mrb[8].mxu1 }
 0xa03   :  { %5545 = vmatprep.mubr.msk.f32.mxu1 %vm108_vm0, %v1851_v58  ;;  %v1733_v12 = vpop.f32.mrb[9].mxu1 }
 0xa04   :  { %5546 = vmatmul.mubr.msk.f32.vlgmr.msra.gmra.mrb[12].mxu1 %vm108_vm0, %v1852_v32  ;;  %v5945_v1 = vpack.c.bf16 %v5519_v35, %v1733_v12 }
 0xa06   :  { %5947 = vmatprep.subr.msk.bf16.mxu0 %vm6779_vm10, %v5945_v1  ;;  %v5522_v31 = vpop.f32.mrb[10].mxu1 }
 0xa07   :  { %5950 = vmatpush3.bf16.xpose.msk.msra.mxu0 %vm6779_vm10, %v5945_v1  ;;  %v1743_v13 = vpop.f32.mrb[11].mxu1 }
 0xa08   :  { %v5951_v45 = vpack.c.bf16 %v5522_v31, %v1743_v13 }
 0xa0a   :  { %5953 = vmatprep.subr.msk.bf16.mxu0 %vm6779_vm10, %v5951_v45 }
 0xa0f   :  { %5956 = vmatpush3.bf16.xpose.msk.msra.mxu0 %vm6779_vm10, %v5951_v45 }
 0xa4b   :  { %v5533_v42 = vpop.f32.mrb[14].mxu0 }
 0xa4c   :  { %v1830_v30 = vpop.f32.mrb[15].mxu0 }
 0xa4d   :  { %v5957_v25 = vpack.c.bf16 %v5533_v42, %v1830_v30  ;;  %v4970_v30 = vld [vmem:[%s7586_s5 + $0x160] sm:$0xff] }
 0xa4f   :  { %5958 = vmatprep.subr.bf16.mxu1 %v5957_v25  ;;  %v5536_v43 = vpop.f32.mrb[16].mxu0 }
 0xa50   :  { %5960 = vmatpush3.bf16.msra.mxu1 %v5957_v25  ;;  %v1840_v63 = vpop.f32.mrb[17].mxu0  ;;  %v4971_v25 = vld [vmem:[%s7586_s5 + $0x168] sm:$0xff] }
 0xa51   :  { %v5961_v8 = vpack.c.bf16 %v5536_v43, %v1840_v63  ;;  %v5965_v43 = vpack.c.bf16 %v4971_v25, %v4970_v30 }
 0xa53   :  { %5962 = vmatprep.subr.bf16.mxu1 %v5961_v8 }
 0xa54   :  { %5964 = vmatpush3.bf16.msra.mxu1 %v5961_v8 }
 0xa55   :  { %5966 = vmatprep.subr.bf16.mxu1 %v5965_v43 }
 0xad7   :  { %v5547_v23 = vpop.f32.mrb[12].mxu1 }
 0xad8   :  { %v1925_v15 = vpop.f32.mrb[13].mxu1 }
 0xad9   :  { %5556 = vmatprep.mubr.msk.f32.mxu0 %vm108_vm0, %v1925_v15 }
 0xada   :  { %5557 = vmatmul.mubr.msk.f32.vlgmr.msra.gmra.mrb[18].mxu0 %vm108_vm0, %v5547_v23 }
 0xbad   :  { %v5558_v48 = vpop.f32.mrb[18].mxu0 }
 0xbae   :  { %v2032_v28 = vadd.f32 %v5558_v48, %v6998_v49  ;;  %v2026_v2 = vpop.f32.mrb[19].mxu0  ;;  %v4972_v48 = vld [vmem:[%s7586_s5 + $0x170] sm:$0xff] }
 0xbaf   :  { %v2027_v21 = vadd.f32 %v2026_v2, %v6996_v57 }
 0xbb0   :  { %v2038_v17 = vsel %vm108_vm0, %v2032_v28, -inf }
 0xbb1   :  { %2039 = vmax.xlane.f32.xlu0 %v2038_v17  ;;  %v2035_v59 = vsel %vm108_vm0, %v2027_v21, -inf }
 0xbb2   :  { %2036 = vmax.xlane.f32.xlu1 %v2035_v59 }
 0xc3e   :  { %v2040_v56 = vpop.xlane.xlu0 %2039 }
 0xc3f   :  { %v2042_v58 = vsub.f32 %v2032_v28, %v2040_v56  ;;  %v2037_v32 = vpop.xlane.xlu1 %2036  ;;  %v4973_v28 = vld [vmem:[%s7586_s5 + $0x178] sm:$0xff] }
 0xc40   :  { %v2041_v35 = vsub.f32 %v2027_v21, %v2037_v32  ;;  %v5969_v17 = vpack.c.bf16 %v4973_v28, %v4972_v48  ;;  %v4944_v48 = vld [vmem:[%s7587_s6 + $0x50] sm:$0xff] }
 0xc41   :  { %v2045_v12 = vmul.f32 1.442695, %v2042_v58 }
 0xc42   :  { %v2043_v1 = vmul.f32 1.442695, %v2041_v35 }
 0xc44   :  { %6252 = vpow2.f32 %v2043_v1 }
 0xc45   :  { %6254 = vpow2.f32 %v2045_v12 }
 0xc4e   :  { %v6253_v31 = vpop.eup %6252 }
 0xc4f   :  { %v2047_v13 = vsel %vm108_vm0, %v6253_v31, 0.0  ;;  %v6255_v45 = vpop.eup %6254 }
 0xc50   :  { %2048 = vadd.xlane.f32.xlu1 %v2047_v13  ;;  %v2050_v42 = vsel %vm108_vm0, %v6255_v45, 0.0 }
 0xc54   :  { %2051 = vadd.xlane.f32.xlu1 %v2050_v42 }
 0xcdd   :  { %v2049_v63 = vpop.xlane.xlu1 %2048 }
 0xcde   :  { %6256 = vrcp.f32 %v2049_v63 }
 0xce1   :  { %v2052_v8 = vpop.xlane.xlu1 %2051 }
 0xce2   :  { %6258 = vrcp.f32 %v2052_v8 }
 0xce8   :  { %v6257_v23 = vpop.eup %6256 }
 0xce9   :  { %v2055_v15 = vmul.f32 %v6257_v23, %v6253_v31 }
 0xceb   :  { %5567 = vmatprep.mubr.msk.f32.mxu1 %vm108_vm0, %v2055_v15  ;;  %v4943_v15 = vld [vmem:[%s7587_s6 + $0x48] sm:$0xff] }
 0xcec   :  { %v6259_v2 = vpop.eup %6258 }
 0xced   :  { %v2056_v21 = vmul.f32 %v6259_v2, %v6255_v45  ;;  %v4945_v2 = vld [vmem:[%s7587_s6 + $0x58] sm:$0xff] }
 0xcef   :  { %5568 = vmatmul.mubr.msk.f32.vlgmr.msra.gmra.mrb[14].mxu1 %vm108_vm0, %v2056_v21  ;;  %v5977_v21 = vpack.c.bf16 %v4945_v2, %v4944_v48 }
 0xcf0   :  { %5968 = vmatpush3.bf16.msra.mxu1 %v5965_v43 }
 0xcf1   :  { %5970 = vmatprep.subr.bf16.mxu1 %v5969_v17 }
 0xcf4   :  { %5972 = vmatpush3.bf16.msra.mxu1 %v5969_v17  ;;  %v4946_v17 = vld [vmem:[%s7588_s7 + $0x40] sm:$0xff] }
 0xdc2   :  { %v5569_v59 = vpop.f32.mrb[14].mxu1 }
 0xdc3   :  { %v2129_v56 = vpop.f32.mrb[15].mxu1 }
 0xdc4   :  { %5578 = vmatprep.mubr.msk.f32.mxu1 %vm108_vm0, %v2129_v56  ;;  %v4948_v56 = vld [vmem:[%s7588_s7 + $0x50] sm:$0xff] }
 0xdc5   :  { %5579 = vmatmul.mubr.msk.f32.vlgmr.msra.gmra.mrb[16].mxu1 %vm108_vm0, %v5569_v59  ;;  %v4947_v59 = vld [vmem:[%s7588_s7 + $0x48] sm:$0xff] }
 0xe98   :  { %v5580_v58 = vpop.f32.mrb[16].mxu1 }
 0xe99   :  { %v2220_v32 = vadd.f32 %v5580_v58, %v6972_v38  ;;  %v2210_v35 = vpop.f32.mrb[17].mxu1  ;;  %v5981_v58 = vpack.c.bf16 %v4947_v59, %v4946_v17 }
 0xe9a   :  { %v2219_v12 = vadd.f32 %v2210_v35, %v6976_v11  ;;  %v4942_v11 = vld [vmem:[%s7587_s6 + $0x40] sm:$0xff] }
 0xe9b   :  { %v2224_v1 = vsel %vm108_vm0, %v2220_v32, 0.0  ;;  %v5973_v28 = vpack.c.bf16 %v4943_v15, %v4942_v11  ;;  %5982 = vmatprep.subr.bf16.mxu1 %v5981_v58 }
 0xe9c   :  { %2225 = vadd.xlane.f32.xlu0 %v2224_v1  ;;  %v2221_v31 = vsel %vm108_vm0, %v2219_v12, 0.0  ;;  %v4951_v1 = vld [vmem:[%s7588_s7 + $0x68] sm:$0xff]  ;;  %5984 = vmatpush3.bf16.msra.mxu1 %v5981_v58  ;;  %v2262_v58 = vrot.slane %v6928_v6, %v6931_v9 }
 0xe9d   :  { %2222 = vadd.xlane.f32.xlu1 %v2221_v31  ;;  %5974 = vmatprep.subr.bf16.mxu0 %v5973_v28 }
 0xe9e   :  { %5976 = vmatpush3.bf16.msra.mxu0 %v5973_v28  ;;  %v2256_v28 = vrot.slane %v6928_v6, %v6731_v4 }
 0xe9f   :  { %5978 = vmatprep.subr.bf16.mxu0 %v5977_v21 }
 0xea2   :  { %5980 = vmatpush3.bf16.msra.mxu0 %v5977_v21 }
 0xf29   :  { %v2226_v13 = vpop.xlane.xlu0 %2225 }
 0xf2a   :  { %v2228_v45 = vmul.f32 0.03125, %v2226_v13  ;;  %v2223_v42 = vpop.xlane.xlu1 %2222 }
 0xf2b   :  { %v2227_v30 = vmul.f32 0.03125, %v2223_v42 }
 0xf2c   :  { %v2230_v25 = vsub.f32 %v2220_v32, %v2228_v45  ;;  %v4949_v32 = vld [vmem:[%s7588_s7 + $0x58] sm:$0xff] }
 0xf2d   :  { %v2229_v43 = vsub.f32 %v2219_v12, %v2227_v30  ;;  %v5985_v35 = vpack.c.bf16 %v4949_v32, %v4948_v56  ;;  %v4950_v12 = vld [vmem:[%s7588_s7 + $0x60] sm:$0xff]  ;;  %v4952_v56 = vld [vmem:[%s7588_s7 + $0x70] sm:$0xff] }
 0xf2e   :  { %v2232_v63 = vmul.f32 %v2230_v25, %v2230_v25  ;;  %v5989_v31 = vpack.c.bf16 %v4951_v1, %v4950_v12 }
 0xf2f   :  { %v2231_v8 = vmul.f32 %v2229_v43, %v2229_v43  ;;  %5986 = vmatprep.subr.bf16.mxu1 %v5985_v35 }
 0xf30   :  { %v2236_v23 = vsel %vm108_vm0, %v2232_v63, 0.0  ;;  %5988 = vmatpush3.bf16.msra.mxu1 %v5985_v35 }
 0xf31   :  { %2237 = vadd.xlane.f32.xlu0 %v2236_v23  ;;  %v2233_v38 = vsel %vm108_vm0, %v2231_v8, 0.0  ;;  %5990 = vmatprep.subr.bf16.mxu1 %v5989_v31  ;;  %v2250_v23 = vrot.slane %v6928_v6, %v6696_v60 }
 0xf32   :  { %2234 = vadd.xlane.f32.xlu1 %v2233_v38 }
 0xf34   :  { %5992 = vmatpush3.bf16.msra.mxu1 %v5989_v31 }
 0xfbe   :  { %v2238_v13 = vpop.xlane.xlu0 %2237 }
 0xfbf   :  { %v2240_v45 = vmul.f32 0.03125, %v2238_v13  ;;  %v2235_v42 = vpop.xlane.xlu1 %2234 }
 0xfc0   :  { %v2239_v30 = vmul.f32 0.03125, %v2235_v42 }
 0xfc1   :  { %v2242_v63 = vadd.f32 1e-05, %v2240_v45  ;;  %v7075_v45 = vsub.s32 7, %v6493_v26 }
 0xfc2   :  { %v2241_v8 = vadd.f32 1e-05, %v2239_v30 }
 0xfc3   :  { %6260 = vrsqrt.f32 %v2242_v63  ;;  %v2432_v42 = vrot.slane %v6928_v6, %v7075_v45 }
 0xfc4   :  { %6262 = vrsqrt.f32 %v2241_v8 }
 0xfcd   :  { %v6261_v38 = vpop.eup %6260 }
 0xfce   :  { %v6263_v11 = vpop.eup %6262  ;;  %v2246_v15 = vmul.f32 %v6261_v38, %v2230_v25  ;;  %v4953_v25 = vld [vmem:[%s7588_s7 + $0x78] sm:$0xff] }
 0xfcf   :  { %v2245_v48 = vmul.f32 %v6263_v11, %v2229_v43  ;;  %v5993_v43 = vpack.c.bf16 %v4953_v25, %v4952_v56 }
 0xfd0   :  { %v2252_v2 = vmul.f32 %v2250_v23, %v2246_v15 }
 0xfd1   :  { %v2251_v21 = vmul.f32 %v2250_v23, %v2245_v48  ;;  %5994 = vmatprep.subr.bf16.mxu1 %v5993_v43 }
 0xfd2   :  { %v2258_v59 = vadd.f32 %v2256_v28, %v2252_v2  ;;  %5996 = vmatpush3.bf16.msra.mxu1 %v5993_v43 }
 0xfd3   :  { %v2257_v17 = vadd.f32 %v2256_v28, %v2251_v21 }
 0xfd5   :  { %5589 = vmatprep.mubr.msk.f32.mxu0 %vm108_vm0, %v2257_v17 }
 0xfd6   :  { %5590 = vmatmul.mubr.msk.f32.vlgmr.msra.gmra.mrb[20].mxu0 %vm108_vm0, %v2258_v59 }
0x10a9   :  { %v5591_v32 = vpop.f32.mrb[20].mxu0 }
0x10aa   :  { %v2341_v35 = vadd.f32 %v5591_v32, %v2262_v58  ;;  %v2335_v12 = vpop.f32.mrb[21].mxu0  ;;  %v4914_v32 = vld [vmem:[%s7586_s5 + $0x60] sm:$0xff] }
0x10ab   :  { %v2336_v1 = vadd.f32 %v2335_v12, %v2262_v58  ;;  %v4916_v12 = vld [vmem:[%s7586_s5 + $0x70] sm:$0xff] }
0x10ac   :  { %v2345_v13 = vmax.f32 %v2341_v35, 0.0  ;;  %v4915_v35 = vld [vmem:[%s7586_s5 + $0x68] sm:$0xff] }
0x10ad   :  { %v2344_v31 = vmax.f32 %v2336_v1, 0.0  ;;  %v5997_v1 = vpack.c.bf16 %v4915_v35, %v4914_v32 }
0x10af   :  { %5608 = vmatprep.mubr.msk.f32.mxu1 %vm854_vm9, %v2344_v31  ;;  %v4917_v31 = vld [vmem:[%s7586_s5 + $0x78] sm:$0xff]  ;;  %5998 = vmatprep.subr.bf16.mxu0 %v5997_v1 }
0x10b0   :  { %5609 = vmatmul.mubr.msk.f32.vlgmr.msra.gmra.mrb[18].mxu1 %vm854_vm9, %v2345_v13  ;;  %v6001_v13 = vpack.c.bf16 %v4917_v31, %v4916_v12  ;;  %6000 = vmatpush3.bf16.msra.mxu0 %v5997_v1  ;;  %v4926_v12 = vld [vmem:[%s7586_s5 + $0xc0] sm:$0xff]  ;;  %v4927_v1 = vld [vmem:[%s7586_s5 + $0xc8] sm:$0xff] }
0x10b1   :  { %v6013_v31 = vpack.c.bf16 %v4927_v1, %v4926_v12 }
0x10b2   :  { %6002 = vmatprep.subr.bf16.mxu0 %v6001_v13 }
0x10b3   :  { %6014 = vmatprep.subr.bf16.mxu1 %v6013_v31 }
0x10b4   :  { %6004 = vmatpush3.bf16.msra.mxu0 %v6001_v13  ;;  %6016 = vmatpush3.bf16.msra.mxu1 %v6013_v31  ;;  %v2476_v13 = vrot.slane %v6943_v55, %v6931_v9 }
0x1183   :  { %v5610_v30 = vpop.f32.mrb[18].mxu1 }
0x1184   :  { %v2428_v63 = vadd.f32 %v5610_v30, %v2258_v59  ;;  %v2418_v8 = vpop.f32.mrb[19].mxu1  ;;  %v4919_v30 = vld [vmem:[%s7586_s5 + $0x88] sm:$0xff] }
0x1185   :  { %v2427_v23 = vadd.f32 %v2418_v8, %v2257_v17 }
0x1186   :  { %v2434_v38 = vadd.f32 %v2432_v42, %v2428_v63 }
0x1187   :  { %v2433_v11 = vadd.f32 %v2432_v42, %v2427_v23  ;;  %v4918_v42 = vld [vmem:[%s7586_s5 + $0x80] sm:$0xff] }
0x1188   :  { %v2438_v15 = vsel %vm108_vm0, %v2434_v38, 0.0  ;;  %v6005_v63 = vpack.c.bf16 %v4919_v30, %v4918_v42 }
0x1189   :  { %2439 = vadd.xlane.f32.xlu0 %v2438_v15  ;;  %v2435_v48 = vsel %vm108_vm0, %v2433_v11, 0.0 }
0x118a   :  { %2436 = vadd.xlane.f32.xlu1 %v2435_v48  ;;  %6006 = vmatprep.subr.bf16.mxu0 %v6005_v63 }
0x1216   :  { %v2440_v28 = vpop.xlane.xlu0 %2439 }
0x1217   :  { %v2442_v2 = vmul.f32 0.03125, %v2440_v28  ;;  %v2437_v21 = vpop.xlane.xlu1 %2436  ;;  %v2464_v28 = vrot.slane %v6928_v6, %v6558_v51 }
0x1218   :  { %v2441_v26 = vmul.f32 0.03125, %v2437_v21 }
0x1219   :  { %v2444_v56 = vsub.f32 %v2434_v38, %v2442_v2 }
0x121a   :  { %v2443_v25 = vsub.f32 %v2433_v11, %v2441_v26 }
0x121b   :  { %v2446_v43 = vmul.f32 %v2444_v56, %v2444_v56 }
0x121c   :  { %v2445_v58 = vmul.f32 %v2443_v25, %v2443_v25 }
0x121d   :  { %v2450_v59 = vsel %vm108_vm0, %v2446_v43, 0.0 }
0x121e   :  { %2451 = vadd.xlane.f32.xlu0 %v2450_v59  ;;  %v2447_v17 = vsel %vm108_vm0, %v2445_v58, 0.0  ;;  %v2470_v58 = vrot.slane %v6928_v6, %v6649_v37  ;;  %v4921_v6 = vld [vmem:[%s7586_s5 + $0x98] sm:$0xff] }
0x121f   :  { %2448 = vadd.xlane.f32.xlu1 %v2447_v17 }
0x12ab   :  { %v2452_v8 = vpop.xlane.xlu0 %2451 }
0x12ac   :  { %v2454_v23 = vmul.f32 0.03125, %v2452_v8  ;;  %v2449_v38 = vpop.xlane.xlu1 %2448 }
0x12ad   :  { %v2453_v11 = vmul.f32 0.03125, %v2449_v38 }
0x12ae   :  { %v2456_v15 = vadd.f32 1e-05, %v2454_v23 }
0x12af   :  { %v2455_v48 = vadd.f32 1e-05, %v2453_v11  ;;  %v4928_v11 = vld [vmem:[%s7586_s5 + $0xd0] sm:$0xff] }
0x12b0   :  { %6264 = vrsqrt.f32 %v2456_v15  ;;  %v4929_v15 = vld [vmem:[%s7586_s5 + $0xd8] sm:$0xff] }
0x12b1   :  { %6266 = vrsqrt.f32 %v2455_v48  ;;  %v6017_v48 = vpack.c.bf16 %v4929_v15, %v4928_v11 }
0x12b3   :  { %6018 = vmatprep.subr.bf16.mxu1 %v6017_v48 }
0x12b4   :  { %6020 = vmatpush3.bf16.msra.mxu1 %v6017_v48 }
0x12b5   :  { %6022 = vmatprep.subr.bf16.mxu1 %v6516_v39 }
0x12ba   :  { %v6265_v2 = vpop.eup %6264 }
0x12bb   :  { %v6267_v21 = vpop.eup %6266  ;;  %v2460_v26 = vmul.f32 %v6265_v2, %v2444_v56  ;;  %v4920_v56 = vld [vmem:[%s7586_s5 + $0x90] sm:$0xff]  ;;  %v2732_v2 = vmax.f32 %v6477_v18, 0.0 }
0x12bc   :  { %v2459_v43 = vmul.f32 %v6267_v21, %v2443_v25  ;;  %v6009_v25 = vpack.c.bf16 %v4921_v6, %v4920_v56 }
0x12bd   :  { %v2466_v59 = vmul.f32 %v2464_v28, %v2460_v26  ;;  %v2734_v26 = vmin.f32 %v2732_v2, 1.0 }
0x12be   :  { %v2465_v17 = vmul.f32 %v2464_v28, %v2459_v43  ;;  %v2733_v28 = vmax.f32 %v6481_v19, 0.0 }
0x12bf   :  { %v7107_v35 = vadd.f32 %v2470_v58, %v2466_v59  ;;  %v2738_v43 = vsub.f32 1.0, %v2734_v26  ;;  %v2736_v56 = vmax.f32 %v2734_v26, 0.001 }
0x12c0   :  { %v7105_v32 = vadd.f32 %v2470_v58, %v2465_v17  ;;  %v2735_v21 = vmin.f32 %v2733_v28, 1.0 }
0x12c1   :  { %v2740_v59 = vmax.f32 %v2738_v43, 0.001 }
0x12c2   :  { %5619 = vmatprep.mubr.msk.f32.mxu0 %vm108_vm0, %v7105_v32  ;;  %v2737_v17 = vmax.f32 %v2735_v21, 0.001 }
0x12c3   :  { %5620 = vmatmul.mubr.msk.f32.vlgmr.msra.gmra.mrb[22].mxu0 %vm108_vm0, %v7107_v35 }
0x12c4   :  { %6008 = vmatpush3.bf16.msra.mxu0 %v6005_v63 }
0x12c5   :  { %6010 = vmatprep.subr.bf16.mxu0 %v6009_v25 }
0x12c8   :  { %6012 = vmatpush3.bf16.msra.mxu0 %v6009_v25 }
0x12c9   :  { %5644 = vmatprep.subr.msk.mxu0 %vm337_vm1, %v6951_v10 }
0x1396   :  { %v5621_v42 = vpop.f32.mrb[22].mxu0 }
0x1397   :  { %v2555_v30 = vadd.f32 %v5621_v42, %v2476_v13  ;;  %v2549_v63 = vpop.f32.mrb[23].mxu0  ;;  %v2563_v42 = vrot.slane %v6943_v55, %v7075_v45  ;;  %v5041_v55 = vld [vmem:[%s7585_s4 + $0x8] ss:$0 sm:$0xff] }
0x1398   :  { %v2550_v8 = vadd.f32 %v2549_v63, %v2476_v13 }
0x1399   :  { %v2559_v38 = vmax.f32 %v2555_v30, 0.0 }
0x139a   :  { %v2558_v23 = vmax.f32 %v2550_v8, 0.0 }
0x139c   :  { %5630 = vmatprep.mubr.msk.f32.mxu0 %vm108_vm0, %v2558_v23 }
0x139d   :  { %5631 = vmatmul.mubr.msk.f32.vlgmr.msra.gmra.mrb[24].mxu0 %vm108_vm0, %v2559_v38 }
0x139e   :  { %5645 = vmatpush3.msk.msra.mxu0 %vm337_vm1, %v6951_v10  ;;  %v2739_v10 = vsub.f32 1.0, %v2735_v21 }
0x139f   :  { %6038 = vmatprep.subr.bf16.mxu0 %v6553_v50 }
0x13a0   :  { %v2741_v58 = vmax.f32 %v2739_v10, 0.001 }
0x13a2   :  { %6268 = vrcp.f32 %v2741_v58 }
0x13a3   :  { %6270 = vrcp.f32 %v2740_v59 }
0x13ac   :  { %v6269_v6 = vpop.eup %6268 }
0x13ad   :  { %v6271_v25 = vpop.eup %6270  ;;  %v2745_v12 = vmul.f32 %v6269_v6, %v2737_v17 }
0x13ae   :  { %v2743_v1 = vmul.f32 %v6271_v25, %v2736_v56 }
0x13af   :  { %6272 = vlog2.f32 %v2745_v12 }
0x13b0   :  { %6274 = vlog2.f32 %v2743_v1 }
0x13b9   :  { %v6273_v18 = vpop.eup %6272 }
0x13ba   :  { %v6275_v19 = vpop.eup %6274  ;;  %v2749_v31 = vmul.f32 0.6931472, %v6273_v18 }
0x13bb   :  { %v2747_v13 = vmul.f32 0.6931472, %v6275_v19 }
0x13bc   :  { %2754 = vrot.lane.b32.xlu0 %v2749_v31, %s6368_s26 }
0x13bd   :  { %2752 = vrot.lane.b32.xlu1 %v2747_v13, %s6368_s26 }
0x142f   :  { %v2753_v2 = vpop.permute.xlu1 %2752 }
0x1470   :  { %v5632_v30 = vpop.f32.mrb[24].mxu0 }
0x1471   :  { %v2642_v63 = vadd.f32 %v5632_v30, %v2563_v42  ;;  %v2636_v8 = vpop.f32.mrb[25].mxu0 }
0x1472   :  { %v2637_v23 = vadd.f32 %v2636_v8, %v2563_v42 }
0x1473   :  { %v2646_v11 = vmax.f32 %v2642_v63, 0.0 }
0x1474   :  { %v2645_v38 = vmax.f32 %v2637_v23, 0.0 }
0x1476   :  { %5641 = vmatprep.mubr.msk.f32.mxu1 %vm108_vm0, %v2645_v38 }
0x1477   :  { %5642 = vmatmul.mubr.msk.f32.vlgmr.msra.gmra.mrb[20].mxu1 %vm108_vm0, %v2646_v11 }
0x1478   :  { %6024 = vmatpush3.bf16.msra.mxu1 %v6516_v39  ;;  %v2755_v39 = vpop.permute.xlu0 %2754 }
0x1479   :  { %6026 = vmatprep.subr.bf16.mxu1 %v6521_v41 }
0x147c   :  { %6028 = vmatpush3.bf16.msra.mxu1 %v6521_v41 }
0x147d   :  { %6030 = vmatprep.subr.bf16.mxu1 %v6532_v44 }
0x1480   :  { %6032 = vmatpush3.bf16.msra.mxu1 %v6532_v44 }
0x1481   :  { %6034 = vmatprep.subr.bf16.mxu1 %v6543_v47 }
0x1484   :  { %6036 = vmatpush3.bf16.msra.mxu1 %v6543_v47 }
0x1485   :  { %6054 = vmatprep.subr.bf16.mxu1 %v6762_v0 }
0x154a   :  { %v5643_v15 = vpop.f32.mrb[20].mxu1 }
0x154b   :  { %v2729_v48 = vadd.f32 %v5643_v15, %v5041_v55  ;;  %v2723_v28 = vpop.f32.mrb[21].mxu1 }
0x154c   :  { %v2724_v41 = vadd.f32 %v5041_v55, %v2723_v28 }
0x154d   :  { %v2759_v21 = vadd.f32 %v2755_v39, %v2729_v48 }
0x154e   :  { %v2758_v26 = vadd.f32 %v2753_v2, %v2724_v41 }
0x154f   :  { %v5045_v10 = vmul.f32 -1.442695, %v2759_v21 }
0x1550   :  { %v5044_v44 = vmul.f32 -1.442695, %v2758_v26 }
0x1551   :  { %6276 = vpow2.f32 %v5045_v10 }
0x1552   :  { %6278 = vpow2.f32 %v5044_v44 }
0x155b   :  { %v6277_v43 = vpop.eup %6276 }
0x155c   :  { %v6279_v47 = vpop.eup %6278  ;;  %v2767_v58 = vadd.f32 1.0, %v6277_v43 }
0x155d   :  { %v2766_v59 = vadd.f32 1.0, %v6279_v47  ;;  %v7604_v47 = vmov 920167782  }
0x155f   :  { %6280 = vrcp.f32 %v2766_v59 }
0x1560   :  { %6282 = vrcp.f32 %v2767_v58 }
0x1569   :  { %v7160_v17 = vpop.eup %6280 }
0x156a   :  { %v7162_v56 = vpop.eup %6282  ;;  %5646 = vmatprep.mubr.msk.f32.mxu0 %vm332_vm2, %v7160_v17 }
0x156b   :  { %5647 = vmatmul.mubr.msk.f32.vlgmr.msra.gmra.mrb[26].mxu0 %vm332_vm2, %v7162_v56 }
0x156c   :  { %6040 = vmatpush3.bf16.msra.mxu0 %v6553_v50 }
0x156d   :  { %6042 = vmatprep.subr.bf16.mxu0 %v6685_v46 }
0x1570   :  { %6044 = vmatpush3.bf16.msra.mxu0 %v6685_v46 }
0x163e   :  { %v5648_v6 = vpop.f32.mrb[26].mxu0 }
0x163f   :  { %v7172_v25 = vmul.f32 %v5648_v6, %v6562_v52  ;;  %v2895_v12 = vpop.f32.mrb[27].mxu0 }
0x1640   :  { %v7175_v1 = vmul.f32 %v2895_v12, %v6562_v52 }
0x1641   :  { %v7599_v18 = vand.u32 2147483647, %v7172_v25  ;;  %v3013_v19 = vand.u32 2139095040, %v7172_v25 }
0x1642   :  { %v2909_v31 = vand.u32 2139095040, %v7175_v1  ;;  %v7598_v46 = vand.u32 2147483647, %v7175_v1 }
0x1643   :  { %v3014_v13 = vshrl.u32 %v3013_v19, 23  ;;  %v3017_v50 = vand.u32 8388607, %v7599_v18 }
0x1644   :  { %v2910_v42 = vshrl.u32 %v2909_v31, 23  ;;  %v2913_v52 = vand.u32 8388607, %v7598_v46 }
0x1645   :  { %v5094_v30 = vadd.s32 4294967169, %v3014_v13  ;;  %v3018_v23 = vor.u32 8388608, %v3017_v50  ;;  %v7605_v13 = vmov 1326507024  }
0x1646   :  { %v5090_v63 = vadd.s32 4294967169, %v2910_v42  ;;  %v2914_v28 = vor.u32 8388608, %v2913_v52 }
0x1647   :  { %v3020_v8 = vadd.s32 1, %v5094_v30  ;;  %v7185_v48 = vshll.u32 %v3018_v23, 8 }
0x1648   :  { %v2916_v38 = vadd.s32 1, %v5090_v63 }
0x1649   :  { %vm3021_vm1 = vcmp.gt.s32.totalorder %v3020_v8, 0 }
0x164a   :  { %v3022_v11 = vsel %vm3021_vm1, %v3020_v8, 0  ;;  %vm2917_vm2 = vcmp.gt.s32.totalorder %v2916_v38, 0 }
0x164b   :  { %v3023_v55 = vshrl.u32 %v3022_v11, 5  ;;  %v3024_v15 = vand.u32 31, %v3022_v11  ;;  %v2918_v39 = vsel %vm2917_vm2, %v2916_v38, 0 }
0x164c   :  { %v7188_v21 = vshrl.u32 %v2918_v39, 5  ;;  %v2920_v26 = vand.u32 31, %v2918_v39 }
0x164d   :  { %v3025_v2 = vsub.s32 32, %v3024_v15  ;;  %v3027_v41 = vshll.u32 %v6369_v16, %v3024_v15  ;;  %v3030_v10 = vshll.u32 %v6370_v22, %v3024_v15  ;;  %v3033_v44 = vshll.u32 %v6371_v24, %v3024_v15 }
0x164e   :  { %v3036_v43 = vshll.u32 %v7600_v29, %v3024_v15  ;;  %v3039_v58 = vshll.u32 %v7604_v47, %v3024_v15  ;;  %vm3042_vm12 = vcmp.lt.s32.totalorder %v3023_v55, 1  ;;  %vm3043_vm13 = vcmp.lt.s32.totalorder %v3023_v55, 2 }
0x164f   :  { %v3028_v59 = vshrl.u32 %v6370_v22, %v3025_v2  ;;  %v3031_v6 = vshrl.u32 %v6371_v24, %v3025_v2  ;;  %v3034_v12 = vshrl.u32 %v7600_v29, %v3025_v2  ;;  %v3026_v19 = vshrl.u32 %v6369_v16, %v3025_v2 }
0x1650   :  { %v3037_v31 = vshrl.u32 %v7604_v47, %v3025_v2  ;;  %v3040_v50 = vshrl.u32 %v7605_v13, %v3025_v2  ;;  %v2921_v8 = vsub.s32 32, %v2920_v26  ;;  %vm3044_vm14 = vcmp.lt.s32.totalorder %v3023_v55, 3 }
0x1651   :  { %v3029_v42 = vor.u32 %v3028_v59, %v3027_v41  ;;  %v3032_v30 = vor.u32 %v3031_v6, %v3030_v10  ;;  %v3035_v63 = vor.u32 %v3034_v12, %v3033_v44  ;;  %vm3045_vm15 = vcmp.lt.s32.totalorder %v3023_v55, 4 }
0x1652   :  { %v3038_v23 = vor.u32 %v3037_v31, %v3036_v43  ;;  %v3041_v52 = vor.u32 %v3040_v50, %v3039_v58  ;;  %v2923_v2 = vshll.u32 %v6369_v16, %v2920_v26  ;;  %v2924_v44 = vshrl.u32 %v6370_v22, %v2921_v8 }
0x1653   :  { %v3046_v38 = vsel %vm3042_vm12, %v3026_v19, %v3029_v42  ;;  %v3047_v11 = vsel %vm3045_vm15, %v3035_v63, 2102212464  ;;  %v3050_v15 = vsel %vm3042_vm12, %v3029_v42, %v3032_v30  ;;  %v3054_v39 = vsel %vm3042_vm12, %v3032_v30, %v3035_v63 }
0x1654   :  { %v3048_v46 = vsel %vm3044_vm14, %v3032_v30, %v3047_v11  ;;  %v3051_v18 = vsel %vm3045_vm15, %v3038_v23, 920167782  ;;  %v3055_v29 = vsel %vm3045_vm15, %v3041_v52, 1326507024  ;;  %v2926_v43 = vshll.u32 %v6370_v22, %v2920_v26 }
0x1655   :  { %v3052_v41 = vsel %vm3044_vm14, %v3035_v63, %v3051_v18  ;;  %v3056_v10 = vsel %vm3044_vm14, %v3038_v23, %v3055_v29  ;;  %v3049_v58 = vsel %vm3043_vm13, %v3046_v38, %v3048_v46  ;;  %v2927_v12 = vshrl.u32 %v6371_v24, %v2921_v8 }
0x1656   :  { %v3053_v59 = vsel %vm3043_vm13, %v3050_v15, %v3052_v41  ;;  %v3057_v6 = vsel %vm3043_vm13, %v3054_v39, %v3056_v10  ;;  %v2925_v29 = vor.u32 %v2924_v44, %v2923_v2  ;;  %v2929_v22 = vshll.u32 %v6371_v24, %v2920_v26 }
0x1657   :  { %v7211_v19 = vmul.u32.u64.low %v7185_v48, %v3057_v6  ;;  %v7212_v31 = vmul.u32.u64.high %v7185_v48, %v3057_v6, %v7211_v19  ;;  %v7215_v50 = vmul.u32.u64.low %v7185_v48, %v3053_v59  ;;  %v7216_v18 = vmul.u32.u64.high %v7185_v48, %v3053_v59, %v7215_v50 }
0x1658   :  { %v2928_v42 = vor.u32 %v2927_v12, %v2926_v43  ;;  %v7606_v30 = vmov 2102212464   ;;  %v2933_v55 = vshrl.u32 %v7604_v47, %v2921_v8  ;;  %v2936_v23 = vshrl.u32 %v7605_v13, %v2921_v8 }
0x1659   :  { %v2930_v46 = vshrl.u32 %v7606_v30, %v2921_v8  ;;  %v2932_v63 = vshll.u32 %v7606_v30, %v2920_v26  ;;  %v2954_v52 = vshll.u32 %v2914_v28, 8  ;;  %v3065_v38 = vmul.u32 %v7185_v48, %v3049_v58 }
0x165a   :  { %v2922_v11 = vshrl.u32 %v6369_v16, %v2921_v8  ;;  %v2935_v39 = vshll.u32 %v7604_v47, %v2920_v26  ;;  %vm3067_vm3 = vc.u32 %v7212_v31, %v7215_v50  ;;  %v3068_v24 = vadd.s32 1, %v7216_v18 }
0x165b   :  { %v2931_v15 = vor.u32 %v2930_v46, %v2929_v22  ;;  %v2934_v2 = vor.u32 %v2933_v55, %v2932_v63  ;;  %vm2938_vm4 = vcmp.lt.s32.totalorder %v7188_v21, 1  ;;  %vm2940_vm5 = vcmp.lt.s32.totalorder %v7188_v21, 3 }
0x165c   :  { %v2937_v41 = vor.u32 %v2936_v23, %v2935_v39  ;;  %vm2941_vm6 = vcmp.lt.s32.totalorder %v7188_v21, 4  ;;  %v2946_v28 = vsel %vm2938_vm4, %v2925_v29, %v2928_v42  ;;  %v3069_v48 = vsel %vm3067_vm3, %v3068_v24, %v7216_v18 }
0x165d   :  { %v2943_v13 = vsel %vm2941_vm6, %v2931_v15, 2102212464  ;;  %v2947_v16 = vsel %vm2941_vm6, %v2934_v2, 920167782  ;;  %v2950_v8 = vsel %vm2938_vm4, %v2928_v42, %v2931_v15  ;;  %v3070_v10 = vadd.s32 %v3069_v48, %v3065_v38 }
0x165e   :  { %vm2939_vm7 = vcmp.lt.s32.totalorder %v7188_v21, 2  ;;  %v2948_v26 = vsel %vm2940_vm5, %v2931_v15, %v2947_v16  ;;  %v2951_v47 = vsel %vm2941_vm6, %v2937_v41, 1326507024  ;;  %v2942_v44 = vsel %vm2938_vm4, %v2922_v11, %v2925_v29 }
0x165f   :  { %v2944_v43 = vsel %vm2940_vm5, %v2928_v42, %v2943_v13  ;;  %v2949_v58 = vsel %vm2939_vm7, %v2946_v28, %v2948_v26  ;;  %v2952_v59 = vsel %vm2940_vm5, %v2934_v2, %v2951_v47  ;;  %v3071_v6 = vadd.s32 536870912, %v3070_v10 }
0x1660   :  { %v2953_v12 = vsel %vm2939_vm7, %v2950_v8, %v2952_v59  ;;  %v7233_v19 = vmul.u32.u64.low %v2954_v52, %v2949_v58  ;;  %v7234_v22 = vmul.u32.u64.high %v2954_v52, %v2949_v58, %v7233_v19  ;;  %v2945_v63 = vsel %vm2939_vm7, %v2942_v44, %v2944_v43 }
0x1661   :  { %v7236_v30 = vmul.u32.u64.low %v2954_v52, %v2953_v12  ;;  %v7237_v46 = vmul.u32.u64.high %v2954_v52, %v2953_v12, %v7236_v30  ;;  %v3072_v18 = vshrl.u32 %v3071_v6, 30  ;;  %v2961_v21 = vmul.u32 %v2954_v52, %v2945_v63 }
0x1662   :  { %v2964_v23 = vadd.s32 1, %v7234_v22  ;;  %v3066_v8 = vadd.s32 %v7215_v50, %v7212_v31  ;;  %vm3012_vm12 = vcmp.lt.s32.totalorder %v7172_v25, 0  ;;  %vm2908_vm14 = vcmp.lt.s32.totalorder %v7175_v1, 0 }
0x1663   :  { %v3073_v55 = vshll.u32 %v3072_v18, 30  ;;  %vm2963_vm8 = vc.u32 %v7237_v46, %v7233_v19  ;;  %v3096_v50 = vsub.s32 4, %v3072_v18 }
0x1664   :  { %v2965_v42 = vsel %vm2963_vm8, %v2964_v23, %v7234_v22  ;;  %v2962_v23 = vadd.s32 %v7233_v19, %v7237_v46 }
0x1665   :  { %v3074_v29 = vsub.s32 %v3070_v10, %v3073_v55  ;;  %v2966_v38 = vadd.s32 %v2965_v42, %v2961_v21 }
0x1667   :  { %v3076_v11 = vsub.s32 0, %v3074_v29  ;;  %v2967_v15 = vadd.s32 536870912, %v2966_v38 }
0x1669   :  { %v5095_v39 = vmin.u32 %v3076_v11, %v3074_v29  ;;  %v2968_v24 = vshrl.u32 %v2967_v15, 30 }
0x166b   :  { %v3078_v2 = vclz %v5095_v39  ;;  %v2969_v41 = vshll.u32 %v2968_v24, 30 }
0x166d   :  { %v5096_v28 = vadd.s32 4294967294, %v3078_v2  ;;  %v2970_v48 = vsub.s32 %v2966_v38, %v2969_v41  ;;  %v7607_v41 = vand.u32 2147483647, %v7172_v25 }
0x166f   :  { %vm5097_vm1 = vcmp.lt.s32.totalorder %v5096_v28, 0  ;;  %v2972_v16 = vsub.s32 0, %v2970_v48  ;;  %vm3011_vm13 = vcmp.le.f32.partialorder %v7607_v41, 0.7853982 }
0x1670   :  { %v3081_v13 = vsel %vm5097_vm1, 0, %v5096_v28  ;;  %vm3102_vm1 = vweird.f32 %v7172_v25 }
0x1671   :  { %v3082_v52 = vsub.s32 32, %v3081_v13  ;;  %v3086_v26 = vsub.s32 4294967266, %v3081_v13  ;;  %v5091_v47 = vmin.u32 %v2972_v16, %v2970_v48  ;;  %v3083_v10 = vshll.u32 %v3074_v29, %v3081_v13 }
0x1672   :  { %v3097_v13 = vsel %vm3012_vm12, %v3096_v50, %v3072_v18 }
0x1673   :  { %v3084_v44 = vshrl.u32 %v3066_v8, %v3082_v52  ;;  %v3087_v43 = vadd.s32 127, %v3086_v26  ;;  %v2974_v58 = vclz %v5091_v47  ;;  %v3099_v46 = vsel %vm3011_vm13, 0, %v3097_v13 }
0x1674   :  { %v2992_v26 = vsub.s32 4, %v2968_v24  ;;  %v3103_v47 = vadd.s32 3, %v3099_v46 }
0x1675   :  { %v3085_v59 = vor.u32 %v3084_v44, %v3083_v10  ;;  %v3088_v6 = vshll.u32 %v3087_v43, 23  ;;  %v5092_v12 = vadd.s32 4294967294, %v2974_v58  ;;  %v7608_v44 = vand.u32 2147483647, %v7175_v1 }
0x1676   :  { %v2993_v58 = vsel %vm2908_vm14, %v2992_v26, %v2968_v24  ;;  %v3104_v18 = vand.u32 3, %v3103_v47 }
0x1677   :  { %v3089_v22 = vor.u32 4788187, %v3088_v6  ;;  %vm5093_vm2 = vcmp.lt.s32.totalorder %v5092_v12, 0  ;;  %v3092_v63 = vcvt.s32.f32 %v3085_v59  ;;  %vm2907_vm15 = vcmp.le.f32.partialorder %v7608_v44, 0.7853982 }
0x1678   :  { %v2977_v55 = vsel %vm5093_vm2, 0, %v5092_v12  ;;  %v3312_v59 = vand.u32 3, %v3099_v46  ;;  %vm3109_vm3 = vcmp.eq.s32.totalorder %v3104_v18, 2  ;;  %vm3106_vm6 = vcmp.eq.s32.totalorder %v3104_v18, 0 }
0x1679   :  { %v3090_v30 = vand.u32 2147483647, %v3089_v22  ;;  %v2978_v21 = vsub.s32 32, %v2977_v55  ;;  %v2982_v42 = vsub.s32 4294967266, %v2977_v55  ;;  %v2979_v38 = vshll.u32 %v2970_v48, %v2977_v55 }
0x167a   :  { %v2995_v22 = vsel %vm2907_vm15, 0, %v2993_v58  ;;  %vm3314_vm4 = vcmp.eq.s32.totalorder %v3312_v59, 0  ;;  %vm3317_vm5 = vcmp.eq.s32.totalorder %v3312_v59, 2  ;;  %vm3105_vm7 = vcmp.lt.s32.totalorder %v3104_v18, 2 }
0x167b   :  { %v3093_v31 = vmul.f32 %v3092_v63, %v3090_v30  ;;  %v2980_v11 = vshrl.u32 %v2962_v23, %v2978_v21  ;;  %v2983_v29 = vadd.s32 127, %v2982_v42  ;;  %v2999_v42 = vadd.s32 3, %v2995_v22 }
0x167c   :  { %vm3313_vm8 = vcmp.lt.s32.totalorder %v3312_v59, 2 }
0x167d   :  { %v3094_v15 = vxor.u32 2147483648, %v3093_v31  ;;  %v2981_v39 = vor.u32 %v2980_v11, %v2979_v38  ;;  %v2984_v2 = vshll.u32 %v2983_v29, 23 }
0x167f   :  { %v3095_v28 = vsel %vm3012_vm12, %v3094_v15, %v3093_v31  ;;  %v2985_v19 = vor.u32 4788187, %v2984_v2  ;;  %v2988_v48 = vcvt.s32.f32 %v2981_v39  ;;  %v3000_v15 = vand.u32 3, %v2999_v42  ;;  %v5048_v42 = vld [vmem:[%s7587_s6 + $0x70] sm:$0xff] }
0x1680   :  { %v3098_v16 = vsel %vm3011_vm13, %v7172_v25, %v3095_v28  ;;  %v3209_v39 = vand.u32 3, %v2995_v22  ;;  %v5053_v22 = vld [vmem:[%s7587_s6 + $0x98] sm:$0xff] }
0x1681   :  { %6284 = vcosq.f32 %v3098_v16  ;;  %v2986_v8 = vand.u32 2147483647, %v2985_v19  ;;  %vm3005_vm2 = vcmp.eq.s32.totalorder %v3000_v15, 2  ;;  %vm3002_vm13 = vcmp.eq.s32.totalorder %v3000_v15, 0 }
0x1682   :  { %6286 = vsinq.f32 %v3098_v16  ;;  %vm3214_vm12 = vcmp.eq.s32.totalorder %v3209_v39, 2 }
0x1683   :  { %v2989_v52 = vmul.f32 %v2988_v48, %v2986_v8 }
0x1685   :  { %v2990_v10 = vxor.u32 2147483648, %v2989_v52 }
0x1687   :  { %v2991_v43 = vsel %vm2908_vm14, %v2990_v10, %v2989_v52  ;;  %vm3211_vm14 = vcmp.eq.s32.totalorder %v3209_v39, 0 }
0x1688   :  { %v2994_v6 = vsel %vm2907_vm15, %v7175_v1, %v2991_v43  ;;  %vm3001_vm15 = vcmp.lt.s32.totalorder %v3000_v15, 2 }
0x1689   :  { %6288 = vcosq.f32 %v2994_v6 }
0x168a   :  { %6290 = vsinq.f32 %v2994_v6 }
0x168b   :  { %v6285_v12 = vpop.eup %6284 }
0x168c   :  { %v6287_v30 = vpop.eup %6286  ;;  %v3110_v63 = vxor.u32 2147483648, %v6285_v12 }
0x168d   :  { %v3107_v55 = vxor.u32 2147483648, %v6287_v30 }
0x168e   :  { %v3111_v23 = vsel %vm3109_vm3, %v3110_v63, %v6287_v30  ;;  %v3319_v21 = vsel %vm3317_vm5, %v3110_v63, %v6287_v30  ;;  %vm3210_vm3 = vcmp.lt.s32.totalorder %v3209_v39, 2 }
0x168f   :  { %v3108_v24 = vsel %vm3106_vm6, %v6285_v12, %v3107_v55  ;;  %v3316_v31 = vsel %vm3314_vm4, %v6285_v12, %v3107_v55  ;;  %vm2998_vm4 = vweird.f32 %v7175_v1 }
0x1690   :  { %v3112_v50 = vsel %vm3105_vm7, %v3108_v24, %v3111_v23  ;;  %v3320_v38 = vsel %vm3313_vm8, %v3316_v31, %v3319_v21  ;;  %v5046_v23 = vld [vmem:[%s7587_s6 + $0x60] sm:$0xff]  ;;  %v5049_v24 = vld [vmem:[%s7587_s6 + $0x78] sm:$0xff] }
0x1691   :  { %v3113_v11 = vsel %vm3102_vm1, nan, %v3112_v50  ;;  %v3321_v29 = vsel %vm3102_vm1, nan, %v3320_v38  ;;  %v6065_v31 = vpack.c.bf16 %v5049_v24, %v5048_v42 }
0x1692   :  { %v3115_v2 = vmul.f32 %v3113_v11, %v6654_v61  ;;  %v3323_v41 = vmul.f32 %v3321_v29, %v6659_v62 }
0x1693   :  { %v6289_v28 = vpop.eup %6288 }
0x1694   :  { %v7255_v13 = vadd.f32 %v3323_v41, %v3115_v2  ;;  %v6291_v16 = vpop.eup %6290  ;;  %v3006_v19 = vxor.u32 2147483648, %v6289_v28 }
0x1695   :  { %v3003_v46 = vxor.u32 2147483648, %v6291_v16 }
0x1696   :  { %v3007_v25 = vsel %vm3005_vm2, %v3006_v19, %v6291_v16  ;;  %v3216_v8 = vsel %vm3214_vm12, %v3006_v19, %v6291_v16 }
0x1697   :  { %v3004_v48 = vsel %vm3002_vm13, %v6289_v28, %v3003_v46  ;;  %v3213_v52 = vsel %vm3211_vm14, %v6289_v28, %v3003_v46 }
0x1698   :  { %v3008_v26 = vsel %vm3001_vm15, %v3004_v48, %v3007_v25  ;;  %v3217_v47 = vsel %vm3210_vm3, %v3213_v52, %v3216_v8 }
0x1699   :  { %v3009_v10 = vsel %vm2998_vm4, nan, %v3008_v26  ;;  %v3218_v44 = vsel %vm2998_vm4, nan, %v3217_v47 }
0x169a   :  { %v3114_v43 = vmul.f32 %v3009_v10, %v6654_v61  ;;  %v3322_v58 = vmul.f32 %v3218_v44, %v6659_v62  ;;  %v5050_v61 = vld [vmem:[%s7587_s6 + $0x80] sm:$0xff]  ;;  %v5051_v62 = vld [vmem:[%s7587_s6 + $0x88] sm:$0xff] }
0x169b   :  { %v6045_v1 = vpack.c.bf16 %v5051_v62, %v5050_v61 }
0x169c   :  { %v7260_v18 = vadd.f32 %v3322_v58, %v3114_v43 }
0x169d   :  { %6046 = vmatprep.subr.bf16.mxu0 %v6045_v1 }
0x169e   :  { %5665 = vmatprep.mubr.msk.f32.mxu1 %vm854_vm9, %v7260_v18 }
0x169f   :  { %5666 = vmatmul.mubr.msk.f32.vlgmr.msra.gmra.mrb[22].mxu1 %vm854_vm9, %v7255_v13 }
0x16a0   :  { %6056 = vmatpush3.bf16.msra.mxu1 %v6762_v0 }
0x16a1   :  { %6058 = vmatprep.subr.bf16.mxu1 %v6767_v3 }
0x16a4   :  { %6060 = vmatpush3.bf16.msra.mxu1 %v6767_v3  ;;  %v5052_v3 = vld [vmem:[%s7587_s6 + $0x90] sm:$0xff] }
0x16a5   :  { %v6049_v55 = vpack.c.bf16 %v5053_v22, %v5052_v3 }
0x1772   :  { %v5667_v59 = vpop.f32.mrb[22].mxu1 }
0x1773   :  { %v3404_v6 = vadd.f32 %v5667_v59, %v6700_v40  ;;  %v3398_v12 = vpop.f32.mrb[23].mxu1 }
0x1774   :  { %v3399_v0 = vadd.f32 %v3398_v12, %v6700_v40  ;;  %v5047_v40 = vld [vmem:[%s7587_s6 + $0x68] sm:$0xff]  ;;  %v6336_v12 = vld [vmem:[%s7583_s2] sm:$0xff] }
0x1775   :  { %v3408_v63 = vmax.f32 %v3404_v6, 0.0  ;;  %v6061_v21 = vpack.c.bf16 %v5047_v40, %v5046_v23 }
0x1776   :  { %v3407_v30 = vmax.f32 %v3399_v0, 0.0 }
0x1778   :  { %5676 = vmatprep.mubr.msk.f32.mxu0 %vm108_vm0, %v3407_v30 }
0x1779   :  { %5677 = vmatmul.mubr.msk.f32.vlgmr.msra.gmra.mrb[28].mxu0 %vm108_vm0, %v3408_v63 }
0x177a   :  { %6048 = vmatpush3.bf16.msra.mxu0 %v6045_v1  ;;  %5687 = vmatprep.mubr.msk.f32.mxu0 %vm108_vm0, %v7105_v32  ;;  %v6335_v1 = vld [vmem:[%s7583_s2 + $0x8] sm:$0xff] }
0x177b   :  { %6050 = vmatprep.subr.bf16.mxu0 %v6049_v55 }
0x177e   :  { %6052 = vmatpush3.bf16.msra.mxu0 %v6049_v55 }
0x177f   :  { %6062 = vmatprep.subr.bf16.mxu0 %v6061_v21 }
0x1781   :  { %5688 = vmatmul.mubr.msk.f32.vlgmr.msra.gmra.mrb[30].mxu0 %vm108_vm0, %v7107_v35 }
0x1782   :  { %6064 = vmatpush3.bf16.msra.mxu0 %v6061_v21 }
0x1783   :  { %6066 = vmatprep.subr.bf16.mxu0 %v6065_v31 }
0x1786   :  { %6068 = vmatpush3.bf16.msra.mxu0 %v6065_v31 }
0x184c   :  { %v5678_v50 = vpop.f32.mrb[28].mxu0 }
0x184d   :  { %v7302_v38 = vadd.f32 %v5678_v50, %v6735_v54  ;;  %v3481_v11 = vpop.f32.mrb[29].mxu0 }
0x184e   :  { %v7305_v29 = vadd.f32 %v3481_v11, %v6735_v54  ;;  %v5066_v11 = vld [vmem:[%s7586_s5 + $0x180] sm:$0xff] }
0x184f   :  { %v3705_v39 = vadd.f32 %v7302_v38, %v7107_v35 }
0x1850   :  { %v3704_v15 = vadd.f32 %v7305_v29, %v7105_v32 }
0x1852   :  { %5709 = vmatprep.mubr.msk.f32.mxu0 %vm108_vm0, %v3704_v15  ;;  %v5067_v15 = vld [vmem:[%s7586_s5 + $0x188] sm:$0xff] }
0x1853   :  { %5710 = vmatmul.mubr.msk.f32.vlgmr.msra.gmra.mrb[32].mxu0 %vm108_vm0, %v3705_v39  ;;  %v6079_v39 = vpack.c.bf16 %v5067_v15, %v5066_v11  ;;  %v5074_v11 = vld [vmem:[%s7586_s5 + $0x1c0] sm:$0xff]  ;;  %v5075_v15 = vld [vmem:[%s7586_s5 + $0x1c8] sm:$0xff] }
0x1854   :  { %v5689_v2 = vpop.f32.mrb[30].mxu0 }
0x1855   :  { %v3566_v41 = vadd.f32 %v5689_v2, %v6749_v53  ;;  %v3556_v28 = vpop.f32.mrb[31].mxu0 }
0x1856   :  { %v6075_v16 = vpack.c.bf16 %v5689_v2, %v3556_v28  ;;  %v3565_v25 = vadd.f32 %v3556_v28, %v6749_v53  ;;  %v6334_v53 = vld [vmem:[%s7582_s1] sm:$0xff] }
0x1857   :  { %v3568_v19 = vmax.f32 %v3566_v41, 0.0 }
0x1858   :  { %6076 = vmatprep.subr.bf16.mxu0 %v6075_v16  ;;  %v3567_v48 = vmax.f32 %v3565_v25, 0.0 }
0x1859   :  { %3573 = vrot.lane.b32.xlu0 %v3568_v19, %s6368_s26  ;;  %6078 = vmatpush3.bf16.msra.mxu0 %v6075_v16  ;;  %v5068_v16 = vld [vmem:[%s7586_s5 + $0x190] sm:$0xff]  ;;  %v5069_v19 = vld [vmem:[%s7586_s5 + $0x198] sm:$0xff] }
0x185a   :  { %6080 = vmatprep.subr.bf16.mxu0 %v6079_v39 }
0x18cb   :  { %v3574_v43 = vpop.permute.xlu0 %3573 }
0x1926   :  { %v5711_v54 = vpop.f32.mrb[32].mxu0 }
0x1927   :  { %v3778_v46 = vpop.f32.mrb[33].mxu0 }
0x1928   :  { %v6203_v8 = vpack.i.bf16 %v5711_v54, %v3778_v46 }
0x192a   :  { %6204 = vrot.lane.b32.xlu1 %v6203_v8, %s6368_s26  ;;  %v6083_v8 = vpack.c.bf16 %v5069_v19, %v5068_v16  ;;  %v5076_v19 = vld [vmem:[%s7586_s5 + $0x1d0] sm:$0xff] }
0x192e   :  { %3571 = vrot.lane.b32.xlu1 %v3567_v48, %s6368_s26 }
0x199c   :  { %v6205_v52 = vpop.permute.xlu1 %6204 }
0x199d   :  { %v6207_v26 = vunpack.i.h.bf16 %v6205_v52  ;;  %v6206_v47 = vunpack.i.l.bf16 %v6205_v52 }
0x199f   :  { %v6069_v10 = vpack.c.bf16 %v6207_v26, %v6206_v47  ;;  %v6337_v26 = vld [vmem:[%s7582_s1 + $0x20] sm:$0xff] }
0x19a0   :  { %v3572_v44 = vpop.permute.xlu1 %3571 }
0x19a1   :  { %5698 = vmatprep.mubr.msk.f32.mxu1 %vm108_vm0, %v3572_v44  ;;  %6071 = vmatprep.subr.msk.bf16.mxu1 %vm6779_vm10, %v6069_v10 }
0x19a2   :  { %5699 = vmatmul.mubr.msk.f32.vlgmr.msra.gmra.mrb[24].mxu1 %vm108_vm0, %v3574_v43 }
0x19a3   :  { %6074 = vmatpush3.bf16.xpose.msk.msra.mxu1 %vm6779_vm10, %v6069_v10  ;;  %5716 = vmatprep.mubr.msk.f32.mxu1 %vm108_vm0, %v3778_v46 }
0x19aa   :  { %5717 = vmatmul.mubr.msk.f32.vlgmr.msra.gmra.mrb[26].mxu1 %vm108_vm0, %v5711_v54 }
0x19ab   :  { %5745 = vmatprep.mubr.msk.f32.mxu1 %vm108_vm0, %v6334_v53 }
0x1a75   :  { %v7330_v58 = vpop.f32.mrb[24].mxu1 }
0x1a76   :  { %v3645_v61 = vpop.f32.mrb[25].mxu1 }
0x1a7d   :  { %v5718_v62 = vpop.f32.mrb[26].mxu1 }
0x1a7e   :  { %v3873_v59 = vadd.f32 %v6335_v1, %v5718_v62  ;;  %v3867_v6 = vpop.f32.mrb[27].mxu1  ;;  %v3646_v1 = vadd.f32 %v3645_v61, %v6836_v5 }
0x1a7f   :  { %v3868_v0 = vadd.f32 %v6336_v12, %v3867_v6 }
0x1a80   :  { %v3879_v3 = vsel %vm1429_vm11, %v3873_v59, -inf }
0x1a81   :  { %3880 = vmax.xlane.f32.xlu0 %v3879_v3  ;;  %v3876_v22 = vsel %vm1429_vm11, %v3868_v0, -inf }
0x1a82   :  { %3877 = vmax.xlane.f32.xlu1 %v3876_v22 }
0x1b0e   :  { %v3881_v30 = vpop.xlane.xlu0 %3880 }
0x1b0f   :  { %v3883_v63 = vsub.f32 %v3873_v59, %v3881_v30  ;;  %v3878_v55 = vpop.xlane.xlu1 %3877  ;;  %v5114_v59 = vmul.f32 -1.442695, %v3646_v1  ;;  %v5080_v1 = vld [vmem:[%s7586_s5 + $0x1f0] sm:$0xff] }
0x1b10   :  { %v3882_v23 = vsub.f32 %v3868_v0, %v3878_v55 }
0x1b11   :  { %v3886_v40 = vmul.f32 1.442695, %v3883_v63 }
0x1b12   :  { %v3884_v21 = vmul.f32 1.442695, %v3882_v23 }
0x1b13   :  { %6292 = vpow2.f32 %v3886_v40 }
0x1b14   :  { %6294 = vpow2.f32 %v3884_v21 }
0x1b1d   :  { %v6293_v42 = vpop.eup %6292 }
0x1b1e   :  { %v6295_v24 = vpop.eup %6294  ;;  %v3891_v31 = vsel %vm1429_vm11, %v6293_v42, 0.0 }
0x1b1f   :  { %3892 = vadd.xlane.f32.xlu1 %v3891_v31  ;;  %v3888_v50 = vsel %vm1429_vm11, %v6295_v24, 0.0  ;;  %v7609_v31 = vmov 1  }
0x1b20   :  { %3889 = vadd.xlane.f32.xlu0 %v3888_v50  ;;  %v7610_v50 = vmov 0  }
0x1bac   :  { %v3893_v2 = vpop.xlane.xlu1 %3892 }
0x1bad   :  { %6296 = vrcp.f32 %v3893_v2  ;;  %v3890_v41 = vpop.xlane.xlu0 %3889 }
0x1bae   :  { %6298 = vrcp.f32 %v3890_v41 }
0x1baf   :  { %6300 = vpow2.f32 %v5114_v59 }
0x1bb7   :  { %v6297_v28 = vpop.eup %6296 }
0x1bb8   :  { %v6299_v54 = vpop.eup %6298  ;;  %v3897_v25 = vmul.f32 %v6297_v28, %v6293_v42 }
0x1bb9   :  { %v3896_v46 = vmul.f32 %v6299_v54, %v6295_v24  ;;  %v5077_v54 = vld [vmem:[%s7586_s5 + $0x1d8] sm:$0xff] }
0x1bbb   :  { %5723 = vmatprep.mubr.msk.f32.mxu0 %vm1429_vm11, %v3896_v46  ;;  %v6091_v46 = vpack.c.bf16 %v5077_v54, %v5076_v19 }
0x1bbc   :  { %5724 = vmatmul.mubr.msk.f32.vlgmr.msra.gmra.mrb[34].mxu0 %vm1429_vm11, %v3897_v25  ;;  %v6338_v25 = vld [vmem:[%s7582_s1 + $0x8] sm:$0xff] }
0x1bbd   :  { %6082 = vmatpush3.bf16.msra.mxu0 %v6079_v39  ;;  %v6087_v39 = vpack.c.bf16 %v5075_v15, %v5074_v11 }
0x1bbe   :  { %6084 = vmatprep.subr.bf16.mxu0 %v6083_v8 }
0x1bbf   :  { %6088 = vmatprep.subr.bf16.mxu1 %v6087_v39 }
0x1bc0   :  { %6090 = vmatpush3.bf16.msra.mxu1 %v6087_v39 }
0x1bc1   :  { %6086 = vmatpush3.bf16.msra.mxu0 %v6083_v8  ;;  %6092 = vmatprep.subr.bf16.mxu1 %v6091_v46  ;;  %v6339_v8 = vld [vmem:[%s7582_s1 + $0x10] sm:$0xff] }
0x1bc4   :  { %6094 = vmatpush3.bf16.msra.mxu1 %v6091_v46 }
0x1bc7   :  { %5746 = vmatmul.mubr.msk.f32.vlgmr.msra.gmra.mrb[28].mxu1 %vm108_vm0, %v6338_v25  ;;  %v3676_v25 = vmul.f32 %v7260_v18, %v6966_v33 }
0x1bc8   :  { %5748 = vmatprep.mubr.msk.f32.mxu1 %vm108_vm0, %v6339_v8 }
0x1c8f   :  { %v5725_v48 = vpop.f32.mrb[34].mxu0 }
0x1c90   :  { %v3970_v52 = vpop.f32.mrb[35].mxu0 }
0x1c91   :  { %5734 = vmatprep.mubr.msk.f32.mxu0 %vm108_vm0, %v3970_v52  ;;  %v5070_v52 = vld [vmem:[%s7586_s5 + $0x1a0] sm:$0xff] }
0x1c92   :  { %5735 = vmatmul.mubr.msk.f32.vlgmr.msra.gmra.mrb[36].mxu0 %vm108_vm0, %v5725_v48  ;;  %v6340_v48 = vld [vmem:[%s7582_s1 + $0x18] sm:$0xff] }
0x1c93   :  { %5759 = vmatprep.mubr.msk.f32.mxu0 %vm108_vm0, %v6337_v26  ;;  %5749 = vmatmul.mubr.msk.f32.gmra.mrb[30].mxu1 %vm108_vm0, %v6340_v48  ;;  %v5071_v26 = vld [vmem:[%s7586_s5 + $0x1a8] sm:$0xff] }
0x1d65   :  { %v5736_v47 = vpop.f32.mrb[36].mxu0 }
0x1d66   :  { %v4061_v10 = vadd.f32 %v5736_v47, %v7107_v35  ;;  %v4051_v44 = vpop.f32.mrb[37].mxu0  ;;  %v3651_v35 = vadd.f32 %v7330_v58, %v6836_v5  ;;  %v5072_v47 = vld [vmem:[%s7586_s5 + $0x1b0] sm:$0xff] }
0x1d67   :  { %v4060_v43 = vadd.f32 %v4051_v44, %v7105_v32  ;;  %v6301_v32 = vpop.eup %6300  ;;  %v5073_v44 = vld [vmem:[%s7586_s5 + $0x1b8] sm:$0xff] }
0x1d68   :  { %v4065_v53 = vsel %vm108_vm0, %v4061_v10, 0.0  ;;  %v5115_v6 = vmul.f32 -1.442695, %v3651_v35  ;;  %v3660_v0 = vadd.f32 1.0, %v6301_v32  ;;  %v5081_v35 = vld [vmem:[%s7586_s5 + $0x1f8] sm:$0xff]  ;;  %v6341_v32 = vld [vmem:[%s7582_s1 + $0x28] sm:$0xff] }
0x1d69   :  { %4066 = vadd.xlane.f32.xlu1 %v4065_v53  ;;  %v4062_v62 = vsel %vm108_vm0, %v4060_v43, 0.0  ;;  %v5078_v53 = vld [vmem:[%s7586_s5 + $0x1e0] sm:$0xff] }
0x1d6a   :  { %4063 = vadd.xlane.f32.xlu0 %v4062_v62  ;;  %6302 = vpow2.f32 %v5115_v6  ;;  %v5079_v62 = vld [vmem:[%s7586_s5 + $0x1e8] sm:$0xff]  ;;  %v6099_v6 = vpack.c.bf16 %v5081_v35, %v5080_v1 }
0x1d6b   :  { %6304 = vrcp.f32 %v3660_v0  ;;  %v6095_v59 = vpack.c.bf16 %v5079_v62, %v5078_v53  ;;  %v6343_v0 = vld [vmem:[%s7582_s1 + $0x38] sm:$0xff] }
0x1d6d   :  { %6096 = vmatprep.subr.bf16.mxu0 %v6095_v59 }
0x1d6e   :  { %6098 = vmatpush3.bf16.msra.mxu0 %v6095_v59 }
0x1d6f   :  { %6100 = vmatprep.subr.bf16.mxu0 %v6099_v6 }
0x1d72   :  { %6102 = vmatpush3.bf16.msra.mxu0 %v6099_v6 }
0x1d74   :  { %v6303_v63 = vpop.eup %6302 }
0x1d75   :  { %v3661_v55 = vadd.f32 1.0, %v6303_v63  ;;  %v6305_v58 = vpop.eup %6304  ;;  %5760 = vmatmul.mubr.msk.f32.vlgmr.msra.gmra.mrb[38].mxu0 %vm108_vm0, %v6341_v32 }
0x1d7a   :  { %3668 = vrot.lane.b32.xlu1 %v7162_v56, %s6380_s14 }
0x1d80   :  { %3666 = vrot.lane.b32.xlu0 %v7160_v17, %s6380_s14 }
0x1df6   :  { %v4067_v12 = vpop.xlane.xlu1 %4066 }
0x1df7   :  { %v4069_v3 = vmul.f32 0.03125, %v4067_v12  ;;  %v4064_v22 = vpop.xlane.xlu0 %4063  ;;  %v6342_v12 = vld [vmem:[%s7582_s1 + $0x30] sm:$0xff] }
0x1df8   :  { %v4068_v2 = vmul.f32 0.03125, %v4064_v22  ;;  %5762 = vmatprep.mubr.msk.f32.mxu0 %vm108_vm0, %v6342_v12 }
0x1df9   :  { %v7371_v30 = vsub.f32 %v4061_v10, %v4069_v3  ;;  %v6103_v10 = vpack.c.bf16 %v5071_v26, %v5070_v52  ;;  %5763 = vmatmul.mubr.msk.f32.gmra.mrb[40].mxu0 %vm108_vm0, %v6343_v0 }
0x1dfa   :  { %v3669_v61 = vpop.permute.xlu1 %3668  ;;  %v7385_v41 = vsub.f32 %v4060_v43, %v4068_v2  ;;  %v6107_v43 = vpack.c.bf16 %v5073_v44, %v5072_v47 }
0x1dfb   :  { %v3667_v56 = vpop.permute.xlu0 %3666  ;;  %v4073_v17 = vmul.f32 %v7371_v30, %v7371_v30  ;;  %6104 = vmatprep.subr.bf16.mxu1 %v6103_v10 }
0x1dfc   :  { %6306 = vrcp.f32 %v3667_v56  ;;  %v4072_v28 = vmul.f32 %v7385_v41, %v7385_v41  ;;  %6106 = vmatpush3.bf16.msra.mxu1 %v6103_v10 }
0x1dfd   :  { %v4077_v5 = vsel %vm108_vm0, %v4073_v17, 0.0  ;;  %6308 = vrcp.f32 %v3669_v61  ;;  %6108 = vmatprep.subr.bf16.mxu1 %v6107_v43 }
0x1dfe   :  { %4078 = vadd.xlane.f32.xlu0 %v4077_v5  ;;  %6310 = vrcp.f32 %v3661_v55  ;;  %v4074_v16 = vsel %vm108_vm0, %v4072_v28, 0.0 }
0x1e00   :  { %6110 = vmatpush3.bf16.msra.mxu1 %v6107_v43 }
0x1e06   :  { %v6307_v23 = vpop.eup %6306 }
0x1e07   :  { %v3673_v40 = vmul.f32 %v6307_v23, %v6305_v58  ;;  %v6309_v21 = vpop.eup %6308  ;;  %v7447_v23 = vld [vmem:[%s7589_s8 + $0x8] sm:$0xff] }
0x1e08   :  { %v6311_v42 = vpop.eup %6310  ;;  %v4097_v15 = vrot.slane %v7447_v23, %v6923_v20 }
0x1e09   :  { %3691 = vperm.xlu1 %6202, %v3673_v40   ;;  %v3675_v24 = vmul.f32 %v6311_v42, %v6309_v21  ;;  %v4091_v21 = vrot.slane %v7447_v23, %v6496_v27 }
0x1e0d   :  { %6209 = vset.pattern.permute.xlu1 %v7609_v31 }
0x1e0e   :  { %3685 = vperm.xlu1 %6209, %v3675_v24  }
0x1e12   :  { %6210 = vset.pattern.permute.xlu1 %v7610_v50 }
0x1e14   :  { %3680 = vperm.xlu0 %6208, %v3673_v40  }
0x1e18   :  { %6211 = vset.pattern.permute.xlu0 %v7610_v50 }
0x1e32   :  { %4075 = vadd.xlane.f32.xlu1 %v4074_v16 }
0x1e43   :  { %3695 = vperm.xlu1 %6210, %v3675_v24  }
0x1e88   :  { %v3692_v22 = vpop.permute.xlu1 %3691 }
0x1e89   :  { %v3698_v28 = vmul.f32 %v3692_v22, %v6936_v36 }
0x1e8b   :  { %v4079_v3 = vpop.xlane.xlu0 %4078 }
0x1e8c   :  { %v4081_v63 = vmul.f32 0.03125, %v4079_v3 }
0x1e8d   :  { %v3686_v17 = vpop.permute.xlu1 %3685 }
0x1e8e   :  { %v4083_v56 = vadd.f32 1e-05, %v4081_v63  ;;  %v3689_v39 = vmul.f32 %v3686_v17, %v6955_v14 }
0x1e90   :  { %6312 = vrsqrt.f32 %v4083_v56 }
0x1e93   :  { %v3681_v24 = vpop.permute.xlu0 %3680 }
0x1e94   :  { %v3688_v50 = vmul.f32 %v3681_v24, %v6955_v14 }
0x1e96   :  { %v3700_v27 = vadd.f32 %v3698_v28, %v3688_v50  ;;  %v5084_v50 = vld [vmem:[%s7586_s5 + $0x210] sm:$0xff] }
0x1e98   :  { %v3702_v14 = vmul.f32 %v3700_v27, %v3676_v25 }
0x1e9a   :  { %v6313_v58 = vpop.eup %6312 }
0x1e9b   :  { %v4087_v42 = vmul.f32 %v6313_v58, %v7371_v30  ;;  %v3677_v30 = vmul.f32 %v7255_v13, %v6960_v7  ;;  %v5747_v7 = vpop.f32.mrb[28].mxu1  ;;  %v5083_v58 = vld [vmem:[%s7586_s5 + $0x208] sm:$0xff] }
0x1e9c   :  { %v4166_v13 = vpop.f32.mrb[29].mxu1 }
0x1e9d   :  { %v4093_v2 = vmul.f32 %v4091_v21, %v4087_v42  ;;  %v6111_v26 = vpack.c.bf16 %v5747_v7, %v4166_v13  ;;  %v5750_v33 = vpop.f32.mrb[30].mxu1 }
0x1e9e   :  { %v4176_v18 = vpop.f32.mrb[31].mxu1 }
0x1e9f   :  { %v7461_v46 = vadd.f32 %v4097_v15, %v4093_v2  ;;  %6113 = vmatprep.subr.msk.bf16.mxu0 %vm6779_vm10, %v6111_v26 }
0x1ea0   :  { %6116 = vmatpush3.bf16.xpose.msk.msra.mxu0 %vm6779_vm10, %v6111_v26 }
0x1ebf   :  { %v4076_v61 = vpop.xlane.xlu1 %4075 }
0x1ec0   :  { %v4080_v55 = vmul.f32 0.03125, %v4076_v61 }
0x1ec2   :  { %v4082_v5 = vadd.f32 1e-05, %v4080_v55 }
0x1ec3   :  { %v3696_v40 = vpop.permute.xlu1 %3695 }
0x1ec4   :  { %6314 = vrsqrt.f32 %v4082_v5  ;;  %v3699_v31 = vmul.f32 %v3696_v40, %v6936_v36  ;;  %v5082_v5 = vld [vmem:[%s7586_s5 + $0x200] sm:$0xff] }
0x1ec5   :  { %v6131_v40 = vpack.c.bf16 %v5083_v58, %v5082_v5 }
0x1ec6   :  { %v3701_v19 = vadd.f32 %v3699_v31, %v3689_v39 }
0x1ec8   :  { %v3703_v20 = vmul.f32 %v3701_v19, %v3677_v30 }
0x1ece   :  { %v6315_v11 = vpop.eup %6314 }
0x1ecf   :  { %v4086_v16 = vmul.f32 %v6315_v11, %v7385_v41  ;;  %v4271_v41 = vadd.f32 %v7461_v46, %v7302_v38  ;;  %v5761_v38 = vpop.f32.mrb[38].mxu0  ;;  %v5085_v11 = vld [vmem:[%s7586_s5 + $0x218] sm:$0xff] }
0x1ed0   :  { %v4251_v47 = vpop.f32.mrb[39].mxu0  ;;  %v6135_v2 = vpack.c.bf16 %v5085_v11, %v5084_v50 }
0x1ed1   :  { %v4092_v54 = vmul.f32 %v4091_v21, %v4086_v16  ;;  %v4273_v52 = vadd.f32 %v4271_v41, %v3703_v20  ;;  %v6123_v10 = vpack.c.bf16 %v5761_v38, %v4251_v47  ;;  %v5764_v44 = vpop.f32.mrb[40].mxu0  ;;  %v5057_v47 = vld [vmem:[%s7587_s6 + $0xb8] sm:$0xff] }
0x1ed2   :  { %v4261_v43 = vpop.f32.mrb[41].mxu0 }
0x1ed3   :  { %v7465_v8 = vadd.f32 %v4097_v15, %v4092_v54  ;;  %6124 = vmatprep.subr.bf16.mxu1 %v6123_v10  ;;  %v6127_v53 = vpack.c.bf16 %v5764_v44, %v4261_v43  ;;  %v5058_v44 = vld [vmem:[%s7588_s7 + $0x80] sm:$0xff]  ;;  %v5059_v43 = vld [vmem:[%s7588_s7 + $0x88] sm:$0xff] }
0x1ed5   :  { %v4270_v36 = vadd.f32 %v7465_v8, %v7305_v29  ;;  %v6117_v29 = vpack.c.bf16 %v5750_v33, %v4176_v18  ;;  %v5055_v18 = vld [vmem:[%s7587_s6 + $0xa8] sm:$0xff] }
0x1ed7   :  { %v4272_v48 = vadd.f32 %v4270_v36, %v3702_v14  ;;  %6119 = vmatprep.subr.msk.bf16.mxu0 %vm6779_vm10, %v6117_v29 }
0x1ed8   :  { %6122 = vmatpush3.bf16.xpose.msk.msra.mxu0 %vm6779_vm10, %v6117_v29  ;;  %v5056_v29 = vld [vmem:[%s7587_s6 + $0xb0] sm:$0xff] }
0x1ed9   :  { %5773 = vmatprep.mubr.msk.f32.mxu1 %vm108_vm0, %v4272_v48 }
0x1eda   :  { %5774 = vmatmul.mubr.msk.f32.vlgmr.msra.gmra.mrb[32].mxu1 %vm108_vm0, %v4273_v52 }
0x1edb   :  { %6126 = vmatpush3.bf16.msra.mxu1 %v6123_v10  ;;  %v6143_v10 = vpack.c.bf16 %v5057_v47, %v5056_v29 }
0x1edc   :  { %6128 = vmatprep.subr.bf16.mxu1 %v6127_v53 }
0x1edf   :  { %6130 = vmatpush3.bf16.msra.mxu1 %v6127_v53  ;;  %v5060_v53 = vld [vmem:[%s7588_s7 + $0x90] sm:$0xff] }
0x1ee0   :  { %6132 = vmatprep.subr.bf16.mxu1 %v6131_v40 }
0x1fad   :  { %v5775_v62 = vpop.f32.mrb[32].mxu1 }
0x1fae   :  { %v4346_v1 = vpop.f32.mrb[33].mxu1 }
0x1faf   :  { %5784 = vmatprep.mubr.msk.f32.mxu0 %vm108_vm0, %v4346_v1  ;;  %v5061_v1 = vld [vmem:[%s7588_s7 + $0x98] sm:$0xff] }
0x1fb0   :  { %5785 = vmatmul.mubr.msk.f32.vlgmr.msra.gmra.mrb[42].mxu0 %vm108_vm0, %v5775_v62  ;;  %v6147_v62 = vpack.c.bf16 %v5059_v43, %v5058_v44 }
0x2083   :  { %v5786_v59 = vpop.f32.mrb[42].mxu0 }
0x2084   :  { %v4445_v34 = vadd.f32 %v5786_v59, %v6998_v49  ;;  %v4439_v35 = vpop.f32.mrb[43].mxu0  ;;  %v6151_v59 = vpack.c.bf16 %v5061_v1, %v5060_v53 }
0x2085   :  { %v4440_v6 = vadd.f32 %v4439_v35, %v6996_v57  ;;  %v5063_v35 = vld [vmem:[%s7588_s7 + $0xa8] sm:$0xff] }
0x2086   :  { %v4451_v32 = vsel %vm108_vm0, %v4445_v34, -inf }
0x2087   :  { %4452 = vmax.xlane.f32.xlu0 %v4451_v32  ;;  %v4448_v12 = vsel %vm108_vm0, %v4440_v6, -inf }
0x2088   :  { %4449 = vmax.xlane.f32.xlu1 %v4448_v12 }
0x2114   :  { %v4453_v0 = vpop.xlane.xlu0 %4452 }
0x2115   :  { %v4455_v3 = vsub.f32 %v4445_v34, %v4453_v0  ;;  %v4450_v22 = vpop.xlane.xlu1 %4449  ;;  %v5062_v34 = vld [vmem:[%s7588_s7 + $0xa0] sm:$0xff] }
0x2116   :  { %v4454_v63 = vsub.f32 %v4440_v6, %v4450_v22  ;;  %v6155_v6 = vpack.c.bf16 %v5063_v35, %v5062_v34 }
0x2117   :  { %v4458_v56 = vmul.f32 1.442695, %v4455_v3 }
0x2118   :  { %v4456_v17 = vmul.f32 1.442695, %v4454_v63 }
0x211a   :  { %6316 = vpow2.f32 %v4456_v17 }
0x211b   :  { %6318 = vpow2.f32 %v4458_v56  ;;  %v4663_v56 = vrot.slane %v7447_v23, %v6696_v60  ;;  %v5065_v60 = vld [vmem:[%s7588_s7 + $0xb8] sm:$0xff] }
0x2124   :  { %v6317_v61 = vpop.eup %6316 }
0x2125   :  { %v4460_v49 = vsel %vm108_vm0, %v6317_v61, 0.0  ;;  %v6319_v55 = vpop.eup %6318 }
0x2126   :  { %4461 = vadd.xlane.f32.xlu1 %v4460_v49  ;;  %v4463_v57 = vsel %vm108_vm0, %v6319_v55, 0.0 }
0x212a   :  { %4464 = vadd.xlane.f32.xlu1 %v4463_v57  ;;  %v4669_v57 = vrot.slane %v7447_v23, %v6731_v4  ;;  %v4675_v4 = vrot.slane %v7447_v23, %v6931_v9 }
0x21b3   :  { %v4462_v21 = vpop.xlane.xlu1 %4461 }
0x21b4   :  { %6320 = vrcp.f32 %v4462_v21 }
0x21b7   :  { %v4465_v42 = vpop.xlane.xlu1 %4464 }
0x21b8   :  { %6322 = vrcp.f32 %v4465_v42  ;;  %v5064_v42 = vld [vmem:[%s7588_s7 + $0xb0] sm:$0xff]  ;;  %s6381_s7 = smov [#allocation2]  }
0x21b9   :  { %s4893_s2 = sshll.u32 %s6381_s7, 4  ;;  %s4894_s2 = int_to_ptr.vmem [resolvable:$true] %s4893_s2 }
0x21ba   :  { %s6344_s27 = scalar_lea.vmem %s4894_s2, 256  ;;  %p6349_p1 = scmp.lt.s32.totalorder %s4894_s2, %s4894_s2 }
0x21bb   :  { %p6345_p0 = scmp.ne.s32.totalorder %s4894_s2, %s6344_s27  ;;  %p6350_p2 = scmp.lt.s32.totalorder %s6344_s27, %s6344_s27 }
0x21bd   :  { %p6351_p3 = por %p6350_p2, %p6349_p1 }
0x21be   :  { %v6321_v24 = vpop.eup %6320 }
0x21bf   :  { %v4468_v31 = vmul.f32 %v6321_v24, %v6317_v61  ;;  %v6159_v24 = vpack.c.bf16 %v5065_v60, %v5064_v42  ;;  %p6352_p4 = pnand %p6351_p3, %p6345_p0 }
0x21c1   :  { %5795 = vmatprep.mubr.msk.f32.mxu1 %vm108_vm0, %v4468_v31 }
0x21c2   :  { %v6323_v15 = vpop.eup %6322 }
0x21c3   :  { %v4469_v39 = vmul.f32 %v6323_v15, %v6319_v55 }
0x21c5   :  { %5796 = vmatmul.mubr.msk.f32.vlgmr.msra.gmra.mrb[34].mxu1 %vm108_vm0, %v4469_v39 }
0x21c6   :  { %6134 = vmatpush3.bf16.msra.mxu1 %v6131_v40 }
0x21c7   :  { %6136 = vmatprep.subr.bf16.mxu1 %v6135_v2 }
0x21ca   :  { %6138 = vmatpush3.bf16.msra.mxu1 %v6135_v2 }
0x21cb   :  { %6148 = vmatprep.subr.bf16.mxu1 %v6147_v62 }
0x2298   :  { %v5797_v28 = vpop.f32.mrb[34].mxu1 }
0x2299   :  { %v4542_v16 = vpop.f32.mrb[35].mxu1 }
0x229a   :  { %5806 = vmatprep.mubr.msk.f32.mxu1 %vm108_vm0, %v4542_v16 }
0x229b   :  { %5807 = vmatmul.mubr.msk.f32.vlgmr.msra.gmra.mrb[36].mxu1 %vm108_vm0, %v5797_v28  ;;  %v4845_v28 = vrot.slane %v7447_v23, %v7075_v45 }
0x229c   :  { %6150 = vmatpush3.bf16.msra.mxu1 %v6147_v62  ;;  %v4883_v62 = vrot.slane %v7447_v23, %v6649_v37 }
0x229d   :  { %6152 = vmatprep.subr.bf16.mxu1 %v6151_v59 }
0x22a0   :  { %6154 = vmatpush3.bf16.msra.mxu1 %v6151_v59 }
0x22a1   :  { %6156 = vmatprep.subr.bf16.mxu1 %v6155_v6 }
0x22a4   :  { %6158 = vmatpush3.bf16.msra.mxu1 %v6155_v6 }
0x22a5   :  { %6160 = vmatprep.subr.bf16.mxu1 %v6159_v24 }
0x22a8   :  { %6162 = vmatpush3.bf16.msra.mxu1 %v6159_v24 }
0x236e   :  { %v5808_v19 = vpop.f32.mrb[36].mxu1 }
0x236f   :  { %v4633_v27 = vadd.f32 %v5808_v19, %v7461_v46  ;;  %v4623_v54 = vpop.f32.mrb[37].mxu1 }
0x2370   :  { %v4632_v30 = vadd.f32 %v4623_v54, %v7465_v8  ;;  %v5054_v8 = vld [vmem:[%s7587_s6 + $0xa0] sm:$0xff] }
0x2371   :  { %v4637_v25 = vsel %vm108_vm0, %v4633_v27, 0.0  ;;  %v6139_v38 = vpack.c.bf16 %v5055_v18, %v5054_v8 }
0x2372   :  { %4638 = vadd.xlane.f32.xlu0 %v4637_v25  ;;  %v4634_v20 = vsel %vm108_vm0, %v4632_v30, 0.0 }
0x2373   :  { %4635 = vadd.xlane.f32.xlu1 %v4634_v20  ;;  %6140 = vmatprep.subr.bf16.mxu0 %v6139_v38 }
0x2374   :  { %6142 = vmatpush3.bf16.msra.mxu0 %v6139_v38 }
0x2375   :  { %6144 = vmatprep.subr.bf16.mxu0 %v6143_v10 }
0x2378   :  { %6146 = vmatpush3.bf16.msra.mxu0 %v6143_v10  ;;  %v4877_v10 = vrot.slane %v7447_v23, %v6558_v51 }
0x23ff   :  { %v4639_v14 = vpop.xlane.xlu0 %4638 }
0x2400   :  { %v4641_v36 = vmul.f32 0.03125, %v4639_v14  ;;  %v4636_v41 = vpop.xlane.xlu1 %4635 }
0x2401   :  { %v4640_v48 = vmul.f32 0.03125, %v4636_v41 }
0x2402   :  { %v4643_v52 = vsub.f32 %v4633_v27, %v4641_v36 }
0x2403   :  { %v4642_v7 = vsub.f32 %v4632_v30, %v4640_v48 }
0x2404   :  { %v4645_v13 = vmul.f32 %v4643_v52, %v4643_v52 }
0x2405   :  { %v4644_v26 = vmul.f32 %v4642_v7, %v4642_v7 }
0x2406   :  { %v4649_v33 = vsel %vm108_vm0, %v4645_v13, 0.0 }
0x2407   :  { %4650 = vadd.xlane.f32.xlu0 %v4649_v33  ;;  %v4646_v46 = vsel %vm108_vm0, %v4644_v26, 0.0 }
0x2408   :  { %4647 = vadd.xlane.f32.xlu1 %v4646_v46 }
0x2494   :  { %v4651_v32 = vpop.xlane.xlu0 %4650 }
0x2495   :  { %v4653_v12 = vmul.f32 0.03125, %v4651_v32  ;;  %v4648_v0 = vpop.xlane.xlu1 %4647 }
0x2496   :  { %v4652_v3 = vmul.f32 0.03125, %v4648_v0 }
0x2497   :  { %v4655_v22 = vadd.f32 1e-05, %v4653_v12 }
0x2498   :  { %v4654_v63 = vadd.f32 1e-05, %v4652_v3 }
0x2499   :  { %6324 = vrsqrt.f32 %v4655_v22 }
0x249a   :  { %6326 = vrsqrt.f32 %v4654_v63 }
0x24a3   :  { %v6325_v17 = vpop.eup %6324 }
0x24a4   :  { %v6327_v61 = vpop.eup %6326  ;;  %v4659_v49 = vmul.f32 %v6325_v17, %v4643_v52 }
0x24a5   :  { %v4658_v55 = vmul.f32 %v6327_v61, %v4642_v7 }
0x24a6   :  { %v4665_v5 = vmul.f32 %v4663_v56, %v4659_v49 }
0x24a7   :  { %v4664_v58 = vmul.f32 %v4663_v56, %v4658_v55 }
0x24a8   :  { %v4671_v21 = vadd.f32 %v4669_v57, %v4665_v5 }
0x24a9   :  { %v4670_v40 = vadd.f32 %v4669_v57, %v4664_v58 }
0x24ab   :  { %5817 = vmatprep.mubr.msk.f32.mxu0 %vm108_vm0, %v4670_v40 }
0x24ac   :  { %5818 = vmatmul.mubr.msk.f32.vlgmr.msra.gmra.mrb[44].mxu0 %vm108_vm0, %v4671_v21 }
0x257f   :  { %v5819_v31 = vpop.f32.mrb[44].mxu0 }
0x2580   :  { %v4754_v50 = vadd.f32 %v5819_v31, %v4675_v4  ;;  %v4748_v11 = vpop.f32.mrb[45].mxu0 }
0x2581   :  { %v4749_v15 = vadd.f32 %v4748_v11, %v4675_v4 }
0x2582   :  { %v4758_v2 = vmax.f32 %v4754_v50, 0.0 }
0x2583   :  { %v4757_v39 = vmax.f32 %v4749_v15, 0.0 }
0x2585   :  { %5836 = vmatprep.mubr.msk.f32.mxu1 %vm854_vm9, %v4757_v39 }
0x2586   :  { %5837 = vmatmul.mubr.msk.f32.vlgmr.msra.gmra.mrb[38].mxu1 %vm854_vm9, %v4758_v2 }
0x2659   :  { %v5838_v16 = vpop.f32.mrb[38].mxu1 }
0x265a   :  { %v4841_v19 = vadd.f32 %v5838_v16, %v4671_v21  ;;  %v4831_v27 = vpop.f32.mrb[39].mxu1 }
0x265b   :  { %v4840_v54 = vadd.f32 %v4831_v27, %v4670_v40 }
0x265c   :  { %v4847_v30 = vadd.f32 %v4845_v28, %v4841_v19 }
0x265d   :  { %v4846_v25 = vadd.f32 %v4845_v28, %v4840_v54 }
0x265e   :  { %v4851_v9 = vsel %vm108_vm0, %v4847_v30, 0.0 }
0x265f   :  { %4852 = vadd.xlane.f32.xlu0 %v4851_v9  ;;  %v4848_v20 = vsel %vm108_vm0, %v4846_v25, 0.0 }
0x2660   :  { %4849 = vadd.xlane.f32.xlu1 %v4848_v20 }
0x26ec   :  { %v4853_v14 = vpop.xlane.xlu0 %4852 }
0x26ed   :  { %v4855_v36 = vmul.f32 0.03125, %v4853_v14  ;;  %v4850_v41 = vpop.xlane.xlu1 %4849 }
0x26ee   :  { %v4854_v48 = vmul.f32 0.03125, %v4850_v41 }
0x26ef   :  { %v4857_v52 = vsub.f32 %v4847_v30, %v4855_v36 }
0x26f0   :  { %v4856_v7 = vsub.f32 %v4846_v25, %v4854_v48 }
0x26f1   :  { %v4859_v13 = vmul.f32 %v4857_v52, %v4857_v52 }
0x26f2   :  { %v4858_v45 = vmul.f32 %v4856_v7, %v4856_v7 }
0x26f3   :  { %v4863_v26 = vsel %vm108_vm0, %v4859_v13, 0.0 }
0x26f4   :  { %4864 = vadd.xlane.f32.xlu0 %v4863_v26  ;;  %v4860_v33 = vsel %vm108_vm0, %v4858_v45, 0.0 }
0x26f5   :  { %4861 = vadd.xlane.f32.xlu1 %v4860_v33 }
0x2781   :  { %v4865_v46 = vpop.xlane.xlu0 %4864 }
0x2782   :  { %v4867_v8 = vmul.f32 0.03125, %v4865_v46  ;;  %v4862_v18 = vpop.xlane.xlu1 %4861 }
0x2783   :  { %v4866_v29 = vmul.f32 0.03125, %v4862_v18 }
0x2784   :  { %v4869_v38 = vadd.f32 1e-05, %v4867_v8 }
0x2785   :  { %v4868_v47 = vadd.f32 1e-05, %v4866_v29 }
0x2786   :  { %6328 = vrsqrt.f32 %v4869_v38 }
0x2787   :  { %6330 = vrsqrt.f32 %v4868_v47 }
0x2790   :  { %v6329_v44 = vpop.eup %6328 }
0x2791   :  { %v6331_v43 = vpop.eup %6330  ;;  %v4873_v53 = vmul.f32 %v6329_v44, %v4857_v52 }
0x2792   :  { %v4872_v1 = vmul.f32 %v6331_v43, %v4856_v7 }
0x2793   :  { %v4879_v59 = vmul.f32 %v4877_v10, %v4873_v53 }
0x2794   :  { %v4878_v34 = vmul.f32 %v4877_v10, %v4872_v1 }
0x2795   :  { %v4885_v35 = vadd.f32 %v4883_v62, %v4879_v59 }
0x2796   :  { %v4884_v6 = vadd.f32 %v4883_v62, %v4878_v34 }
0x2797   :  { %4887 = vst.msk [vmem:[#allocation2 + $0x8] sm:$0xff] %vm108_vm0, %v4885_v35 }
0x2798   :  { %4886 = vst.msk [vmem:[#allocation2] sm:$0xff] %vm108_vm0, %v4884_v6 }
0x2799   :  { %6355 = shalt.err (!%p6352_p4)
}
0x279a   :  { %s6356_s29 = scalar_lea.hbm %s7590_s9, 256 }
0x279b   :  { %p6357_p5 = scmp.ne.s32.totalorder %s7590_s9, %s6356_s29  ;;  %p6360_p6 = scmp.lt.u32.totalorder %s6356_s29, %s7590_s9 }
0x279d   :  { %p6362_p7 = pnand %p6360_p6, %p6357_p5 }
0x279f   :  { %6365 = shalt.err (!%p6362_p7)
}
0x27a0   :  { %s6382_s12 = smov 128   ;;  %s6383_s13 = smov 8  }
0x27a1   :  { %4899 = dma.vmem_to_hbm [thread:$0]  %s4894_s2, 256, %s7590_s9, [#allocation3], %s6382_s12, %s6382_s12, %s6383_s13  }
0x27a2   :  { %6366 = dma.done.wait [#allocation3], 256  }
0x27a3   :  { %6367 = vsyncadd [#allocation3], 4294967040 }
0x27a4   :  { %4903 = vsyncpa [#allocation3], 1 }

</bundles_post_ra>
